<compile_context>
chip_gen: v7x
topology: tpu7x:2x2x1
jax: 0.10.0
libtpu: 0.0.40
codegen_flags: <defaults>
</compile_context>

<pallas_src>
import functools

import jax
import jax.numpy as jnp
from jax.experimental import pallas as pl
from jax.experimental.pallas import tpu as pltpu


_VMEM = pl.BlockSpec(memory_space=pltpu.MemorySpace.VMEM)


# ----------------------------------------------------------------------------
# In-kernel helpers
# ----------------------------------------------------------------------------
def _im2col_conv(pad_sc, patch_sc, w, b, *, B, S, k, cin, relu=True, residual=None):
    """One 'same' k x k conv + folded-BN affine (+residual) (+ReLU) as ONE matmul.

    pad_sc   : VMEM ref (B, S+2p, S+2p, cin) f32 — halo is zero, interior = input
    patch_sc : VMEM ref (B*S*S, k*k*cin) bf16 — fully overwritten here
    w        : bf16 (k*k*cin, cout) im2col weight;  b: f32 (1, cout)
    returns  : f32 (B*S*S, cout)
    """
    M = B * S * S
    for dy in range(k):                      # static unrolled taps
        for dx in range(k):
            t = dy * k + dx
            tap = pad_sc[:, dy:dy + S, dx:dx + S, :].reshape(M, cin)
            patch_sc[:, t * cin:(t + 1) * cin] = tap.astype(jnp.bfloat16)
    acc = jnp.dot(patch_sc[...], w, preferred_element_type=jnp.float32) + b
    if residual is not None:
        acc = acc + residual
    if relu:
        acc = jnp.maximum(acc, 0.0)
    return acc


# ----------------------------------------------------------------------------
# Kernel 1: fused conv trunk + both heads' 1x1 convs (activations stay in VMEM)
# ----------------------------------------------------------------------------
def _trunk_kernel(x_ref, w1_ref, b1_ref, wr_ref, br_ref, wh_ref, bh_ref,
                  heads_ref,
                  pad_in_sc, pad_f_sc, patch_in_sc, patch_f_sc,
                  *, B, S, I, F, k, R):
    p = k // 2
    # Zero the padded scratches once: halos stay zero for every layer because
    # only the interiors are overwritten below.
    pad_in_sc[...] = jnp.zeros_like(pad_in_sc)
    pad_f_sc[...] = jnp.zeros_like(pad_f_sc)

    # block1: conv(I->F) + BN + ReLU
    pad_in_sc[:, p:p + S, p:p + S, :] = x_ref[...]
    y = _im2col_conv(pad_in_sc, patch_in_sc, w1_ref[...], b1_ref[...],
                     B=B, S=S, k=k, cin=I, relu=True)

    # residual tower: y = relu(y + bn2(conv2(relu(bn1(conv1(y))))))
    for r in range(R):
        pad_f_sc[:, p:p + S, p:p + S, :] = y.reshape(B, S, S, F)
        h = _im2col_conv(pad_f_sc, patch_f_sc, wr_ref[r, 0], br_ref[r, 0],
                         B=B, S=S, k=k, cin=F, relu=True)
        pad_f_sc[:, p:p + S, p:p + S, :] = h.reshape(B, S, S, F)
        y = _im2col_conv(pad_f_sc, patch_f_sc, wr_ref[r, 1], br_ref[r, 1],
                         B=B, S=S, k=k, cin=F, relu=True, residual=y)

    # fused policy (Cp channels) + value (1 channel) 1x1 convs + BN + ReLU
    heads = jnp.dot(y.astype(jnp.bfloat16), wh_ref[...],
                    preferred_element_type=jnp.float32) + bh_ref[...]
    heads_ref[...] = jnp.maximum(heads, 0.0).astype(heads_ref.dtype)


def _trunk_call(x, w1, b1, wr, br, wh, bh, *, k):
    B, S, _, I = x.shape
    F = w1.shape[1]
    R = wr.shape[0]
    Cp1 = wh.shape[1]
    p = k // 2
    M = B * S * S
    kern = functools.partial(_trunk_kernel, B=B, S=S, I=I, F=F, k=k, R=R)
    return pl.pallas_call(
        kern,
        out_shape=jax.ShapeDtypeStruct((M, Cp1), jnp.bfloat16),
        in_specs=[_VMEM] * 7,
        out_specs=_VMEM,
        scratch_shapes=[
            pltpu.VMEM((B, S + 2 * p, S + 2 * p, I), jnp.float32),
            pltpu.VMEM((B, S + 2 * p, S + 2 * p, F), jnp.float32),
            pltpu.VMEM((M, k * k * I), jnp.bfloat16),
            pltpu.VMEM((M, k * k * F), jnp.bfloat16),
        ],
    )(x, w1, b1, wr, br, wh, bh)


# ----------------------------------------------------------------------------
# Kernel 2: policy linear + value MLP (lane-dense (B, O*S*S) logits output)
# ----------------------------------------------------------------------------
def _heads_kernel(ph_ref, vf_ref, wp_ref, bp_ref, wv1_ref, bv1_ref,
                  wv2_ref, bv2_ref, logits_ref, value_ref):
    logits_ref[...] = (jnp.dot(ph_ref[...], wp_ref[...],
                               preferred_element_type=jnp.float32) + bp_ref[...])
    h = jnp.maximum(jnp.dot(vf_ref[...], wv1_ref[...],
                            preferred_element_type=jnp.float32) + bv1_ref[...], 0.0)
    v = jnp.dot(h.astype(jnp.bfloat16), wv2_ref[...],
                preferred_element_type=jnp.float32) + bv2_ref[...]
    value_ref[...] = jnp.tanh(v)


def _heads_call(ph, vf, wp, bp, wv1, bv1, wv2, bv2):
    B = ph.shape[0]
    Dout = wp.shape[1]
    return pl.pallas_call(
        _heads_kernel,
        out_shape=(jax.ShapeDtypeStruct((B, Dout), jnp.float32),
                   jax.ShapeDtypeStruct((B, 1), jnp.float32)),
        in_specs=[_VMEM] * 8,
        out_specs=(_VMEM, _VMEM),
    )(ph, vf, wp, bp, wv1, bv1, wv2, bv2)


# ----------------------------------------------------------------------------
# Deterministic parameter init (BN folded; weights stored in im2col/bf16 form)
# ----------------------------------------------------------------------------
def init_params(key, *, num_in_channels, board_size, num_filters, kernel_size,
                num_res_blocks, num_policy_filters, num_out_channels,
                value_hidden_layer_size):
    eps = 1e-5
    keys = iter(jax.random.split(key, 24 + 12 * num_res_blocks))

    def conv_bn(cin, cout, k):
        w = 0.1 * jax.random.normal(next(keys), (k, k, cin, cout), jnp.float32)
        b = 0.1 * jax.random.normal(next(keys), (cout,), jnp.float32)
        gamma = 1.0 + 0.1 * jax.random.normal(next(keys), (cout,), jnp.float32)
        beta = 0.1 * jax.random.normal(next(keys), (cout,), jnp.float32)
        mean = 0.1 * jax.random.normal(next(keys), (cout,), jnp.float32)
        var = 0.9 + 0.1 * jnp.abs(jax.random.normal(next(keys), (cout,), jnp.float32))
        scale = gamma / jnp.sqrt(var + eps)               # fold BN into conv
        w_i2c = (w * scale).reshape(k * k * cin, cout).astype(jnp.bfloat16)
        b_fold = ((b - mean) * scale + beta).reshape(1, cout)
        return w_i2c, b_fold

    def linear(din, dout):
        w = (jax.random.normal(next(keys), (din, dout), jnp.float32)
             / jnp.sqrt(float(din))).astype(jnp.bfloat16)
        b = 0.1 * jax.random.normal(next(keys), (dout,), jnp.float32).reshape(1, dout)
        return w, b

    F, k, S = num_filters, kernel_size, board_size
    w1, b1 = conv_bn(num_in_channels, F, k)

    res_w, res_b = [], []
    for _ in range(num_res_blocks):
        wa, ba = conv_bn(F, F, k)
        wb, bb = conv_bn(F, F, k)
        res_w.append(jnp.stack([wa, wb]))
        res_b.append(jnp.stack([ba, bb]))
    res_w = jnp.stack(res_w)          # (R, 2, k*k*F, F) bf16
    res_b = jnp.stack(res_b)          # (R, 2, 1, F) f32

    wp_c, bp_c = conv_bn(F, num_policy_filters, 1)        # policy 1x1 conv
    wv_c, bv_c = conv_bn(F, 1, 1)                         # value 1x1 conv
    wh = jnp.concatenate([wp_c, wv_c], axis=1)            # (F, Cp+1) bf16
    bh = jnp.concatenate([bp_c, bv_c], axis=1)            # (1, Cp+1) f32

    s2 = S * S
    # Policy linear weight rows are in NHWC-flatten order (h, w, c).
    wp, bp = linear(num_policy_filters * s2, num_out_channels * s2)
    wv1, bv1 = linear(s2, value_hidden_layer_size)
    wv2, bv2 = linear(value_hidden_layer_size, 1)

    return {"w1": w1, "b1": b1, "res_w": res_w, "res_b": res_b,
            "wh": wh, "bh": bh, "wp": wp, "bp": bp,
            "wv1": wv1, "bv1": bv1, "wv2": wv2, "bv2": bv2}


# ----------------------------------------------------------------------------
# Forward pass (all compute in two Pallas kernels; tiny XLA glue in between)
# ----------------------------------------------------------------------------
def action_mask(state_nchw, num_out_channels):
    """Deterministic synthetic mask: action (o, r, c) legal iff state[b, 0, r, c] > 0."""
    B, _, S, _ = state_nchw.shape
    return jnp.broadcast_to(state_nchw[:, :1, :, :] > 0.0, (B, num_out_channels, S, S))


def network_forward(params, state, *, num_out_channels, kernel_size):
    """state: (B, I, S, S) or (I, S, S) float32 (NCHW, torch convention)."""
    if state.ndim == 3:
        state = state[None]
    elif state.ndim != 4:
        raise ValueError(f"state must be 3D or 4D tensor, but got {state.ndim}D tensor")

    B, _, S, _ = state.shape
    O = num_out_channels

    x = jnp.transpose(state, (0, 2, 3, 1)).astype(jnp.float32)     # NCHW -> NHWC

    # Fused trunk + head 1x1 convs: (B*S*S, Cp+1), rows ordered (b, h, w).
    heads = _trunk_call(x, params["w1"], params["b1"], params["res_w"],
                        params["res_b"], params["wh"], params["bh"],
                        k=kernel_size)
    Cp = heads.shape[1] - 1
    ph_flat = heads[:, :Cp].reshape(B, S * S * Cp)     # (h, w, c) flatten order
    v_flat = heads[:, Cp:].reshape(B, S * S)           # (h, w) flatten order

    logits_flat, value = _heads_call(
        ph_flat, v_flat, params["wp"], params["bp"],
        params["wv1"], params["bv1"], params["wv2"], params["bv2"])

    unmasked = logits_flat.reshape(B, O, S, S)          # torch Unflatten (o, h, w)
    mask = action_mask(state, O)
    logits = jnp.where(mask, unmasked, -jnp.inf)
    return logits, value


# ----------------------------------------------------------------------------
# Pure-JAX reference (same folded/bf16 weights & quantization) for validation
# ----------------------------------------------------------------------------
def reference_forward(params, state, *, num_out_channels, kernel_size):
    B, _, S, _ = state.shape
    k = kernel_size
    p = k // 2
    x = jnp.transpose(state, (0, 2, 3, 1)).astype(jnp.float32)

    def conv(x_nhwc, w, b, relu=True, residual=None):
        cin = x_nhwc.shape[-1]
        xp = jnp.pad(x_nhwc, ((0, 0), (p, p), (p, p), (0, 0)))
        cols = [xp[:, dy:dy + S, dx:dx + S, :].reshape(B * S * S, cin)
                for dy in range(k) for dx in range(k)]
        patch = jnp.concatenate(cols, axis=1).astype(jnp.bfloat16)
        acc = jnp.dot(patch, w, preferred_element_type=jnp.float32) + b
        if residual is not None:
            acc = acc + residual
        return jnp.maximum(acc, 0.0) if relu else acc

    F = params["w1"].shape[1]
    y = conv(x, params["w1"], params["b1"])
    for r in range(params["res_w"].shape[0]):
        h = conv(y.reshape(B, S, S, F), params["res_w"][r, 0], params["res_b"][r, 0])
        y = conv(h.reshape(B, S, S, F), params["res_w"][r, 1], params["res_b"][r, 1],
                 residual=y)

    heads = jnp.maximum(
        jnp.dot(y.astype(jnp.bfloat16), params["wh"],
                preferred_element_type=jnp.float32) + params["bh"], 0.0
    ).astype(jnp.bfloat16)
    Cp = heads.shape[1] - 1
    ph = heads[:, :Cp].reshape(B, S * S * Cp)
    vf = heads[:, Cp:].reshape(B, S * S)

    logits_flat = (jnp.dot(ph, params["wp"], preferred_element_type=jnp.float32)
                   + params["bp"])
    hv = jnp.maximum(jnp.dot(vf, params["wv1"],
                             preferred_element_type=jnp.float32) + params["bv1"], 0.0)
    v = (jnp.dot(hv.astype(jnp.bfloat16), params["wv2"],
                 preferred_element_type=jnp.float32) + params["bv2"])
    value = jnp.tanh(v)

    unmasked = logits_flat.reshape(B, num_out_channels, S, S)
    mask = action_mask(state, num_out_channels)
    logits = jnp.where(mask, unmasked, -jnp.inf)
    return logits, value


# ----------------------------------------------------------------------------
if __name__ == "__main__":
    num_in_channels = 4
    board_size = 8
    num_filters = 32
    kernel_size = 3
    num_res_blocks = 2
    num_policy_filters = 4
    num_out_channels = 2
    value_hidden_layer_size = 32
    batch = 2

    root = jax.random.PRNGKey(0)
    k_param, k_state = jax.random.split(root)

    params = init_params(
        k_param,
        num_in_channels=num_in_channels, board_size=board_size,
        num_filters=num_filters, kernel_size=kernel_size,
        num_res_blocks=num_res_blocks, num_policy_filters=num_policy_filters,
        num_out_channels=num_out_channels,
        value_hidden_layer_size=value_hidden_layer_size)

    state = jax.random.normal(
        k_state, (batch, num_in_channels, board_size, board_size), jnp.float32)

    # Static config bound via functools.partial (NOT put in the traced params
    # pytree), so reshape shapes stay concrete under jit.
    fwd = jax.jit(functools.partial(network_forward,
                                    num_out_channels=num_out_channels,
                                    kernel_size=kernel_size))

    logits, value = fwd(params, state)
    jax.block_until_ready((logits, value))

    # Shape / range sanity checks.
    assert logits.shape == (batch, num_out_channels, board_size, board_size)
    assert value.shape == (batch, 1)
    assert bool(jnp.all(jnp.abs(value) <= 1.0))
    # Masked entries are -inf, unmasked are finite.
    assert bool(jnp.all(jnp.isfinite(jnp.where(jnp.isneginf(logits), 0.0, logits))))

    # Numerical check against the pure-JAX reference (same bf16 quantization).
    ref_logits, ref_value = reference_forward(
        params, state, num_out_channels=num_out_channels, kernel_size=kernel_size)
    assert bool(jnp.all(jnp.isclose(logits, ref_logits, rtol=5e-2, atol=5e-2)))
    assert bool(jnp.all(jnp.isclose(value, ref_value, rtol=5e-2, atol=5e-2)))

    print("KERNEL_OK")
</pallas_src>

<mosaic_0001>
module attributes {stable_mosaic.version = 11 : i64} {
  func.func @_trunk_kernel(%arg0: memref<2x8x8x4xf32, #tpu.memory_space<vmem>>, %arg1: memref<36x32xbf16, #tpu.memory_space<vmem>>, %arg2: memref<1x32xf32, #tpu.memory_space<vmem>>, %arg3: memref<2x2x288x32xbf16, #tpu.memory_space<vmem>>, %arg4: memref<2x2x1x32xf32, #tpu.memory_space<vmem>>, %arg5: memref<32x5xbf16, #tpu.memory_space<vmem>>, %arg6: memref<1x5xf32, #tpu.memory_space<vmem>>, %arg7: memref<128x5xbf16, #tpu.memory_space<vmem>>, %arg8: memref<2x10x10x4xf32, #tpu.memory_space<vmem>>, %arg9: memref<2x10x10x32xf32, #tpu.memory_space<vmem>>, %arg10: memref<128x36xbf16, #tpu.memory_space<vmem>>, %arg11: memref<128x288xbf16, #tpu.memory_space<vmem>>) attributes {dimension_semantics = [], scalar_prefetch = 0 : i64, scratch_operands = 4 : i64, tpu.core_type = #tpu.core_type<tc>} {
    %cst = arith.constant 0.000000e+00 : f32
    %0 = vector.broadcast %cst : f32 to vector<2x10x10x4xf32>
    %c0 = arith.constant 0 : index
    %c0_0 = arith.constant 0 : index
    %c0_1 = arith.constant 0 : index
    %c0_2 = arith.constant 0 : index
    %1 = vector.load %arg8[%c0, %c0_0, %c0_1, %c0_2] : memref<2x10x10x4xf32, #tpu.memory_space<vmem>>, vector<2x10x10x4xf32>
    tpu.vector_store %arg8[%c0, %c0_0, %c0_1, %c0_2], %0 {strides = array<i32>} : memref<2x10x10x4xf32, #tpu.memory_space<vmem>>, vector<2x10x10x4xf32>,
    %cst_3 = arith.constant 0.000000e+00 : f32
    %2 = vector.broadcast %cst_3 : f32 to vector<2x10x10x32xf32>
    %c0_4 = arith.constant 0 : index
    %c0_5 = arith.constant 0 : index
    %c0_6 = arith.constant 0 : index
    %c0_7 = arith.constant 0 : index
    %3 = vector.load %arg9[%c0_4, %c0_5, %c0_6, %c0_7] : memref<2x10x10x32xf32, #tpu.memory_space<vmem>>, vector<2x10x10x32xf32>
    tpu.vector_store %arg9[%c0_4, %c0_5, %c0_6, %c0_7], %2 {strides = array<i32>} : memref<2x10x10x32xf32, #tpu.memory_space<vmem>>, vector<2x10x10x32xf32>,
    %c0_8 = arith.constant 0 : index
    %c0_9 = arith.constant 0 : index
    %c0_10 = arith.constant 0 : index
    %c0_11 = arith.constant 0 : index
    %4 = vector.load %arg0[%c0_8, %c0_9, %c0_10, %c0_11] : memref<2x8x8x4xf32, #tpu.memory_space<vmem>>, vector<2x8x8x4xf32>
    %c0_12 = arith.constant 0 : index
    %c1 = arith.constant 1 : index
    %c1_13 = arith.constant 1 : index
    %c0_14 = arith.constant 0 : index
    %5 = vector.load %arg8[%c0_12, %c1, %c1_13, %c0_14] : memref<2x10x10x4xf32, #tpu.memory_space<vmem>>, vector<2x8x8x4xf32>
    tpu.vector_store %arg8[%c0_12, %c1, %c1_13, %c0_14], %4 {strides = array<i32>} : memref<2x10x10x4xf32, #tpu.memory_space<vmem>>, vector<2x8x8x4xf32>,
    %c0_15 = arith.constant 0 : index
    %c0_16 = arith.constant 0 : index
    %6 = vector.load %arg1[%c0_15, %c0_16] : memref<36x32xbf16, #tpu.memory_space<vmem>>, vector<36x32xbf16>
    %c0_17 = arith.constant 0 : index
    %c0_18 = arith.constant 0 : index
    %7 = vector.load %arg2[%c0_17, %c0_18] : memref<1x32xf32, #tpu.memory_space<vmem>>, vector<1x32xf32>
    %c0_19 = arith.constant 0 : index
    %c0_20 = arith.constant 0 : index
    %c0_21 = arith.constant 0 : index
    %c0_22 = arith.constant 0 : index
    %8 = vector.load %arg8[%c0_19, %c0_20, %c0_21, %c0_22] : memref<2x10x10x4xf32, #tpu.memory_space<vmem>>, vector<2x8x8x4xf32>
    %9 = vector.shape_cast %8 : vector<2x8x8x4xf32> to vector<128x4xf32>
    %10 = arith.truncf %9 : vector<128x4xf32> to vector<128x4xbf16>
    %c0_23 = arith.constant 0 : index
    %c0_24 = arith.constant 0 : index
    %11 = vector.load %arg10[%c0_23, %c0_24] : memref<128x36xbf16, #tpu.memory_space<vmem>>, vector<128x4xbf16>
    tpu.vector_store %arg10[%c0_23, %c0_24], %10 {strides = array<i32>} : memref<128x36xbf16, #tpu.memory_space<vmem>>, vector<128x4xbf16>,
    %c0_25 = arith.constant 0 : index
    %c0_26 = arith.constant 0 : index
    %c1_27 = arith.constant 1 : index
    %c0_28 = arith.constant 0 : index
    %12 = vector.load %arg8[%c0_25, %c0_26, %c1_27, %c0_28] : memref<2x10x10x4xf32, #tpu.memory_space<vmem>>, vector<2x8x8x4xf32>
    %13 = vector.shape_cast %12 : vector<2x8x8x4xf32> to vector<128x4xf32>
    %14 = arith.truncf %13 : vector<128x4xf32> to vector<128x4xbf16>
    %c0_29 = arith.constant 0 : index
    %c4 = arith.constant 4 : index
    %15 = vector.load %arg10[%c0_29, %c4] : memref<128x36xbf16, #tpu.memory_space<vmem>>, vector<128x4xbf16>
    tpu.vector_store %arg10[%c0_29, %c4], %14 {strides = array<i32>} : memref<128x36xbf16, #tpu.memory_space<vmem>>, vector<128x4xbf16>,
    %c0_30 = arith.constant 0 : index
    %c0_31 = arith.constant 0 : index
    %c2 = arith.constant 2 : index
    %c0_32 = arith.constant 0 : index
    %16 = vector.load %arg8[%c0_30, %c0_31, %c2, %c0_32] : memref<2x10x10x4xf32, #tpu.memory_space<vmem>>, vector<2x8x8x4xf32>
    %17 = vector.shape_cast %16 : vector<2x8x8x4xf32> to vector<128x4xf32>
    %18 = arith.truncf %17 : vector<128x4xf32> to vector<128x4xbf16>
    %c0_33 = arith.constant 0 : index
    %c8 = arith.constant 8 : index
    %19 = vector.load %arg10[%c0_33, %c8] : memref<128x36xbf16, #tpu.memory_space<vmem>>, vector<128x4xbf16>
    tpu.vector_store %arg10[%c0_33, %c8], %18 {strides = array<i32>} : memref<128x36xbf16, #tpu.memory_space<vmem>>, vector<128x4xbf16>,
    %c0_34 = arith.constant 0 : index
    %c1_35 = arith.constant 1 : index
    %c0_36 = arith.constant 0 : index
    %c0_37 = arith.constant 0 : index
    %20 = vector.load %arg8[%c0_34, %c1_35, %c0_36, %c0_37] : memref<2x10x10x4xf32, #tpu.memory_space<vmem>>, vector<2x8x8x4xf32>
    %21 = vector.shape_cast %20 : vector<2x8x8x4xf32> to vector<128x4xf32>
    %22 = arith.truncf %21 : vector<128x4xf32> to vector<128x4xbf16>
    %c0_38 = arith.constant 0 : index
    %c12 = arith.constant 12 : index
    %23 = vector.load %arg10[%c0_38, %c12] : memref<128x36xbf16, #tpu.memory_space<vmem>>, vector<128x4xbf16>
    tpu.vector_store %arg10[%c0_38, %c12], %22 {strides = array<i32>} : memref<128x36xbf16, #tpu.memory_space<vmem>>, vector<128x4xbf16>,
    %c0_39 = arith.constant 0 : index
    %c1_40 = arith.constant 1 : index
    %c1_41 = arith.constant 1 : index
    %c0_42 = arith.constant 0 : index
    %24 = vector.load %arg8[%c0_39, %c1_40, %c1_41, %c0_42] : memref<2x10x10x4xf32, #tpu.memory_space<vmem>>, vector<2x8x8x4xf32>
    %25 = vector.shape_cast %24 : vector<2x8x8x4xf32> to vector<128x4xf32>
    %26 = arith.truncf %25 : vector<128x4xf32> to vector<128x4xbf16>
    %c0_43 = arith.constant 0 : index
    %c16 = arith.constant 16 : index
    %27 = vector.load %arg10[%c0_43, %c16] : memref<128x36xbf16, #tpu.memory_space<vmem>>, vector<128x4xbf16>
    tpu.vector_store %arg10[%c0_43, %c16], %26 {strides = array<i32>} : memref<128x36xbf16, #tpu.memory_space<vmem>>, vector<128x4xbf16>,
    %c0_44 = arith.constant 0 : index
    %c1_45 = arith.constant 1 : index
    %c2_46 = arith.constant 2 : index
    %c0_47 = arith.constant 0 : index
    %28 = vector.load %arg8[%c0_44, %c1_45, %c2_46, %c0_47] : memref<2x10x10x4xf32, #tpu.memory_space<vmem>>, vector<2x8x8x4xf32>
    %29 = vector.shape_cast %28 : vector<2x8x8x4xf32> to vector<128x4xf32>
    %30 = arith.truncf %29 : vector<128x4xf32> to vector<128x4xbf16>
    %c0_48 = arith.constant 0 : index
    %c20 = arith.constant 20 : index
    %31 = vector.load %arg10[%c0_48, %c20] : memref<128x36xbf16, #tpu.memory_space<vmem>>, vector<128x4xbf16>
    tpu.vector_store %arg10[%c0_48, %c20], %30 {strides = array<i32>} : memref<128x36xbf16, #tpu.memory_space<vmem>>, vector<128x4xbf16>,
    %c0_49 = arith.constant 0 : index
    %c2_50 = arith.constant 2 : index
    %c0_51 = arith.constant 0 : index
    %c0_52 = arith.constant 0 : index
    %32 = vector.load %arg8[%c0_49, %c2_50, %c0_51, %c0_52] : memref<2x10x10x4xf32, #tpu.memory_space<vmem>>, vector<2x8x8x4xf32>
    %33 = vector.shape_cast %32 : vector<2x8x8x4xf32> to vector<128x4xf32>
    %34 = arith.truncf %33 : vector<128x4xf32> to vector<128x4xbf16>
    %c0_53 = arith.constant 0 : index
    %c24 = arith.constant 24 : index
    %35 = vector.load %arg10[%c0_53, %c24] : memref<128x36xbf16, #tpu.memory_space<vmem>>, vector<128x4xbf16>
    tpu.vector_store %arg10[%c0_53, %c24], %34 {strides = array<i32>} : memref<128x36xbf16, #tpu.memory_space<vmem>>, vector<128x4xbf16>,
    %c0_54 = arith.constant 0 : index
    %c2_55 = arith.constant 2 : index
    %c1_56 = arith.constant 1 : index
    %c0_57 = arith.constant 0 : index
    %36 = vector.load %arg8[%c0_54, %c2_55, %c1_56, %c0_57] : memref<2x10x10x4xf32, #tpu.memory_space<vmem>>, vector<2x8x8x4xf32>
    %37 = vector.shape_cast %36 : vector<2x8x8x4xf32> to vector<128x4xf32>
    %38 = arith.truncf %37 : vector<128x4xf32> to vector<128x4xbf16>
    %c0_58 = arith.constant 0 : index
    %c28 = arith.constant 28 : index
    %39 = vector.load %arg10[%c0_58, %c28] : memref<128x36xbf16, #tpu.memory_space<vmem>>, vector<128x4xbf16>
    tpu.vector_store %arg10[%c0_58, %c28], %38 {strides = array<i32>} : memref<128x36xbf16, #tpu.memory_space<vmem>>, vector<128x4xbf16>,
    %c0_59 = arith.constant 0 : index
    %c2_60 = arith.constant 2 : index
    %c2_61 = arith.constant 2 : index
    %c0_62 = arith.constant 0 : index
    %40 = vector.load %arg8[%c0_59, %c2_60, %c2_61, %c0_62] : memref<2x10x10x4xf32, #tpu.memory_space<vmem>>, vector<2x8x8x4xf32>
    %41 = vector.shape_cast %40 : vector<2x8x8x4xf32> to vector<128x4xf32>
    %42 = arith.truncf %41 : vector<128x4xf32> to vector<128x4xbf16>
    %c0_63 = arith.constant 0 : index
    %c32 = arith.constant 32 : index
    %43 = vector.load %arg10[%c0_63, %c32] : memref<128x36xbf16, #tpu.memory_space<vmem>>, vector<128x4xbf16>
    tpu.vector_store %arg10[%c0_63, %c32], %42 {strides = array<i32>} : memref<128x36xbf16, #tpu.memory_space<vmem>>, vector<128x4xbf16>,
    %c0_64 = arith.constant 0 : index
    %c0_65 = arith.constant 0 : index
    %44 = vector.load %arg10[%c0_64, %c0_65] : memref<128x36xbf16, #tpu.memory_space<vmem>>, vector<128x36xbf16>
    %cst_66 = arith.constant dense<0.000000e+00> : vector<128x32xf32>
    %45 = tpu.matmul %44, %6, %cst_66 {dimension_numbers = #tpu.dot_dimension_numbers<[1], [0], [0], [1], [0, 0, 1, 1], [], []>} : vector<128x36xbf16>, vector<36x32xbf16>, vector<128x32xf32> -> vector<128x32xf32>
    %46 = vector.broadcast %7 : vector<1x32xf32> to vector<128x32xf32>
    %47 = arith.addf %45, %46 : vector<128x32xf32>
    %cst_67 = arith.constant 0.000000e+00 : f32
    %48 = vector.broadcast %cst_67 : f32 to vector<128x32xf32>
    %49 = arith.maximumf %47, %48 : vector<128x32xf32>
    %50 = vector.shape_cast %49 : vector<128x32xf32> to vector<2x8x8x32xf32>
    %c0_68 = arith.constant 0 : index
    %c1_69 = arith.constant 1 : index
    %c1_70 = arith.constant 1 : index
    %c0_71 = arith.constant 0 : index
    %51 = vector.load %arg9[%c0_68, %c1_69, %c1_70, %c0_71] : memref<2x10x10x32xf32, #tpu.memory_space<vmem>>, vector<2x8x8x32xf32>
    tpu.vector_store %arg9[%c0_68, %c1_69, %c1_70, %c0_71], %50 {strides = array<i32>} : memref<2x10x10x32xf32, #tpu.memory_space<vmem>>, vector<2x8x8x32xf32>,
    %c0_72 = arith.constant 0 : index
    %c0_73 = arith.constant 0 : index
    %c0_74 = arith.constant 0 : index
    %c0_75 = arith.constant 0 : index
    %52 = vector.load %arg3[%c0_72, %c0_73, %c0_74, %c0_75] : memref<2x2x288x32xbf16, #tpu.memory_space<vmem>>, vector<1x1x288x32xbf16>
    %53 = vector.shape_cast %52 : vector<1x1x288x32xbf16> to vector<288x32xbf16>
    %c0_76 = arith.constant 0 : index
    %c0_77 = arith.constant 0 : index
    %c0_78 = arith.constant 0 : index
    %c0_79 = arith.constant 0 : index
    %54 = vector.load %arg4[%c0_76, %c0_77, %c0_78, %c0_79] : memref<2x2x1x32xf32, #tpu.memory_space<vmem>>, vector<1x1x1x32xf32>
    %55 = vector.shape_cast %54 : vector<1x1x1x32xf32> to vector<1x32xf32>
    %c0_80 = arith.constant 0 : index
    %c0_81 = arith.constant 0 : index
    %c0_82 = arith.constant 0 : index
    %c0_83 = arith.constant 0 : index
    %56 = vector.load %arg9[%c0_80, %c0_81, %c0_82, %c0_83] : memref<2x10x10x32xf32, #tpu.memory_space<vmem>>, vector<2x8x8x32xf32>
    %57 = vector.shape_cast %56 : vector<2x8x8x32xf32> to vector<128x32xf32>
    %58 = arith.truncf %57 : vector<128x32xf32> to vector<128x32xbf16>
    %c0_84 = arith.constant 0 : index
    %c0_85 = arith.constant 0 : index
    %59 = vector.load %arg11[%c0_84, %c0_85] : memref<128x288xbf16, #tpu.memory_space<vmem>>, vector<128x32xbf16>
    tpu.vector_store %arg11[%c0_84, %c0_85], %58 {strides = array<i32>} : memref<128x288xbf16, #tpu.memory_space<vmem>>, vector<128x32xbf16>,
    %c0_86 = arith.constant 0 : index
    %c0_87 = arith.constant 0 : index
    %c1_88 = arith.constant 1 : index
    %c0_89 = arith.constant 0 : index
    %60 = vector.load %arg9[%c0_86, %c0_87, %c1_88, %c0_89] : memref<2x10x10x32xf32, #tpu.memory_space<vmem>>, vector<2x8x8x32xf32>
    %61 = vector.shape_cast %60 : vector<2x8x8x32xf32> to vector<128x32xf32>
    %62 = arith.truncf %61 : vector<128x32xf32> to vector<128x32xbf16>
    %c0_90 = arith.constant 0 : index
    %c32_91 = arith.constant 32 : index
    %63 = vector.load %arg11[%c0_90, %c32_91] : memref<128x288xbf16, #tpu.memory_space<vmem>>, vector<128x32xbf16>
    tpu.vector_store %arg11[%c0_90, %c32_91], %62 {strides = array<i32>} : memref<128x288xbf16, #tpu.memory_space<vmem>>, vector<128x32xbf16>,
    %c0_92 = arith.constant 0 : index
    %c0_93 = arith.constant 0 : index
    %c2_94 = arith.constant 2 : index
    %c0_95 = arith.constant 0 : index
    %64 = vector.load %arg9[%c0_92, %c0_93, %c2_94, %c0_95] : memref<2x10x10x32xf32, #tpu.memory_space<vmem>>, vector<2x8x8x32xf32>
    %65 = vector.shape_cast %64 : vector<2x8x8x32xf32> to vector<128x32xf32>
    %66 = arith.truncf %65 : vector<128x32xf32> to vector<128x32xbf16>
    %c0_96 = arith.constant 0 : index
    %c64 = arith.constant 64 : index
    %67 = vector.load %arg11[%c0_96, %c64] : memref<128x288xbf16, #tpu.memory_space<vmem>>, vector<128x32xbf16>
    tpu.vector_store %arg11[%c0_96, %c64], %66 {strides = array<i32>} : memref<128x288xbf16, #tpu.memory_space<vmem>>, vector<128x32xbf16>,
    %c0_97 = arith.constant 0 : index
    %c1_98 = arith.constant 1 : index
    %c0_99 = arith.constant 0 : index
    %c0_100 = arith.constant 0 : index
    %68 = vector.load %arg9[%c0_97, %c1_98, %c0_99, %c0_100] : memref<2x10x10x32xf32, #tpu.memory_space<vmem>>, vector<2x8x8x32xf32>
    %69 = vector.shape_cast %68 : vector<2x8x8x32xf32> to vector<128x32xf32>
    %70 = arith.truncf %69 : vector<128x32xf32> to vector<128x32xbf16>
    %c0_101 = arith.constant 0 : index
    %c96 = arith.constant 96 : index
    %71 = vector.load %arg11[%c0_101, %c96] : memref<128x288xbf16, #tpu.memory_space<vmem>>, vector<128x32xbf16>
    tpu.vector_store %arg11[%c0_101, %c96], %70 {strides = array<i32>} : memref<128x288xbf16, #tpu.memory_space<vmem>>, vector<128x32xbf16>,
    %c0_102 = arith.constant 0 : index
    %c1_103 = arith.constant 1 : index
    %c1_104 = arith.constant 1 : index
    %c0_105 = arith.constant 0 : index
    %72 = vector.load %arg9[%c0_102, %c1_103, %c1_104, %c0_105] : memref<2x10x10x32xf32, #tpu.memory_space<vmem>>, vector<2x8x8x32xf32>
    %73 = vector.shape_cast %72 : vector<2x8x8x32xf32> to vector<128x32xf32>
    %74 = arith.truncf %73 : vector<128x32xf32> to vector<128x32xbf16>
    %c0_106 = arith.constant 0 : index
    %c128 = arith.constant 128 : index
    %75 = vector.load %arg11[%c0_106, %c128] : memref<128x288xbf16, #tpu.memory_space<vmem>>, vector<128x32xbf16>
    tpu.vector_store %arg11[%c0_106, %c128], %74 {strides = array<i32>} : memref<128x288xbf16, #tpu.memory_space<vmem>>, vector<128x32xbf16>,
    %c0_107 = arith.constant 0 : index
    %c1_108 = arith.constant 1 : index
    %c2_109 = arith.constant 2 : index
    %c0_110 = arith.constant 0 : index
    %76 = vector.load %arg9[%c0_107, %c1_108, %c2_109, %c0_110] : memref<2x10x10x32xf32, #tpu.memory_space<vmem>>, vector<2x8x8x32xf32>
    %77 = vector.shape_cast %76 : vector<2x8x8x32xf32> to vector<128x32xf32>
    %78 = arith.truncf %77 : vector<128x32xf32> to vector<128x32xbf16>
    %c0_111 = arith.constant 0 : index
    %c160 = arith.constant 160 : index
    %79 = vector.load %arg11[%c0_111, %c160] : memref<128x288xbf16, #tpu.memory_space<vmem>>, vector<128x32xbf16>
    tpu.vector_store %arg11[%c0_111, %c160], %78 {strides = array<i32>} : memref<128x288xbf16, #tpu.memory_space<vmem>>, vector<128x32xbf16>,
    %c0_112 = arith.constant 0 : index
    %c2_113 = arith.constant 2 : index
    %c0_114 = arith.constant 0 : index
    %c0_115 = arith.constant 0 : index
    %80 = vector.load %arg9[%c0_112, %c2_113, %c0_114, %c0_115] : memref<2x10x10x32xf32, #tpu.memory_space<vmem>>, vector<2x8x8x32xf32>
    %81 = vector.shape_cast %80 : vector<2x8x8x32xf32> to vector<128x32xf32>
    %82 = arith.truncf %81 : vector<128x32xf32> to vector<128x32xbf16>
    %c0_116 = arith.constant 0 : index
    %c192 = arith.constant 192 : index
    %83 = vector.load %arg11[%c0_116, %c192] : memref<128x288xbf16, #tpu.memory_space<vmem>>, vector<128x32xbf16>
    tpu.vector_store %arg11[%c0_116, %c192], %82 {strides = array<i32>} : memref<128x288xbf16, #tpu.memory_space<vmem>>, vector<128x32xbf16>,
    %c0_117 = arith.constant 0 : index
    %c2_118 = arith.constant 2 : index
    %c1_119 = arith.constant 1 : index
    %c0_120 = arith.constant 0 : index
    %84 = vector.load %arg9[%c0_117, %c2_118, %c1_119, %c0_120] : memref<2x10x10x32xf32, #tpu.memory_space<vmem>>, vector<2x8x8x32xf32>
    %85 = vector.shape_cast %84 : vector<2x8x8x32xf32> to vector<128x32xf32>
    %86 = arith.truncf %85 : vector<128x32xf32> to vector<128x32xbf16>
    %c0_121 = arith.constant 0 : index
    %c224 = arith.constant 224 : index
    %87 = vector.load %arg11[%c0_121, %c224] : memref<128x288xbf16, #tpu.memory_space<vmem>>, vector<128x32xbf16>
    tpu.vector_store %arg11[%c0_121, %c224], %86 {strides = array<i32>} : memref<128x288xbf16, #tpu.memory_space<vmem>>, vector<128x32xbf16>,
    %c0_122 = arith.constant 0 : index
    %c2_123 = arith.constant 2 : index
    %c2_124 = arith.constant 2 : index
    %c0_125 = arith.constant 0 : index
    %88 = vector.load %arg9[%c0_122, %c2_123, %c2_124, %c0_125] : memref<2x10x10x32xf32, #tpu.memory_space<vmem>>, vector<2x8x8x32xf32>
    %89 = vector.shape_cast %88 : vector<2x8x8x32xf32> to vector<128x32xf32>
    %90 = arith.truncf %89 : vector<128x32xf32> to vector<128x32xbf16>
    %c0_126 = arith.constant 0 : index
    %c256 = arith.constant 256 : index
    %91 = vector.load %arg11[%c0_126, %c256] : memref<128x288xbf16, #tpu.memory_space<vmem>>, vector<128x32xbf16>
    tpu.vector_store %arg11[%c0_126, %c256], %90 {strides = array<i32>} : memref<128x288xbf16, #tpu.memory_space<vmem>>, vector<128x32xbf16>,
    %c0_127 = arith.constant 0 : index
    %c0_128 = arith.constant 0 : index
    %92 = vector.load %arg11[%c0_127, %c0_128] : memref<128x288xbf16, #tpu.memory_space<vmem>>, vector<128x288xbf16>
    %cst_129 = arith.constant dense<0.000000e+00> : vector<128x32xf32>
    %93 = tpu.matmul %92, %53, %cst_129 {dimension_numbers = #tpu.dot_dimension_numbers<[1], [0], [0], [1], [0, 0, 1, 1], [], []>} : vector<128x288xbf16>, vector<288x32xbf16>, vector<128x32xf32> -> vector<128x32xf32>
    %94 = vector.broadcast %55 : vector<1x32xf32> to vector<128x32xf32>
    %95 = arith.addf %93, %94 : vector<128x32xf32>
    %cst_130 = arith.constant 0.000000e+00 : f32
    %96 = vector.broadcast %cst_130 : f32 to vector<128x32xf32>
    %97 = arith.maximumf %95, %96 : vector<128x32xf32>
    %98 = vector.shape_cast %97 : vector<128x32xf32> to vector<2x8x8x32xf32>
    %c0_131 = arith.constant 0 : index
    %c1_132 = arith.constant 1 : index
    %c1_133 = arith.constant 1 : index
    %c0_134 = arith.constant 0 : index
    %99 = vector.load %arg9[%c0_131, %c1_132, %c1_133, %c0_134] : memref<2x10x10x32xf32, #tpu.memory_space<vmem>>, vector<2x8x8x32xf32>
    tpu.vector_store %arg9[%c0_131, %c1_132, %c1_133, %c0_134], %98 {strides = array<i32>} : memref<2x10x10x32xf32, #tpu.memory_space<vmem>>, vector<2x8x8x32xf32>,
    %c0_135 = arith.constant 0 : index
    %c1_136 = arith.constant 1 : index
    %c0_137 = arith.constant 0 : index
    %c0_138 = arith.constant 0 : index
    %100 = vector.load %arg3[%c0_135, %c1_136, %c0_137, %c0_138] : memref<2x2x288x32xbf16, #tpu.memory_space<vmem>>, vector<1x1x288x32xbf16>
    %101 = vector.shape_cast %100 : vector<1x1x288x32xbf16> to vector<288x32xbf16>
    %c0_139 = arith.constant 0 : index
    %c1_140 = arith.constant 1 : index
    %c0_141 = arith.constant 0 : index
    %c0_142 = arith.constant 0 : index
    %102 = vector.load %arg4[%c0_139, %c1_140, %c0_141, %c0_142] : memref<2x2x1x32xf32, #tpu.memory_space<vmem>>, vector<1x1x1x32xf32>
    %103 = vector.shape_cast %102 : vector<1x1x1x32xf32> to vector<1x32xf32>
    %c0_143 = arith.constant 0 : index
    %c0_144 = arith.constant 0 : index
    %c0_145 = arith.constant 0 : index
    %c0_146 = arith.constant 0 : index
    %104 = vector.load %arg9[%c0_143, %c0_144, %c0_145, %c0_146] : memref<2x10x10x32xf32, #tpu.memory_space<vmem>>, vector<2x8x8x32xf32>
    %105 = vector.shape_cast %104 : vector<2x8x8x32xf32> to vector<128x32xf32>
    %106 = arith.truncf %105 : vector<128x32xf32> to vector<128x32xbf16>
    %c0_147 = arith.constant 0 : index
    %c0_148 = arith.constant 0 : index
    %107 = vector.load %arg11[%c0_147, %c0_148] : memref<128x288xbf16, #tpu.memory_space<vmem>>, vector<128x32xbf16>
    tpu.vector_store %arg11[%c0_147, %c0_148], %106 {strides = array<i32>} : memref<128x288xbf16, #tpu.memory_space<vmem>>, vector<128x32xbf16>,
    %c0_149 = arith.constant 0 : index
    %c0_150 = arith.constant 0 : index
    %c1_151 = arith.constant 1 : index
    %c0_152 = arith.constant 0 : index
    %108 = vector.load %arg9[%c0_149, %c0_150, %c1_151, %c0_152] : memref<2x10x10x32xf32, #tpu.memory_space<vmem>>, vector<2x8x8x32xf32>
    %109 = vector.shape_cast %108 : vector<2x8x8x32xf32> to vector<128x32xf32>
    %110 = arith.truncf %109 : vector<128x32xf32> to vector<128x32xbf16>
    %c0_153 = arith.constant 0 : index
    %c32_154 = arith.constant 32 : index
    %111 = vector.load %arg11[%c0_153, %c32_154] : memref<128x288xbf16, #tpu.memory_space<vmem>>, vector<128x32xbf16>
    tpu.vector_store %arg11[%c0_153, %c32_154], %110 {strides = array<i32>} : memref<128x288xbf16, #tpu.memory_space<vmem>>, vector<128x32xbf16>,
    %c0_155 = arith.constant 0 : index
    %c0_156 = arith.constant 0 : index
    %c2_157 = arith.constant 2 : index
    %c0_158 = arith.constant 0 : index
    %112 = vector.load %arg9[%c0_155, %c0_156, %c2_157, %c0_158] : memref<2x10x10x32xf32, #tpu.memory_space<vmem>>, vector<2x8x8x32xf32>
    %113 = vector.shape_cast %112 : vector<2x8x8x32xf32> to vector<128x32xf32>
    %114 = arith.truncf %113 : vector<128x32xf32> to vector<128x32xbf16>
    %c0_159 = arith.constant 0 : index
    %c64_160 = arith.constant 64 : index
    %115 = vector.load %arg11[%c0_159, %c64_160] : memref<128x288xbf16, #tpu.memory_space<vmem>>, vector<128x32xbf16>
    tpu.vector_store %arg11[%c0_159, %c64_160], %114 {strides = array<i32>} : memref<128x288xbf16, #tpu.memory_space<vmem>>, vector<128x32xbf16>,
    %c0_161 = arith.constant 0 : index
    %c1_162 = arith.constant 1 : index
    %c0_163 = arith.constant 0 : index
    %c0_164 = arith.constant 0 : index
    %116 = vector.load %arg9[%c0_161, %c1_162, %c0_163, %c0_164] : memref<2x10x10x32xf32, #tpu.memory_space<vmem>>, vector<2x8x8x32xf32>
    %117 = vector.shape_cast %116 : vector<2x8x8x32xf32> to vector<128x32xf32>
    %118 = arith.truncf %117 : vector<128x32xf32> to vector<128x32xbf16>
    %c0_165 = arith.constant 0 : index
    %c96_166 = arith.constant 96 : index
    %119 = vector.load %arg11[%c0_165, %c96_166] : memref<128x288xbf16, #tpu.memory_space<vmem>>, vector<128x32xbf16>
    tpu.vector_store %arg11[%c0_165, %c96_166], %118 {strides = array<i32>} : memref<128x288xbf16, #tpu.memory_space<vmem>>, vector<128x32xbf16>,
    %c0_167 = arith.constant 0 : index
    %c1_168 = arith.constant 1 : index
    %c1_169 = arith.constant 1 : index
    %c0_170 = arith.constant 0 : index
    %120 = vector.load %arg9[%c0_167, %c1_168, %c1_169, %c0_170] : memref<2x10x10x32xf32, #tpu.memory_space<vmem>>, vector<2x8x8x32xf32>
    %121 = vector.shape_cast %120 : vector<2x8x8x32xf32> to vector<128x32xf32>
    %122 = arith.truncf %121 : vector<128x32xf32> to vector<128x32xbf16>
    %c0_171 = arith.constant 0 : index
    %c128_172 = arith.constant 128 : index
    %123 = vector.load %arg11[%c0_171, %c128_172] : memref<128x288xbf16, #tpu.memory_space<vmem>>, vector<128x32xbf16>
    tpu.vector_store %arg11[%c0_171, %c128_172], %122 {strides = array<i32>} : memref<128x288xbf16, #tpu.memory_space<vmem>>, vector<128x32xbf16>,
    %c0_173 = arith.constant 0 : index
    %c1_174 = arith.constant 1 : index
    %c2_175 = arith.constant 2 : index
    %c0_176 = arith.constant 0 : index
    %124 = vector.load %arg9[%c0_173, %c1_174, %c2_175, %c0_176] : memref<2x10x10x32xf32, #tpu.memory_space<vmem>>, vector<2x8x8x32xf32>
    %125 = vector.shape_cast %124 : vector<2x8x8x32xf32> to vector<128x32xf32>
    %126 = arith.truncf %125 : vector<128x32xf32> to vector<128x32xbf16>
    %c0_177 = arith.constant 0 : index
    %c160_178 = arith.constant 160 : index
    %127 = vector.load %arg11[%c0_177, %c160_178] : memref<128x288xbf16, #tpu.memory_space<vmem>>, vector<128x32xbf16>
    tpu.vector_store %arg11[%c0_177, %c160_178], %126 {strides = array<i32>} : memref<128x288xbf16, #tpu.memory_space<vmem>>, vector<128x32xbf16>,
    %c0_179 = arith.constant 0 : index
    %c2_180 = arith.constant 2 : index
    %c0_181 = arith.constant 0 : index
    %c0_182 = arith.constant 0 : index
    %128 = vector.load %arg9[%c0_179, %c2_180, %c0_181, %c0_182] : memref<2x10x10x32xf32, #tpu.memory_space<vmem>>, vector<2x8x8x32xf32>
    %129 = vector.shape_cast %128 : vector<2x8x8x32xf32> to vector<128x32xf32>
    %130 = arith.truncf %129 : vector<128x32xf32> to vector<128x32xbf16>
    %c0_183 = arith.constant 0 : index
    %c192_184 = arith.constant 192 : index
    %131 = vector.load %arg11[%c0_183, %c192_184] : memref<128x288xbf16, #tpu.memory_space<vmem>>, vector<128x32xbf16>
    tpu.vector_store %arg11[%c0_183, %c192_184], %130 {strides = array<i32>} : memref<128x288xbf16, #tpu.memory_space<vmem>>, vector<128x32xbf16>,
    %c0_185 = arith.constant 0 : index
    %c2_186 = arith.constant 2 : index
    %c1_187 = arith.constant 1 : index
    %c0_188 = arith.constant 0 : index
    %132 = vector.load %arg9[%c0_185, %c2_186, %c1_187, %c0_188] : memref<2x10x10x32xf32, #tpu.memory_space<vmem>>, vector<2x8x8x32xf32>
    %133 = vector.shape_cast %132 : vector<2x8x8x32xf32> to vector<128x32xf32>
    %134 = arith.truncf %133 : vector<128x32xf32> to vector<128x32xbf16>
    %c0_189 = arith.constant 0 : index
    %c224_190 = arith.constant 224 : index
    %135 = vector.load %arg11[%c0_189, %c224_190] : memref<128x288xbf16, #tpu.memory_space<vmem>>, vector<128x32xbf16>
    tpu.vector_store %arg11[%c0_189, %c224_190], %134 {strides = array<i32>} : memref<128x288xbf16, #tpu.memory_space<vmem>>, vector<128x32xbf16>,
    %c0_191 = arith.constant 0 : index
    %c2_192 = arith.constant 2 : index
    %c2_193 = arith.constant 2 : index
    %c0_194 = arith.constant 0 : index
    %136 = vector.load %arg9[%c0_191, %c2_192, %c2_193, %c0_194] : memref<2x10x10x32xf32, #tpu.memory_space<vmem>>, vector<2x8x8x32xf32>
    %137 = vector.shape_cast %136 : vector<2x8x8x32xf32> to vector<128x32xf32>
    %138 = arith.truncf %137 : vector<128x32xf32> to vector<128x32xbf16>
    %c0_195 = arith.constant 0 : index
    %c256_196 = arith.constant 256 : index
    %139 = vector.load %arg11[%c0_195, %c256_196] : memref<128x288xbf16, #tpu.memory_space<vmem>>, vector<128x32xbf16>
    tpu.vector_store %arg11[%c0_195, %c256_196], %138 {strides = array<i32>} : memref<128x288xbf16, #tpu.memory_space<vmem>>, vector<128x32xbf16>,
    %c0_197 = arith.constant 0 : index
    %c0_198 = arith.constant 0 : index
    %140 = vector.load %arg11[%c0_197, %c0_198] : memref<128x288xbf16, #tpu.memory_space<vmem>>, vector<128x288xbf16>
    %cst_199 = arith.constant dense<0.000000e+00> : vector<128x32xf32>
    %141 = tpu.matmul %140, %101, %cst_199 {dimension_numbers = #tpu.dot_dimension_numbers<[1], [0], [0], [1], [0, 0, 1, 1], [], []>} : vector<128x288xbf16>, vector<288x32xbf16>, vector<128x32xf32> -> vector<128x32xf32>
    %142 = vector.broadcast %103 : vector<1x32xf32> to vector<128x32xf32>
    %143 = arith.addf %141, %142 : vector<128x32xf32>
    %144 = arith.addf %143, %49 : vector<128x32xf32>
    %cst_200 = arith.constant 0.000000e+00 : f32
    %145 = vector.broadcast %cst_200 : f32 to vector<128x32xf32>
    %146 = arith.maximumf %144, %145 : vector<128x32xf32>
    %147 = vector.shape_cast %146 : vector<128x32xf32> to vector<2x8x8x32xf32>
    %c0_201 = arith.constant 0 : index
    %c1_202 = arith.constant 1 : index
    %c1_203 = arith.constant 1 : index
    %c0_204 = arith.constant 0 : index
    %148 = vector.load %arg9[%c0_201, %c1_202, %c1_203, %c0_204] : memref<2x10x10x32xf32, #tpu.memory_space<vmem>>, vector<2x8x8x32xf32>
    tpu.vector_store %arg9[%c0_201, %c1_202, %c1_203, %c0_204], %147 {strides = array<i32>} : memref<2x10x10x32xf32, #tpu.memory_space<vmem>>, vector<2x8x8x32xf32>,
    %c1_205 = arith.constant 1 : index
    %c0_206 = arith.constant 0 : index
    %c0_207 = arith.constant 0 : index
    %c0_208 = arith.constant 0 : index
    %149 = vector.load %arg3[%c1_205, %c0_206, %c0_207, %c0_208] : memref<2x2x288x32xbf16, #tpu.memory_space<vmem>>, vector<1x1x288x32xbf16>
    %150 = vector.shape_cast %149 : vector<1x1x288x32xbf16> to vector<288x32xbf16>
    %c1_209 = arith.constant 1 : index
    %c0_210 = arith.constant 0 : index
    %c0_211 = arith.constant 0 : index
    %c0_212 = arith.constant 0 : index
    %151 = vector.load %arg4[%c1_209, %c0_210, %c0_211, %c0_212] : memref<2x2x1x32xf32, #tpu.memory_space<vmem>>, vector<1x1x1x32xf32>
    %152 = vector.shape_cast %151 : vector<1x1x1x32xf32> to vector<1x32xf32>
    %c0_213 = arith.constant 0 : index
    %c0_214 = arith.constant 0 : index
    %c0_215 = arith.constant 0 : index
    %c0_216 = arith.constant 0 : index
    %153 = vector.load %arg9[%c0_213, %c0_214, %c0_215, %c0_216] : memref<2x10x10x32xf32, #tpu.memory_space<vmem>>, vector<2x8x8x32xf32>
    %154 = vector.shape_cast %153 : vector<2x8x8x32xf32> to vector<128x32xf32>
    %155 = arith.truncf %154 : vector<128x32xf32> to vector<128x32xbf16>
    %c0_217 = arith.constant 0 : index
    %c0_218 = arith.constant 0 : index
    %156 = vector.load %arg11[%c0_217, %c0_218] : memref<128x288xbf16, #tpu.memory_space<vmem>>, vector<128x32xbf16>
    tpu.vector_store %arg11[%c0_217, %c0_218], %155 {strides = array<i32>} : memref<128x288xbf16, #tpu.memory_space<vmem>>, vector<128x32xbf16>,
    %c0_219 = arith.constant 0 : index
    %c0_220 = arith.constant 0 : index
    %c1_221 = arith.constant 1 : index
    %c0_222 = arith.constant 0 : index
    %157 = vector.load %arg9[%c0_219, %c0_220, %c1_221, %c0_222] : memref<2x10x10x32xf32, #tpu.memory_space<vmem>>, vector<2x8x8x32xf32>
    %158 = vector.shape_cast %157 : vector<2x8x8x32xf32> to vector<128x32xf32>
    %159 = arith.truncf %158 : vector<128x32xf32> to vector<128x32xbf16>
    %c0_223 = arith.constant 0 : index
    %c32_224 = arith.constant 32 : index
    %160 = vector.load %arg11[%c0_223, %c32_224] : memref<128x288xbf16, #tpu.memory_space<vmem>>, vector<128x32xbf16>
    tpu.vector_store %arg11[%c0_223, %c32_224], %159 {strides = array<i32>} : memref<128x288xbf16, #tpu.memory_space<vmem>>, vector<128x32xbf16>,
    %c0_225 = arith.constant 0 : index
    %c0_226 = arith.constant 0 : index
    %c2_227 = arith.constant 2 : index
    %c0_228 = arith.constant 0 : index
    %161 = vector.load %arg9[%c0_225, %c0_226, %c2_227, %c0_228] : memref<2x10x10x32xf32, #tpu.memory_space<vmem>>, vector<2x8x8x32xf32>
    %162 = vector.shape_cast %161 : vector<2x8x8x32xf32> to vector<128x32xf32>
    %163 = arith.truncf %162 : vector<128x32xf32> to vector<128x32xbf16>
    %c0_229 = arith.constant 0 : index
    %c64_230 = arith.constant 64 : index
    %164 = vector.load %arg11[%c0_229, %c64_230] : memref<128x288xbf16, #tpu.memory_space<vmem>>, vector<128x32xbf16>
    tpu.vector_store %arg11[%c0_229, %c64_230], %163 {strides = array<i32>} : memref<128x288xbf16, #tpu.memory_space<vmem>>, vector<128x32xbf16>,
    %c0_231 = arith.constant 0 : index
    %c1_232 = arith.constant 1 : index
    %c0_233 = arith.constant 0 : index
    %c0_234 = arith.constant 0 : index
    %165 = vector.load %arg9[%c0_231, %c1_232, %c0_233, %c0_234] : memref<2x10x10x32xf32, #tpu.memory_space<vmem>>, vector<2x8x8x32xf32>
    %166 = vector.shape_cast %165 : vector<2x8x8x32xf32> to vector<128x32xf32>
    %167 = arith.truncf %166 : vector<128x32xf32> to vector<128x32xbf16>
    %c0_235 = arith.constant 0 : index
    %c96_236 = arith.constant 96 : index
    %168 = vector.load %arg11[%c0_235, %c96_236] : memref<128x288xbf16, #tpu.memory_space<vmem>>, vector<128x32xbf16>
    tpu.vector_store %arg11[%c0_235, %c96_236], %167 {strides = array<i32>} : memref<128x288xbf16, #tpu.memory_space<vmem>>, vector<128x32xbf16>,
    %c0_237 = arith.constant 0 : index
    %c1_238 = arith.constant 1 : index
    %c1_239 = arith.constant 1 : index
    %c0_240 = arith.constant 0 : index
    %169 = vector.load %arg9[%c0_237, %c1_238, %c1_239, %c0_240] : memref<2x10x10x32xf32, #tpu.memory_space<vmem>>, vector<2x8x8x32xf32>
    %170 = vector.shape_cast %169 : vector<2x8x8x32xf32> to vector<128x32xf32>
    %171 = arith.truncf %170 : vector<128x32xf32> to vector<128x32xbf16>
    %c0_241 = arith.constant 0 : index
    %c128_242 = arith.constant 128 : index
    %172 = vector.load %arg11[%c0_241, %c128_242] : memref<128x288xbf16, #tpu.memory_space<vmem>>, vector<128x32xbf16>
    tpu.vector_store %arg11[%c0_241, %c128_242], %171 {strides = array<i32>} : memref<128x288xbf16, #tpu.memory_space<vmem>>, vector<128x32xbf16>,
    %c0_243 = arith.constant 0 : index
    %c1_244 = arith.constant 1 : index
    %c2_245 = arith.constant 2 : index
    %c0_246 = arith.constant 0 : index
    %173 = vector.load %arg9[%c0_243, %c1_244, %c2_245, %c0_246] : memref<2x10x10x32xf32, #tpu.memory_space<vmem>>, vector<2x8x8x32xf32>
    %174 = vector.shape_cast %173 : vector<2x8x8x32xf32> to vector<128x32xf32>
    %175 = arith.truncf %174 : vector<128x32xf32> to vector<128x32xbf16>
    %c0_247 = arith.constant 0 : index
    %c160_248 = arith.constant 160 : index
    %176 = vector.load %arg11[%c0_247, %c160_248] : memref<128x288xbf16, #tpu.memory_space<vmem>>, vector<128x32xbf16>
    tpu.vector_store %arg11[%c0_247, %c160_248], %175 {strides = array<i32>} : memref<128x288xbf16, #tpu.memory_space<vmem>>, vector<128x32xbf16>,
    %c0_249 = arith.constant 0 : index
    %c2_250 = arith.constant 2 : index
    %c0_251 = arith.constant 0 : index
    %c0_252 = arith.constant 0 : index
    %177 = vector.load %arg9[%c0_249, %c2_250, %c0_251, %c0_252] : memref<2x10x10x32xf32, #tpu.memory_space<vmem>>, vector<2x8x8x32xf32>
    %178 = vector.shape_cast %177 : vector<2x8x8x32xf32> to vector<128x32xf32>
    %179 = arith.truncf %178 : vector<128x32xf32> to vector<128x32xbf16>
    %c0_253 = arith.constant 0 : index
    %c192_254 = arith.constant 192 : index
    %180 = vector.load %arg11[%c0_253, %c192_254] : memref<128x288xbf16, #tpu.memory_space<vmem>>, vector<128x32xbf16>
    tpu.vector_store %arg11[%c0_253, %c192_254], %179 {strides = array<i32>} : memref<128x288xbf16, #tpu.memory_space<vmem>>, vector<128x32xbf16>,
    %c0_255 = arith.constant 0 : index
    %c2_256 = arith.constant 2 : index
    %c1_257 = arith.constant 1 : index
    %c0_258 = arith.constant 0 : index
    %181 = vector.load %arg9[%c0_255, %c2_256, %c1_257, %c0_258] : memref<2x10x10x32xf32, #tpu.memory_space<vmem>>, vector<2x8x8x32xf32>
    %182 = vector.shape_cast %181 : vector<2x8x8x32xf32> to vector<128x32xf32>
    %183 = arith.truncf %182 : vector<128x32xf32> to vector<128x32xbf16>
    %c0_259 = arith.constant 0 : index
    %c224_260 = arith.constant 224 : index
    %184 = vector.load %arg11[%c0_259, %c224_260] : memref<128x288xbf16, #tpu.memory_space<vmem>>, vector<128x32xbf16>
    tpu.vector_store %arg11[%c0_259, %c224_260], %183 {strides = array<i32>} : memref<128x288xbf16, #tpu.memory_space<vmem>>, vector<128x32xbf16>,
    %c0_261 = arith.constant 0 : index
    %c2_262 = arith.constant 2 : index
    %c2_263 = arith.constant 2 : index
    %c0_264 = arith.constant 0 : index
    %185 = vector.load %arg9[%c0_261, %c2_262, %c2_263, %c0_264] : memref<2x10x10x32xf32, #tpu.memory_space<vmem>>, vector<2x8x8x32xf32>
    %186 = vector.shape_cast %185 : vector<2x8x8x32xf32> to vector<128x32xf32>
    %187 = arith.truncf %186 : vector<128x32xf32> to vector<128x32xbf16>
    %c0_265 = arith.constant 0 : index
    %c256_266 = arith.constant 256 : index
    %188 = vector.load %arg11[%c0_265, %c256_266] : memref<128x288xbf16, #tpu.memory_space<vmem>>, vector<128x32xbf16>
    tpu.vector_store %arg11[%c0_265, %c256_266], %187 {strides = array<i32>} : memref<128x288xbf16, #tpu.memory_space<vmem>>, vector<128x32xbf16>,
    %c0_267 = arith.constant 0 : index
    %c0_268 = arith.constant 0 : index
    %189 = vector.load %arg11[%c0_267, %c0_268] : memref<128x288xbf16, #tpu.memory_space<vmem>>, vector<128x288xbf16>
    %cst_269 = arith.constant dense<0.000000e+00> : vector<128x32xf32>
    %190 = tpu.matmul %189, %150, %cst_269 {dimension_numbers = #tpu.dot_dimension_numbers<[1], [0], [0], [1], [0, 0, 1, 1], [], []>} : vector<128x288xbf16>, vector<288x32xbf16>, vector<128x32xf32> -> vector<128x32xf32>
    %191 = vector.broadcast %152 : vector<1x32xf32> to vector<128x32xf32>
    %192 = arith.addf %190, %191 : vector<128x32xf32>
    %cst_270 = arith.constant 0.000000e+00 : f32
    %193 = vector.broadcast %cst_270 : f32 to vector<128x32xf32>
    %194 = arith.maximumf %192, %193 : vector<128x32xf32>
    %195 = vector.shape_cast %194 : vector<128x32xf32> to vector<2x8x8x32xf32>
    %c0_271 = arith.constant 0 : index
    %c1_272 = arith.constant 1 : index
    %c1_273 = arith.constant 1 : index
    %c0_274 = arith.constant 0 : index
    %196 = vector.load %arg9[%c0_271, %c1_272, %c1_273, %c0_274] : memref<2x10x10x32xf32, #tpu.memory_space<vmem>>, vector<2x8x8x32xf32>
    tpu.vector_store %arg9[%c0_271, %c1_272, %c1_273, %c0_274], %195 {strides = array<i32>} : memref<2x10x10x32xf32, #tpu.memory_space<vmem>>, vector<2x8x8x32xf32>,
    %c1_275 = arith.constant 1 : index
    %c1_276 = arith.constant 1 : index
    %c0_277 = arith.constant 0 : index
    %c0_278 = arith.constant 0 : index
    %197 = vector.load %arg3[%c1_275, %c1_276, %c0_277, %c0_278] : memref<2x2x288x32xbf16, #tpu.memory_space<vmem>>, vector<1x1x288x32xbf16>
    %198 = vector.shape_cast %197 : vector<1x1x288x32xbf16> to vector<288x32xbf16>
    %c1_279 = arith.constant 1 : index
    %c1_280 = arith.constant 1 : index
    %c0_281 = arith.constant 0 : index
    %c0_282 = arith.constant 0 : index
    %199 = vector.load %arg4[%c1_279, %c1_280, %c0_281, %c0_282] : memref<2x2x1x32xf32, #tpu.memory_space<vmem>>, vector<1x1x1x32xf32>
    %200 = vector.shape_cast %199 : vector<1x1x1x32xf32> to vector<1x32xf32>
    %c0_283 = arith.constant 0 : index
    %c0_284 = arith.constant 0 : index
    %c0_285 = arith.constant 0 : index
    %c0_286 = arith.constant 0 : index
    %201 = vector.load %arg9[%c0_283, %c0_284, %c0_285, %c0_286] : memref<2x10x10x32xf32, #tpu.memory_space<vmem>>, vector<2x8x8x32xf32>
    %202 = vector.shape_cast %201 : vector<2x8x8x32xf32> to vector<128x32xf32>
    %203 = arith.truncf %202 : vector<128x32xf32> to vector<128x32xbf16>
    %c0_287 = arith.constant 0 : index
    %c0_288 = arith.constant 0 : index
    %204 = vector.load %arg11[%c0_287, %c0_288] : memref<128x288xbf16, #tpu.memory_space<vmem>>, vector<128x32xbf16>
    tpu.vector_store %arg11[%c0_287, %c0_288], %203 {strides = array<i32>} : memref<128x288xbf16, #tpu.memory_space<vmem>>, vector<128x32xbf16>,
    %c0_289 = arith.constant 0 : index
    %c0_290 = arith.constant 0 : index
    %c1_291 = arith.constant 1 : index
    %c0_292 = arith.constant 0 : index
    %205 = vector.load %arg9[%c0_289, %c0_290, %c1_291, %c0_292] : memref<2x10x10x32xf32, #tpu.memory_space<vmem>>, vector<2x8x8x32xf32>
    %206 = vector.shape_cast %205 : vector<2x8x8x32xf32> to vector<128x32xf32>
    %207 = arith.truncf %206 : vector<128x32xf32> to vector<128x32xbf16>
    %c0_293 = arith.constant 0 : index
    %c32_294 = arith.constant 32 : index
    %208 = vector.load %arg11[%c0_293, %c32_294] : memref<128x288xbf16, #tpu.memory_space<vmem>>, vector<128x32xbf16>
    tpu.vector_store %arg11[%c0_293, %c32_294], %207 {strides = array<i32>} : memref<128x288xbf16, #tpu.memory_space<vmem>>, vector<128x32xbf16>,
    %c0_295 = arith.constant 0 : index
    %c0_296 = arith.constant 0 : index
    %c2_297 = arith.constant 2 : index
    %c0_298 = arith.constant 0 : index
    %209 = vector.load %arg9[%c0_295, %c0_296, %c2_297, %c0_298] : memref<2x10x10x32xf32, #tpu.memory_space<vmem>>, vector<2x8x8x32xf32>
    %210 = vector.shape_cast %209 : vector<2x8x8x32xf32> to vector<128x32xf32>
    %211 = arith.truncf %210 : vector<128x32xf32> to vector<128x32xbf16>
    %c0_299 = arith.constant 0 : index
    %c64_300 = arith.constant 64 : index
    %212 = vector.load %arg11[%c0_299, %c64_300] : memref<128x288xbf16, #tpu.memory_space<vmem>>, vector<128x32xbf16>
    tpu.vector_store %arg11[%c0_299, %c64_300], %211 {strides = array<i32>} : memref<128x288xbf16, #tpu.memory_space<vmem>>, vector<128x32xbf16>,
    %c0_301 = arith.constant 0 : index
    %c1_302 = arith.constant 1 : index
    %c0_303 = arith.constant 0 : index
    %c0_304 = arith.constant 0 : index
    %213 = vector.load %arg9[%c0_301, %c1_302, %c0_303, %c0_304] : memref<2x10x10x32xf32, #tpu.memory_space<vmem>>, vector<2x8x8x32xf32>
    %214 = vector.shape_cast %213 : vector<2x8x8x32xf32> to vector<128x32xf32>
    %215 = arith.truncf %214 : vector<128x32xf32> to vector<128x32xbf16>
    %c0_305 = arith.constant 0 : index
    %c96_306 = arith.constant 96 : index
    %216 = vector.load %arg11[%c0_305, %c96_306] : memref<128x288xbf16, #tpu.memory_space<vmem>>, vector<128x32xbf16>
    tpu.vector_store %arg11[%c0_305, %c96_306], %215 {strides = array<i32>} : memref<128x288xbf16, #tpu.memory_space<vmem>>, vector<128x32xbf16>,
    %c0_307 = arith.constant 0 : index
    %c1_308 = arith.constant 1 : index
    %c1_309 = arith.constant 1 : index
    %c0_310 = arith.constant 0 : index
    %217 = vector.load %arg9[%c0_307, %c1_308, %c1_309, %c0_310] : memref<2x10x10x32xf32, #tpu.memory_space<vmem>>, vector<2x8x8x32xf32>
    %218 = vector.shape_cast %217 : vector<2x8x8x32xf32> to vector<128x32xf32>
    %219 = arith.truncf %218 : vector<128x32xf32> to vector<128x32xbf16>
    %c0_311 = arith.constant 0 : index
    %c128_312 = arith.constant 128 : index
    %220 = vector.load %arg11[%c0_311, %c128_312] : memref<128x288xbf16, #tpu.memory_space<vmem>>, vector<128x32xbf16>
    tpu.vector_store %arg11[%c0_311, %c128_312], %219 {strides = array<i32>} : memref<128x288xbf16, #tpu.memory_space<vmem>>, vector<128x32xbf16>,
    %c0_313 = arith.constant 0 : index
    %c1_314 = arith.constant 1 : index
    %c2_315 = arith.constant 2 : index
    %c0_316 = arith.constant 0 : index
    %221 = vector.load %arg9[%c0_313, %c1_314, %c2_315, %c0_316] : memref<2x10x10x32xf32, #tpu.memory_space<vmem>>, vector<2x8x8x32xf32>
    %222 = vector.shape_cast %221 : vector<2x8x8x32xf32> to vector<128x32xf32>
    %223 = arith.truncf %222 : vector<128x32xf32> to vector<128x32xbf16>
    %c0_317 = arith.constant 0 : index
    %c160_318 = arith.constant 160 : index
    %224 = vector.load %arg11[%c0_317, %c160_318] : memref<128x288xbf16, #tpu.memory_space<vmem>>, vector<128x32xbf16>
    tpu.vector_store %arg11[%c0_317, %c160_318], %223 {strides = array<i32>} : memref<128x288xbf16, #tpu.memory_space<vmem>>, vector<128x32xbf16>,
    %c0_319 = arith.constant 0 : index
    %c2_320 = arith.constant 2 : index
    %c0_321 = arith.constant 0 : index
    %c0_322 = arith.constant 0 : index
    %225 = vector.load %arg9[%c0_319, %c2_320, %c0_321, %c0_322] : memref<2x10x10x32xf32, #tpu.memory_space<vmem>>, vector<2x8x8x32xf32>
    %226 = vector.shape_cast %225 : vector<2x8x8x32xf32> to vector<128x32xf32>
    %227 = arith.truncf %226 : vector<128x32xf32> to vector<128x32xbf16>
    %c0_323 = arith.constant 0 : index
    %c192_324 = arith.constant 192 : index
    %228 = vector.load %arg11[%c0_323, %c192_324] : memref<128x288xbf16, #tpu.memory_space<vmem>>, vector<128x32xbf16>
    tpu.vector_store %arg11[%c0_323, %c192_324], %227 {strides = array<i32>} : memref<128x288xbf16, #tpu.memory_space<vmem>>, vector<128x32xbf16>,
    %c0_325 = arith.constant 0 : index
    %c2_326 = arith.constant 2 : index
    %c1_327 = arith.constant 1 : index
    %c0_328 = arith.constant 0 : index
    %229 = vector.load %arg9[%c0_325, %c2_326, %c1_327, %c0_328] : memref<2x10x10x32xf32, #tpu.memory_space<vmem>>, vector<2x8x8x32xf32>
    %230 = vector.shape_cast %229 : vector<2x8x8x32xf32> to vector<128x32xf32>
    %231 = arith.truncf %230 : vector<128x32xf32> to vector<128x32xbf16>
    %c0_329 = arith.constant 0 : index
    %c224_330 = arith.constant 224 : index
    %232 = vector.load %arg11[%c0_329, %c224_330] : memref<128x288xbf16, #tpu.memory_space<vmem>>, vector<128x32xbf16>
    tpu.vector_store %arg11[%c0_329, %c224_330], %231 {strides = array<i32>} : memref<128x288xbf16, #tpu.memory_space<vmem>>, vector<128x32xbf16>,
    %c0_331 = arith.constant 0 : index
    %c2_332 = arith.constant 2 : index
    %c2_333 = arith.constant 2 : index
    %c0_334 = arith.constant 0 : index
    %233 = vector.load %arg9[%c0_331, %c2_332, %c2_333, %c0_334] : memref<2x10x10x32xf32, #tpu.memory_space<vmem>>, vector<2x8x8x32xf32>
    %234 = vector.shape_cast %233 : vector<2x8x8x32xf32> to vector<128x32xf32>
    %235 = arith.truncf %234 : vector<128x32xf32> to vector<128x32xbf16>
    %c0_335 = arith.constant 0 : index
    %c256_336 = arith.constant 256 : index
    %236 = vector.load %arg11[%c0_335, %c256_336] : memref<128x288xbf16, #tpu.memory_space<vmem>>, vector<128x32xbf16>
    tpu.vector_store %arg11[%c0_335, %c256_336], %235 {strides = array<i32>} : memref<128x288xbf16, #tpu.memory_space<vmem>>, vector<128x32xbf16>,
    %c0_337 = arith.constant 0 : index
    %c0_338 = arith.constant 0 : index
    %237 = vector.load %arg11[%c0_337, %c0_338] : memref<128x288xbf16, #tpu.memory_space<vmem>>, vector<128x288xbf16>
    %cst_339 = arith.constant dense<0.000000e+00> : vector<128x32xf32>
    %238 = tpu.matmul %237, %198, %cst_339 {dimension_numbers = #tpu.dot_dimension_numbers<[1], [0], [0], [1], [0, 0, 1, 1], [], []>} : vector<128x288xbf16>, vector<288x32xbf16>, vector<128x32xf32> -> vector<128x32xf32>
    %239 = vector.broadcast %200 : vector<1x32xf32> to vector<128x32xf32>
    %240 = arith.addf %238, %239 : vector<128x32xf32>
    %241 = arith.addf %240, %146 : vector<128x32xf32>
    %cst_340 = arith.constant 0.000000e+00 : f32
    %242 = vector.broadcast %cst_340 : f32 to vector<128x32xf32>
    %243 = arith.maximumf %241, %242 : vector<128x32xf32>
    %244 = arith.truncf %243 : vector<128x32xf32> to vector<128x32xbf16>
    %c0_341 = arith.constant 0 : index
    %c0_342 = arith.constant 0 : index
    %245 = vector.load %arg5[%c0_341, %c0_342] : memref<32x5xbf16, #tpu.memory_space<vmem>>, vector<32x5xbf16>
    %cst_343 = arith.constant dense<0.000000e+00> : vector<128x5xf32>
    %246 = tpu.matmul %244, %245, %cst_343 {dimension_numbers = #tpu.dot_dimension_numbers<[1], [0], [0], [1], [0, 0, 1, 1], [], []>} : vector<128x32xbf16>, vector<32x5xbf16>, vector<128x5xf32> -> vector<128x5xf32>
    %c0_344 = arith.constant 0 : index
    %c0_345 = arith.constant 0 : index
    %247 = vector.load %arg6[%c0_344, %c0_345] : memref<1x5xf32, #tpu.memory_space<vmem>>, vector<1x5xf32>
    %248 = vector.broadcast %247 : vector<1x5xf32> to vector<128x5xf32>
    %249 = arith.addf %246, %248 : vector<128x5xf32>
    %cst_346 = arith.constant 0.000000e+00 : f32
    %250 = vector.broadcast %cst_346 : f32 to vector<128x5xf32>
    %251 = arith.maximumf %249, %250 : vector<128x5xf32>
    %252 = arith.truncf %251 : vector<128x5xf32> to vector<128x5xbf16>
    %c0_347 = arith.constant 0 : index
    %c0_348 = arith.constant 0 : index
    %253 = vector.load %arg7[%c0_347, %c0_348] : memref<128x5xbf16, #tpu.memory_space<vmem>>, vector<128x5xbf16>
    tpu.vector_store %arg7[%c0_347, %c0_348], %252 {strides = array<i32>} : memref<128x5xbf16, #tpu.memory_space<vmem>>, vector<128x5xbf16>,
    return
  }
}

module attributes {stable_mosaic.version = 11 : i64} {
  func.func @_heads_kernel(%arg0: memref<2x256xbf16, #tpu.memory_space<vmem>>, %arg1: memref<2x64xbf16, #tpu.memory_space<vmem>>, %arg2: memref<256x128xbf16, #tpu.memory_space<vmem>>, %arg3: memref<1x128xf32, #tpu.memory_space<vmem>>, %arg4: memref<64x32xbf16, #tpu.memory_space<vmem>>, %arg5: memref<1x32xf32, #tpu.memory_space<vmem>>, %arg6: memref<32x1xbf16, #tpu.memory_space<vmem>>, %arg7: memref<1x1xf32, #tpu.memory_space<vmem>>, %arg8: memref<2x128xf32, #tpu.memory_space<vmem>>, %arg9: memref<2x1xf32, #tpu.memory_space<vmem>>) attributes {dimension_semantics = [], scalar_prefetch = 0 : i64, scratch_operands = 0 : i64, tpu.core_type = #tpu.core_type<tc>} {
    %c0 = arith.constant 0 : index
    %c0_0 = arith.constant 0 : index
    %0 = vector.load %arg0[%c0, %c0_0] : memref<2x256xbf16, #tpu.memory_space<vmem>>, vector<2x256xbf16>
    %c0_1 = arith.constant 0 : index
    %c0_2 = arith.constant 0 : index
    %1 = vector.load %arg2[%c0_1, %c0_2] : memref<256x128xbf16, #tpu.memory_space<vmem>>, vector<256x128xbf16>
    %cst = arith.constant dense<0.000000e+00> : vector<2x128xf32>
    %2 = tpu.matmul %0, %1, %cst {dimension_numbers = #tpu.dot_dimension_numbers<[1], [0], [0], [1], [0, 0, 1, 1], [], []>} : vector<2x256xbf16>, vector<256x128xbf16>, vector<2x128xf32> -> vector<2x128xf32>
    %c0_3 = arith.constant 0 : index
    %c0_4 = arith.constant 0 : index
    %3 = vector.load %arg3[%c0_3, %c0_4] : memref<1x128xf32, #tpu.memory_space<vmem>>, vector<1x128xf32>
    %4 = vector.broadcast %3 : vector<1x128xf32> to vector<2x128xf32>
    %5 = arith.addf %2, %4 : vector<2x128xf32>
    %c0_5 = arith.constant 0 : index
    %c0_6 = arith.constant 0 : index
    %6 = vector.load %arg8[%c0_5, %c0_6] : memref<2x128xf32, #tpu.memory_space<vmem>>, vector<2x128xf32>
    tpu.vector_store %arg8[%c0_5, %c0_6], %5 {strides = array<i32>} : memref<2x128xf32, #tpu.memory_space<vmem>>, vector<2x128xf32>,
    %c0_7 = arith.constant 0 : index
    %c0_8 = arith.constant 0 : index
    %7 = vector.load %arg1[%c0_7, %c0_8] : memref<2x64xbf16, #tpu.memory_space<vmem>>, vector<2x64xbf16>
    %c0_9 = arith.constant 0 : index
    %c0_10 = arith.constant 0 : index
    %8 = vector.load %arg4[%c0_9, %c0_10] : memref<64x32xbf16, #tpu.memory_space<vmem>>, vector<64x32xbf16>
    %cst_11 = arith.constant dense<0.000000e+00> : vector<2x32xf32>
    %9 = tpu.matmul %7, %8, %cst_11 {dimension_numbers = #tpu.dot_dimension_numbers<[1], [0], [0], [1], [0, 0, 1, 1], [], []>} : vector<2x64xbf16>, vector<64x32xbf16>, vector<2x32xf32> -> vector<2x32xf32>
    %c0_12 = arith.constant 0 : index
    %c0_13 = arith.constant 0 : index
    %10 = vector.load %arg5[%c0_12, %c0_13] : memref<1x32xf32, #tpu.memory_space<vmem>>, vector<1x32xf32>
    %11 = vector.broadcast %10 : vector<1x32xf32> to vector<2x32xf32>
    %12 = arith.addf %9, %11 : vector<2x32xf32>
    %cst_14 = arith.constant 0.000000e+00 : f32
    %13 = vector.broadcast %cst_14 : f32 to vector<2x32xf32>
    %14 = arith.maximumf %12, %13 : vector<2x32xf32>
    %15 = arith.truncf %14 : vector<2x32xf32> to vector<2x32xbf16>
    %c0_15 = arith.constant 0 : index
    %c0_16 = arith.constant 0 : index
    %16 = vector.load %arg6[%c0_15, %c0_16] : memref<32x1xbf16, #tpu.memory_space<vmem>>, vector<32x1xbf16>
    %cst_17 = arith.constant dense<0.000000e+00> : vector<2x1xf32>
    %17 = tpu.matmul %15, %16, %cst_17 {dimension_numbers = #tpu.dot_dimension_numbers<[1], [0], [0], [1], [0, 0, 1, 1], [], []>} : vector<2x32xbf16>, vector<32x1xbf16>, vector<2x1xf32> -> vector<2x1xf32>
    %c0_18 = arith.constant 0 : index
    %c0_19 = arith.constant 0 : index
    %18 = vector.load %arg7[%c0_18, %c0_19] : memref<1x1xf32, #tpu.memory_space<vmem>>, vector<1x1xf32>
    %19 = vector.broadcast %18 : vector<1x1xf32> to vector<2x1xf32>
    %20 = arith.addf %17, %19 : vector<2x1xf32>
    %21 = math.tanh %20 : vector<2x1xf32>
    %c0_20 = arith.constant 0 : index
    %c0_21 = arith.constant 0 : index
    %22 = vector.load %arg9[%c0_20, %c0_21] : memref<2x1xf32, #tpu.memory_space<vmem>>, vector<2x1xf32>
    tpu.vector_store %arg9[%c0_20, %c0_21], %21 {strides = array<i32>} : memref<2x1xf32, #tpu.memory_space<vmem>>, vector<2x1xf32>,
    return
  }
}

</mosaic_0001>

<bundles_post_ra>
// kernel: network_forward.3
= control target key start
LH: loop header
LB: loop body
LE: loop exit
PB: predicated region body
PF: predicated region fallthrough
CT: control target
= control target key end

     0   :  { %v505_v0 = vmov 0.0   ;;  %vm506_vm0 = vmmov 0   ;;  %vm276_vm1 = vcmask 523264   ;;  %v507_v22 = vmov 1966171168   ;;  %s647_s4 = inlined_call_operand.vmem [shape: bf16[64,32], index: 4, kind: input, shape index: {}]   ;;  %s648_s2 = inlined_call_operand.vmem [shape: bf16[256,128], index: 2, kind: input, shape index: {}]   ;;  %s649_s1 = inlined_call_operand.vmem [shape: bf16[2,64], index: 1, kind: input, shape index: {}]   ;;  %s650_s6 = inlined_call_operand.vmem [shape: bf16[32,1], index: 6, kind: input, shape index: {}]   ;;  %s651_s0 = inlined_call_operand.vmem [shape: bf16[2,256], index: 0, kind: input, shape index: {}]   ;;  %s652_s7 = inlined_call_operand.<no memory space> [shape: f32[1,1], index: 7, kind: input, shape index: {}]   ;;  %s653_s5 = inlined_call_operand.vmem [shape: f32[1,32], index: 5, kind: input, shape index: {}]   ;;  %s654_s3 = inlined_call_operand.vmem [shape: f32[1,128], index: 3, kind: input, shape index: {}]   ;;  %s655_s8 = inlined_call_operand.vmem [shape: f32[2,128], index: 8, kind: output, shape index: {0}]   ;;  %s656_s9 = inlined_call_operand.vmem [shape: f32[2,1], index: 9, kind: output, shape index: {1}]  }
   0x1   :  { %458 = vmatprep.subr.bf16.mxu1 %v505_v0  ;;  %v481_v1 = vld [vmem:[%s647_s4] sm:$0xff]   ;;  %466 = vmatprep.mubr.msk.bf16.mxu1 %vm506_vm0, %v505_v0  ;;  %v482_v2 = vld [vmem:[%s647_s4 + $0x8] sm:$0xff]   ;;  %v483_v3 = vld [vmem:[%s647_s4 + $0x10] sm:$0xff]   ;;  %v84_v23 = vunpack.c.l.s4 %v507_v22  ;;  %v86_v24 = vlaneseq  ;;  %v15_v32 = vstv %s652_s7  ;;  %vm345_vm2 = vcmask 261120  }
   0x2   :  { %459 = vmatpush3.bf16.msra.mxu1 %v481_v1  ;;  %v485_v4 = vld [vmem:[%s648_s2 + $0x40] sm:$0xff]   ;;  %v487_v6 = vld [vmem:[%s648_s2 + $0x48] sm:$0xff]   ;;  %v489_v8 = vld [vmem:[%s648_s2 + $0x50] sm:$0xff]   ;;  %16 = vst [vmem:[#allocation2] sm:$0x1] %v15_v32  ;;  %vm390_vm3 = vcmask 1024  }
   0x3   :  { %460 = vmatprep.subr.bf16.mxu1 %v505_v0  ;;  %v486_v5 = vld [vmem:[%s648_s2] sm:$0xff]   ;;  %428 = vmatprep.subr.bf16.mxu0 %v485_v4  ;;  %v488_v7 = vld [vmem:[%s648_s2 + $0x8] sm:$0xff]   ;;  %v484_v9 = vld [vmem:[%s647_s4 + $0x18] sm:$0xff]   ;;  %v85_v25 = vunpack.c.0.s8 %v84_v23  ;;  %v87_v26 = vshrl.u32 %v86_v24, 7 }
   0x4   :  { %429 = vmatpush3.bf16.msra.mxu0 %v486_v5  ;;  %v490_v10 = vld [vmem:[%s648_s2 + $0x10] sm:$0xff]   ;;  %v491_v11 = vld [vmem:[%s648_s2 + $0x58] sm:$0xff]   ;;  %v236_v12 = vld [vmem:[%s649_s1] sm:$0x1] }
   0x5   :  { %430 = vmatprep.subr.bf16.mxu0 %v487_v6  ;;  %v495_v13 = vld [vmem:[%s650_s6] sm:$0xff]   ;;  %v492_v14 = vld [vmem:[%s648_s2 + $0x18] sm:$0xff]   ;;  %v496_v17 = vld [vmem:[%s648_s2 + $0x68] sm:$0xff]   ;;  %v88_v31 = vsub.s32 %v85_v25, %v87_v26 }
   0x6   :  { %461 = vmatpush3.bf16.msra.mxu1 %v482_v2  ;;  %v493_v15 = vld [vmem:[%s648_s2 + $0x60] sm:$0xff]   ;;  %v497_v18 = vld [vmem:[%s648_s2 + $0x28] sm:$0xff]   ;;  %v499_v20 = vld [vmem:[%s648_s2 + $0x70] sm:$0xff]  }
   0x7   :  { %462 = vmatprep.subr.bf16.mxu1 %v505_v0  ;;  %v494_v16 = vld [vmem:[%s648_s2 + $0x20] sm:$0xff]   ;;  %v498_v19 = vld [vmem:[%s650_s6 + $0x8] sm:$0xff]   ;;  %v500_v21 = vld [vmem:[%s648_s2 + $0x30] sm:$0xff]  }
   0x8   :  { %431 = vmatpush3.bf16.msra.mxu0 %v488_v7  ;;  %v501_v27 = vld [vmem:[%s648_s2 + $0x78] sm:$0xff]   ;;  %v401_v28 = vld.sshfl [vmem:[%s651_s0] sm:$0x11 pattern:$0x75316420] }
   0x9   :  { %432 = vmatprep.subr.bf16.mxu0 %v489_v8  ;;  %v502_v29 = vld [vmem:[%s648_s2 + $0x38] sm:$0xff]   ;;  %v82_v30 = vcombine.high %v401_v28, %v401_v28  ;;  %v89_v34 = vrot.slane %v401_v28, %v88_v31  ;;  %v418_v35 = vld [vmem:[%s653_s5] ss:$0 sm:$0xff] }
   0xa   :  { %463 = vmatpush3.bf16.msra.mxu1 %v483_v3  ;;  %v400_v48 = vld [vmem:[%s654_s3] ss:$0 sm:$0xff] }
   0xb   :  { %464 = vmatprep.subr.bf16.mxu1 %v505_v0  ;;  %v96_v33 = vrot.slane %v82_v30, %v88_v31  ;;  %v424_v50 = vld [vmem:[#allocation2] ss:$0 sm:$0xff] }
   0xc   :  { %433 = vmatpush3.bf16.msra.mxu0 %v490_v10 }
   0xd   :  { %434 = vmatprep.subr.bf16.mxu0 %v491_v11  ;;  %227 = vmatprep.mubr.bf16.mxu0 %v96_v33 }
   0xe   :  { %465 = vmatpush3.bf16.msra.mxu1 %v484_v9 }
   0xf   :  { %470 = vmatprep.subr.bf16.mxu1 %v505_v0 }
  0x10   :  { %435 = vmatpush3.bf16.msra.mxu0 %v492_v14 }
  0x11   :  { %467 = vmatmul.mubr.msk.bf16.vlgmr.msra.gmra.mrb[0].mxu1 %vm276_vm1, %v236_v12  ;;  %436 = vmatprep.subr.bf16.mxu0 %v493_v15 }
  0x12   :  { %471 = vmatpush3.bf16.msra.mxu1 %v495_v13  ;;  %474 = vmatprep.mubr.msk.bf16.mxu1 %vm506_vm0, %v505_v0 }
  0x13   :  { %472 = vmatprep.subr.bf16.mxu1 %v505_v0 }
  0x14   :  { %437 = vmatpush3.bf16.msra.mxu0 %v494_v16 }
  0x15   :  { %438 = vmatprep.subr.bf16.mxu0 %v496_v17 }
  0x16   :  { %473 = vmatpush3.bf16.msra.mxu1 %v498_v19 }
  0x18   :  { %439 = vmatpush3.bf16.msra.mxu0 %v497_v18 }
  0x19   :  { %440 = vmatprep.subr.bf16.mxu0 %v499_v20 }
  0x1c   :  { %441 = vmatpush3.bf16.msra.mxu0 %v500_v21 }
  0x1d   :  { %442 = vmatprep.subr.bf16.mxu0 %v501_v27 }
  0x20   :  { %443 = vmatpush3.bf16.msra.mxu0 %v502_v29 }
  0x23   :  { %228 = vmatmul.mubr.bf16.vlgmr.msra.gmra.mrb[0].mxu0 %v89_v34 }
  0xe4   :  { %v314_v36 = vpop.f32.mrb[0].mxu1 }
  0xe5   :  { %v315_v37 = vadd.f32 %v418_v35, %v314_v36  ;;  %v468_v38 = vpop.f32.mrb[1].mxu1 }
  0xe6   :  { %v317_v39 = vpop.f32.mrb[2].mxu1 }
  0xe7   :  { %v320_v40 = vmax.f32 %v315_v37, 0.0  ;;  %v469_v41 = vpop.f32.mrb[3].mxu1 }
  0xe9   :  { %v321_v42 = vpack.c.bf16 %v320_v40, %v320_v40 }
  0xeb   :  { %475 = vmatmul.mubr.msk.bf16.vlgmr.msra.gmra.mrb[4].mxu1 %vm345_vm2, %v321_v42 }
  0xf6   :  { %v444_v43 = vpop.f32.mrb[0].mxu0 }
  0xf7   :  { %v445_v44 = vpop.f32.mrb[1].mxu0 }
  0xf8   :  { %v447_v45 = vpop.f32.mrb[2].mxu0  ;;  %v446_v47 = vadd.f32 %v445_v44, %v444_v43 }
  0xf9   :  { %v448_v46 = vpop.f32.mrb[3].mxu0 }
  0xfa   :  { %v230_v49 = vadd.f32 %v446_v47, %v400_v48 }
  0xfc   :  { %235 = vst [vmem:[%s655_s8] sm:$0x3] %v230_v49 }
 0x1be   :  { %v383_v51 = vpop.f32.mrb[4].mxu1 }
 0x1bf   :  { %v384_v52 = vadd.f32 %v424_v50, %v383_v51  ;;  %v476_v53 = vpop.f32.mrb[5].mxu1 }
 0x1c0   :  { %v386_v54 = vpop.f32.mrb[6].mxu1 }
 0x1c1   :  { %503 = vtanh.f32 %v384_v52  ;;  %v477_v55 = vpop.f32.mrb[7].mxu1 }
 0x1cb   :  { %v504_v56 = vpop.eup %503 }
 0x1cc   :  { %391 = vst.msk [vmem:[%s656_s9] sm:$0x3] %vm390_vm3, %v504_v56 }

// kernel: network_forward.2
= control target key start
LH: loop header
LB: loop body
LE: loop exit
PB: predicated region body
PF: predicated region fallthrough
CT: control target
= control target key end

     0   :  { %vm27_vm0 = vcmask 31744   ;;  %vm29_vm1 = vcmask 25600   ;;  %v5610_v0 = vmov 0.0   ;;  %s5611_s10 = smov 4   ;;  %s5612_s11 = smov 8   ;;  %vm757_vm2 = vcmask 1041408   ;;  %s7505_s0 = inlined_call_operand.vmem [shape: f32[2,8,8,4], index: 0, kind: input, shape index: {}]   ;;  %s7506_s1 = inlined_call_operand.vmem [shape: bf16[36,32], index: 1, kind: input, shape index: {}]   ;;  %s7507_s3 = inlined_call_operand.vmem [shape: bf16[2,2,288,32], index: 3, kind: input, shape index: {}]   ;;  %s7508_s2 = inlined_call_operand.vmem [shape: f32[1,32], index: 2, kind: input, shape index: {}]   ;;  %s7509_s4 = inlined_call_operand.vmem [shape: f32[2,2,1,32], index: 4, kind: input, shape index: {}]   ;;  %s7510_s5 = inlined_call_operand.vmem [shape: bf16[32,5], index: 5, kind: input, shape index: {}]   ;;  %s7511_s6 = inlined_call_operand.vmem [shape: f32[1,5], index: 6, kind: input, shape index: {}]   ;;  %s7512_s7 = inlined_call_operand.vmem [shape: bf16[128,5], index: 7, kind: output, shape index: {}]  }
   0x1   :  { %28 = vst.msk [vmem:[#allocation2] sm:$0xff] %vm27_vm0, %v5610_v0  ;;  %31 = vst.msk [vmem:[#allocation2 + $0x10] sm:$0xff] %vm27_vm0, %v5610_v0  ;;  %v111_v1 = vld [vmem:[%s7505_s0] sm:$0xff]  ;;  %v112_v2 = vld [vmem:[%s7505_s0 + $0x8] sm:$0xff]  ;;  %s5614_s12 = smov 16   ;;  %s5615_s13 = smov 20  }
   0x2   :  { %30 = vst.msk [vmem:[#allocation2 + $0x8] sm:$0x3] %vm29_vm1, %v5610_v0  ;;  %32 = vst.msk [vmem:[#allocation2 + $0x18] sm:$0x3] %vm29_vm1, %v5610_v0  ;;  %v113_v3 = vld [vmem:[%s7505_s0 + $0x10] sm:$0xff]  ;;  %v114_v4 = vld [vmem:[%s7505_s0 + $0x18] sm:$0xff] }
   0x3   :  { %33 = vst.msk [vmem:[#allocation2 + $0x20] sm:$0xff] %vm27_vm0, %v5610_v0  ;;  %35 = vst.msk [vmem:[#allocation2 + $0x30] sm:$0xff] %vm27_vm0, %v5610_v0  ;;  %v115_v5 = vld [vmem:[%s7505_s0 + $0x20] sm:$0xff]  ;;  %v116_v6 = vld [vmem:[%s7505_s0 + $0x28] sm:$0xff]  ;;  %s5616_s18 = smov 24   ;;  %s5617_s21 = smov 28  }
   0x4   :  { %34 = vst.msk [vmem:[#allocation2 + $0x28] sm:$0x3] %vm29_vm1, %v5610_v0  ;;  %36 = vst.msk [vmem:[#allocation2 + $0x38] sm:$0x3] %vm29_vm1, %v5610_v0  ;;  %v117_v7 = vld [vmem:[%s7505_s0 + $0x30] sm:$0xff]  ;;  %v118_v8 = vld [vmem:[%s7505_s0 + $0x38] sm:$0xff] }
   0x5   :  { %37 = vst.msk [vmem:[#allocation2 + $0x40] sm:$0xff] %vm27_vm0, %v5610_v0  ;;  %39 = vst.msk [vmem:[#allocation2 + $0x50] sm:$0xff] %vm27_vm0, %v5610_v0  ;;  %v119_v9 = vld [vmem:[%s7505_s0 + $0x40] sm:$0xff]  ;;  %v120_v10 = vld [vmem:[%s7505_s0 + $0x48] sm:$0xff]  ;;  %s5618_s22 = smov 32   ;;  %vm238_vm3 = vcmask 64544  }
   0x6   :  { %38 = vst.msk [vmem:[#allocation2 + $0x48] sm:$0x3] %vm29_vm1, %v5610_v0  ;;  %40 = vst.msk [vmem:[#allocation2 + $0x58] sm:$0x3] %vm29_vm1, %v5610_v0  ;;  %v121_v11 = vld [vmem:[%s7505_s0 + $0x50] sm:$0xff]  ;;  %v122_v12 = vld [vmem:[%s7505_s0 + $0x58] sm:$0xff] }
   0x7   :  { %41 = vst.msk [vmem:[#allocation2 + $0x60] sm:$0xff] %vm27_vm0, %v5610_v0  ;;  %43 = vst.msk [vmem:[#allocation2 + $0x70] sm:$0xff] %vm27_vm0, %v5610_v0  ;;  %v123_v13 = vld [vmem:[%s7505_s0 + $0x60] sm:$0xff]  ;;  %v124_v14 = vld [vmem:[%s7505_s0 + $0x68] sm:$0xff]  ;;  %vm303_vm4 = vcmask 97344   ;;  %vm368_vm5 = vcmask 130144  }
   0x8   :  { %42 = vst.msk [vmem:[#allocation2 + $0x68] sm:$0x3] %vm29_vm1, %v5610_v0  ;;  %44 = vst.msk [vmem:[#allocation2 + $0x78] sm:$0x3] %vm29_vm1, %v5610_v0  ;;  %v125_v15 = vld [vmem:[%s7505_s0 + $0x70] sm:$0xff]  ;;  %v126_v16 = vld [vmem:[%s7505_s0 + $0x78] sm:$0xff] }
   0x9   :  { %45 = vst.msk [vmem:[#allocation2 + $0x80] sm:$0xff] %vm27_vm0, %v5610_v0  ;;  %47 = vst.msk [vmem:[#allocation2 + $0x90] sm:$0xff] %vm27_vm0, %v5610_v0  ;;  %v182_v17 = vld [vmem:[#allocation2 + $0x1] sm:$0xff]  ;;  %s5613_s0 = smov 12   ;;  %vm69_vm6 = vcmask 261120   ;;  %vm71_vm7 = vcmask 254976  }
   0xa   :  { %46 = vst.msk [vmem:[#allocation2 + $0x88] sm:$0x3] %vm29_vm1, %v5610_v0  ;;  %48 = vst.msk [vmem:[#allocation2 + $0x98] sm:$0x3] %vm29_vm1, %v5610_v0  ;;  %v247_v18 = vld [vmem:[#allocation2 + $0x2] sm:$0xff]  ;;  %vm433_vm8 = vcmask 162944  }
   0xb   :  { %49 = vst.msk [vmem:[#allocation2 + $0xa0] sm:$0xff] %vm27_vm0, %v5610_v0  ;;  %51 = vst.msk [vmem:[#allocation2 + $0xb0] sm:$0xff] %vm27_vm0, %v5610_v0  ;;  %v150_v56 = vld [vmem:[#allocation2] sm:$0xff]  ;;  %v5532_v61 = vld [vmem:[%s7506_s1 + $0x8] sm:$0xff]   ;;  %vm498_vm9 = vcmask 195744   ;;  %vm564_vm10 = vcmask 228544  }
   0xc   :  { %50 = vst.msk [vmem:[#allocation2 + $0xa8] sm:$0x3] %vm29_vm1, %v5610_v0  ;;  %52 = vst.msk [vmem:[#allocation2 + $0xb8] sm:$0x3] %vm29_vm1, %v5610_v0  ;;  %v5531_v60 = vld [vmem:[%s7506_s1] sm:$0xff]   ;;  %vm629_vm11 = vcmask 261344  }
   0xd   :  { %53 = vst.msk [vmem:[#allocation2 + $0xc0] sm:$0xff] %vm27_vm0, %v5610_v0  ;;  %55 = vst.msk [vmem:[#allocation2 + $0xd0] sm:$0xff] %vm27_vm0, %v5610_v0  ;;  %5381 = vmatprep.subr.bf16.mxu0 %v5531_v60  ;;  %v5533_v63 = vld [vmem:[%s7506_s1 + $0x10] ss:$0 sps:$4 sm:$0x33]   ;;  %vm694_vm12 = vcmask 294144  }
   0xe   :  { %54 = vst.msk [vmem:[#allocation2 + $0xc8] sm:$0x3] %vm29_vm1, %v5610_v0  ;;  %56 = vst.msk [vmem:[#allocation2 + $0xd8] sm:$0x3] %vm29_vm1, %v5610_v0  ;;  %5382 = vmatpush3.bf16.msra.mxu0 %v5531_v60  ;;  %vm732_vm13 = vcmask 293888   ;;  %s5619_s29 = smov 64  }
   0xf   :  { %57 = vst.msk [vmem:[#allocation2 + $0xe0] sm:$0xff] %vm27_vm0, %v5610_v0  ;;  %59 = vst.msk [vmem:[#allocation2 + $0xf0] sm:$0xff] %vm27_vm0, %v5610_v0  ;;  %5383 = vmatprep.subr.bf16.mxu0 %v5532_v61  ;;  %s5620_s9 = smov 96   ;;  %vm1016_vm14 = vcmask 523520   ;;  %vm1081_vm15 = vcmask 785920  }
  0x10   :  { %58 = vst.msk [vmem:[#allocation2 + $0xe8] sm:$0x3] %vm29_vm1, %v5610_v0  ;;  %60 = vst.msk [vmem:[#allocation2 + $0xf8] sm:$0x3] %vm29_vm1, %v5610_v0 }
  0x11   :  { %61 = vst.msk [vmem:[#allocation2 + $0x100] sm:$0xff] %vm27_vm0, %v5610_v0  ;;  %63 = vst.msk [vmem:[#allocation2 + $0x110] sm:$0xff] %vm27_vm0, %v5610_v0 }
  0x12   :  { %62 = vst.msk [vmem:[#allocation2 + $0x108] sm:$0x3] %vm29_vm1, %v5610_v0  ;;  %64 = vst.msk [vmem:[#allocation2 + $0x118] sm:$0x3] %vm29_vm1, %v5610_v0  ;;  %5384 = vmatpush3.bf16.msra.mxu0 %v5532_v61 }
  0x13   :  { %65 = vst.msk [vmem:[#allocation2 + $0x120] sm:$0xff] %vm27_vm0, %v5610_v0  ;;  %67 = vst.msk [vmem:[#allocation2 + $0x130] sm:$0xff] %vm27_vm0, %v5610_v0  ;;  %5519 = vmatprep.subr.msk.bf16.mxu0 %vm757_vm2, %v5533_v63 }
  0x14   :  { %66 = vst.msk [vmem:[#allocation2 + $0x128] sm:$0x3] %vm29_vm1, %v5610_v0  ;;  %68 = vst.msk [vmem:[#allocation2 + $0x138] sm:$0x3] %vm29_vm1, %v5610_v0  ;;  %vm4769_vm1 = vcmask 35840  }
  0x15   :  { %128 = vst.msk [vmem:[#allocation2 + $0x11] sm:$0xff] %vm27_vm0, %v111_v1  ;;  %129 = vst.msk [vmem:[#allocation2 + $0x21] sm:$0xff] %vm27_vm0, %v112_v2 }
  0x16   :  { %130 = vst.msk [vmem:[#allocation2 + $0x31] sm:$0xff] %vm27_vm0, %v113_v3  ;;  %131 = vst.msk [vmem:[#allocation2 + $0x41] sm:$0xff] %vm27_vm0, %v114_v4  ;;  %v759_v3 = vsel %vm757_vm2, %v5533_v63, 0 }
  0x17   :  { %132 = vst.msk [vmem:[#allocation2 + $0x51] sm:$0xff] %vm27_vm0, %v115_v5  ;;  %133 = vst.msk [vmem:[#allocation2 + $0x61] sm:$0xff] %vm27_vm0, %v116_v6  ;;  %5386 = vmatpush3.bf16.msra.mxu0 %v759_v3 }
  0x18   :  { %134 = vst.msk [vmem:[#allocation2 + $0x71] sm:$0xff] %vm27_vm0, %v117_v7  ;;  %135 = vst.msk [vmem:[#allocation2 + $0x81] sm:$0xff] %vm27_vm0, %v118_v8 }
  0x19   :  { %136 = vst.msk [vmem:[#allocation2 + $0xb1] sm:$0xff] %vm27_vm0, %v119_v9  ;;  %137 = vst.msk [vmem:[#allocation2 + $0xc1] sm:$0xff] %vm27_vm0, %v120_v10 }
  0x1a   :  { %138 = vst.msk [vmem:[#allocation2 + $0xd1] sm:$0xff] %vm27_vm0, %v121_v11  ;;  %139 = vst.msk [vmem:[#allocation2 + $0xe1] sm:$0xff] %vm27_vm0, %v122_v12 }
  0x1b   :  { %140 = vst.msk [vmem:[#allocation2 + $0xf1] sm:$0xff] %vm27_vm0, %v123_v13  ;;  %141 = vst.msk [vmem:[#allocation2 + $0x101] sm:$0xff] %vm27_vm0, %v124_v14 }
  0x1c   :  { %142 = vst.msk [vmem:[#allocation2 + $0x111] sm:$0xff] %vm27_vm0, %v125_v15  ;;  %143 = vst.msk [vmem:[#allocation2 + $0x121] sm:$0xff] %vm27_vm0, %v126_v16  ;;  %v183_v19 = vld [vmem:[#allocation2 + $0x11] sm:$0xff]  ;;  %v184_v21 = vld [vmem:[#allocation2 + $0x21] sm:$0xff] }
  0x1d   :  { %v248_v20 = vld [vmem:[#allocation2 + $0x12] sm:$0xff]  ;;  %v198_v22 = vpack.c.bf16 %v183_v19, %v182_v17  ;;  %v249_v25 = vld [vmem:[#allocation2 + $0x22] sm:$0xff]  ;;  %v393_v42 = vpack.c.bf16 %v184_v21, %v183_v19  ;;  %77 = vst.msk [vmem:[#allocation3 + $0x30] sm:$0xff] %vm69_vm6, %v5610_v0  ;;  %70 = vst.msk [vmem:[#allocation3] sm:$0xff] %vm69_vm6, %v5610_v0 }
  0x1e   :  { %v263_v23 = vpack.c.bf16 %v248_v20, %v247_v18  ;;  %v185_v24 = vld [vmem:[#allocation2 + $0x31] sm:$0xff]  ;;  %v313_v27 = vld [vmem:[#allocation2 + $0x20] sm:$0xff]  ;;  %v458_v51 = vpack.c.bf16 %v249_v25, %v248_v20  ;;  %78 = vst.msk [vmem:[#allocation3 + $0x38] sm:$0x3] %vm71_vm7, %v5610_v0  ;;  %72 = vst.msk [vmem:[#allocation3 + $0x8] sm:$0x3] %vm71_vm7, %v5610_v0 }
  0x1f   :  { %v250_v26 = vld [vmem:[#allocation2 + $0x32] sm:$0xff]  ;;  %214 = vrot.lane.b32.xlu0 %v198_v22, %s5611_s10  ;;  %v5807_v29 = vpack.c.bf16 %v185_v24, %v184_v21  ;;  %v315_v33 = vld [vmem:[#allocation2 + $0x40] sm:$0xff]  ;;  %73 = vst.msk [vmem:[#allocation3 + $0x10] sm:$0xff] %vm69_vm6, %v5610_v0  ;;  %75 = vst.msk [vmem:[#allocation3 + $0x20] sm:$0xff] %vm69_vm6, %v5610_v0 }
  0x20   :  { %v314_v28 = vld [vmem:[#allocation2 + $0x30] sm:$0xff]  ;;  %279 = vrot.lane.b32.xlu1 %v263_v23, %s5612_s11  ;;  %v5809_v30 = vpack.c.bf16 %v250_v26, %v249_v25  ;;  %v5815_v36 = vld [vmem:[#allocation2 + $0x60] sm:$0xff]  ;;  %74 = vst.msk [vmem:[#allocation3 + $0x18] sm:$0x3] %vm71_vm7, %v5610_v0  ;;  %76 = vst.msk [vmem:[#allocation3 + $0x28] sm:$0x3] %vm71_vm7, %v5610_v0 }
  0x21   :  { %v524_v31 = vpack.c.bf16 %v314_v28, %v313_v27  ;;  %v312_v32 = vld [vmem:[#allocation2 + $0x10] sm:$0xff]  ;;  %v329_v39 = vpack.c.bf16 %v315_v33, %v314_v28  ;;  %v380_v41 = vld [vmem:[#allocation2 + $0x41] sm:$0xff]  ;;  %79 = vst.msk [vmem:[#allocation3 + $0x40] sm:$0xff] %vm69_vm6, %v5610_v0  ;;  %81 = vst.msk [vmem:[#allocation3 + $0x50] sm:$0xff] %vm69_vm6, %v5610_v0 }
  0x22   :  { %v5811_v34 = vld [vmem:[#allocation2 + $0x50] sm:$0xff]  ;;  %v328_v38 = vpack.c.bf16 %v313_v27, %v312_v32  ;;  %v394_v43 = vpack.c.bf16 %v380_v41, %v185_v24  ;;  %v445_v44 = vld [vmem:[#allocation2 + $0x42] sm:$0xff]  ;;  %v166_v58 = vpack.c.bf16 %v312_v32, %v150_v56  ;;  %80 = vst.msk [vmem:[#allocation3 + $0x48] sm:$0x3] %vm71_vm7, %v5610_v0  ;;  %82 = vst.msk [vmem:[#allocation3 + $0x58] sm:$0x3] %vm71_vm7, %v5610_v0 }
  0x23   :  { %v525_v35 = vpack.c.bf16 %v5811_v34, %v315_v33  ;;  %175 = vst.msk [vmem:[#allocation4 + $0x8] sm:$0xff] %vm27_vm0, %v524_v31  ;;  %v5817_v37 = vld [vmem:[#allocation2 + $0x70] sm:$0xff]  ;;  %216 = vrot.lane.b32.xlu0 %v5807_v29, %s5611_s10  ;;  %v5832_v45 = vld [vmem:[#allocation2 + $0xc0] sm:$0xff]  ;;  %v459_v52 = vpack.c.bf16 %v445_v44, %v250_v26  ;;  %v330_v11 = vpack.c.bf16 %v5815_v36, %v5811_v34 }
  0x24   :  { %281 = vrot.lane.b32.xlu1 %v5809_v30, %s5612_s11  ;;  %v5825_v40 = vpack.c.bf16 %v5817_v37, %v5815_v36  ;;  %v5834_v46 = vld [vmem:[#allocation2 + $0xd0] sm:$0xff]  ;;  %v5836_v47 = vld [vmem:[#allocation2 + $0xe0] sm:$0xff]  ;;  %174 = vst.msk [vmem:[#allocation4] sm:$0xff] %vm27_vm0, %v166_v58 }
  0x25   :  { %176 = vst.msk [vmem:[#allocation4 + $0x10] sm:$0xff] %vm27_vm0, %v525_v35  ;;  %v5840_v48 = vpack.c.bf16 %v5834_v46, %v5832_v45  ;;  %v5842_v49 = vld [vmem:[#allocation2 + $0xf0] sm:$0xff]  ;;  %v5850_v53 = vld [vmem:[#allocation2 + $0x100] sm:$0xff] }
  0x26   :  { %177 = vst.msk [vmem:[#allocation4 + $0x18] sm:$0xff] %vm27_vm0, %v5825_v40  ;;  %v5846_v50 = vpack.c.bf16 %v5842_v49, %v5836_v47  ;;  %v334_v54 = vpack.c.bf16 %v5850_v53, %v5842_v49  ;;  %v5856_v55 = vld [vmem:[#allocation2 + $0x110] sm:$0xff]  ;;  %v188_v4 = vld [vmem:[#allocation2 + $0x61] sm:$0xff] }
  0x27   :  { %344 = vrot.lane.b32.xlu0 %v328_v38, %s5613_s0  ;;  %179 = vst.msk [vmem:[#allocation4 + $0x28] sm:$0xff] %vm27_vm0, %v5840_v48  ;;  %v5862_v57 = vpack.c.bf16 %v5856_v55, %v5850_v53  ;;  %v576_v59 = vld [vmem:[#allocation2 + $0x51] sm:$0xff]  ;;  %v253_v7 = vld [vmem:[#allocation2 + $0x62] sm:$0xff] }
  0x28   :  { %346 = vrot.lane.b32.xlu1 %v329_v39, %s5613_s0  ;;  %180 = vst.msk [vmem:[#allocation4 + $0x30] sm:$0xff] %vm27_vm0, %v5846_v50  ;;  %v590_v62 = vpack.c.bf16 %v576_v59, %v380_v41  ;;  %v641_v1 = vld [vmem:[#allocation2 + $0x52] sm:$0xff]  ;;  %v319_v10 = vld [vmem:[#allocation2 + $0x80] sm:$0xff]  ;;  %v395_v14 = vpack.c.bf16 %v188_v4, %v576_v59  ;;  %v333_v41 = vpack.c.bf16 %v5836_v47, %v5834_v46 }
  0x29   :  { %181 = vst.msk [vmem:[#allocation4 + $0x38] sm:$0xff] %vm27_vm0, %v5862_v57  ;;  %v655_v2 = vpack.c.bf16 %v641_v1, %v445_v44  ;;  %v189_v5 = vld [vmem:[#allocation2 + $0x71] sm:$0xff]  ;;  %v331_v12 = vpack.c.bf16 %v319_v10, %v5817_v37  ;;  %v384_v13 = vld [vmem:[#allocation2 + $0x81] sm:$0xff]  ;;  %v460_v17 = vpack.c.bf16 %v253_v7, %v641_v1 }
  0x2a   :  { %v201_v6 = vpack.c.bf16 %v189_v5, %v188_v4  ;;  %v254_v8 = vld [vmem:[#allocation2 + $0x72] sm:$0xff]  ;;  %v396_v15 = vpack.c.bf16 %v384_v13, %v189_v5  ;;  %v449_v16 = vld [vmem:[#allocation2 + $0x82] sm:$0xff]  ;;  %83 = vst.msk [vmem:[#allocation3 + $0x60] sm:$0xff] %vm69_vm6, %v5610_v0  ;;  %85 = vst.msk [vmem:[#allocation3 + $0x70] sm:$0xff] %vm69_vm6, %v5610_v0 }
  0x2b   :  { %409 = vrot.lane.b32.xlu0 %v393_v42, %s5614_s12  ;;  %v266_v9 = vpack.c.bf16 %v254_v8, %v253_v7  ;;  %v461_v18 = vpack.c.bf16 %v449_v16, %v254_v8  ;;  %v515_v19 = vld [vmem:[#allocation2 + $0x90] sm:$0xff]  ;;  %v158_v21 = vld [vmem:[#allocation2 + $0xa0] sm:$0xff]  ;;  %84 = vst.msk [vmem:[#allocation3 + $0x68] sm:$0x3] %vm71_vm7, %v5610_v0  ;;  %86 = vst.msk [vmem:[#allocation3 + $0x78] sm:$0x3] %vm71_vm7, %v5610_v0 }
  0x2c   :  { %411 = vrot.lane.b32.xlu1 %v394_v43, %s5614_s12  ;;  %v320_v20 = vld [vmem:[#allocation2 + $0xb0] sm:$0xff]  ;;  %v527_v22 = vpack.c.bf16 %v515_v19, %v319_v10  ;;  %v190_v28 = vld [vmem:[#allocation2 + $0xa1] sm:$0xff]  ;;  %87 = vst.msk [vmem:[#allocation3 + $0x80] sm:$0xff] %vm69_vm6, %v5610_v0  ;;  %89 = vst.msk [vmem:[#allocation3 + $0x90] sm:$0xff] %vm69_vm6, %v5610_v0 }
  0x2d   :  { %v170_v23 = vpack.c.bf16 %v320_v20, %v158_v21  ;;  %v580_v24 = vld [vmem:[#allocation2 + $0x91] sm:$0xff]  ;;  %v255_v34 = vld [vmem:[#allocation2 + $0xa2] sm:$0xff]  ;;  %88 = vst.msk [vmem:[#allocation3 + $0x88] sm:$0x3] %vm71_vm7, %v5610_v0  ;;  %90 = vst.msk [vmem:[#allocation3 + $0x98] sm:$0x3] %vm71_vm7, %v5610_v0 }
  0x2e   :  { %v592_v25 = vpack.c.bf16 %v580_v24, %v384_v13  ;;  %v645_v26 = vld [vmem:[#allocation2 + $0x92] sm:$0xff]  ;;  %v257_v36 = vld [vmem:[#allocation2 + $0xc2] sm:$0xff]  ;;  %91 = vst.msk [vmem:[#allocation3 + $0xa0] sm:$0xff] %vm69_vm6, %v5610_v0  ;;  %93 = vst.msk [vmem:[#allocation3 + $0xb0] sm:$0xff] %vm69_vm6, %v5610_v0 }
  0x2f   :  { %474 = vrot.lane.b32.xlu0 %v458_v51, %s5615_s13  ;;  %178 = vst.msk [vmem:[#allocation4 + $0x20] sm:$0xff] %vm27_vm0, %v170_v23  ;;  %v657_v27 = vpack.c.bf16 %v645_v26, %v449_v16  ;;  %v258_v37 = vld [vmem:[#allocation2 + $0xd2] sm:$0xff]  ;;  %v388_v42 = vld [vmem:[#allocation2 + $0xe1] sm:$0xff]  ;;  %vm1146_vm0 = vcmask 1048320  }
  0x30   :  { %476 = vrot.lane.b32.xlu1 %v459_v52, %s5615_s13  ;;  %v268_v39 = vpack.c.bf16 %v258_v37, %v257_v36  ;;  %v453_v51 = vld [vmem:[#allocation2 + $0xe2] sm:$0xff]  ;;  %v649_v47 = vld [vmem:[#allocation2 + $0xf2] sm:$0xff]  ;;  %92 = vst.msk [vmem:[#allocation3 + $0xa8] sm:$0x3] %vm71_vm7, %v5610_v0  ;;  %94 = vst.msk [vmem:[#allocation3 + $0xb8] sm:$0x3] %vm71_vm7, %v5610_v0 }
  0x31   :  { %v463_v56 = vpack.c.bf16 %v453_v51, %v258_v37  ;;  %v659_v58 = vpack.c.bf16 %v649_v47, %v453_v51  ;;  %v196_v59 = vld [vmem:[#allocation2 + $0x101] sm:$0xff]  ;;  %v197_v60 = vld [vmem:[#allocation2 + $0x111] sm:$0xff]  ;;  %95 = vst.msk [vmem:[#allocation3 + $0xc0] sm:$0xff] %vm69_vm6, %v5610_v0  ;;  %97 = vst.msk [vmem:[#allocation3 + $0xd0] sm:$0xff] %vm69_vm6, %v5610_v0 }
  0x32   :  { %v205_v61 = vpack.c.bf16 %v197_v60, %v196_v59  ;;  %v262_v63 = vld [vmem:[#allocation2 + $0x112] sm:$0xff]  ;;  %v5941_v5 = vld [vmem:[#allocation2 + $0x122] sm:$0xff]  ;;  %96 = vst.msk [vmem:[#allocation3 + $0xc8] sm:$0x3] %vm71_vm7, %v5610_v0  ;;  %98 = vst.msk [vmem:[#allocation3 + $0xd8] sm:$0x3] %vm71_vm7, %v5610_v0 }
  0x33   :  { %540 = vrot.lane.b32.xlu0 %v524_v31, %s5616_s18  ;;  %v193_v31 = vld [vmem:[#allocation2 + $0xd1] sm:$0xff]  ;;  %v465_v7 = vpack.c.bf16 %v5941_v5, %v262_v63  ;;  %99 = vst.msk [vmem:[#allocation3 + $0xe0] sm:$0xff] %vm69_vm6, %v5610_v0  ;;  %101 = vst.msk [vmem:[#allocation3 + $0xf0] sm:$0xff] %vm69_vm6, %v5610_v0 }
  0x34   :  { %542 = vrot.lane.b32.xlu1 %v525_v35, %s5616_s18  ;;  %v256_v35 = vld [vmem:[#allocation2 + $0xb2] sm:$0xff]  ;;  %v398_v44 = vpack.c.bf16 %v388_v42, %v193_v31  ;;  %100 = vst.msk [vmem:[#allocation3 + $0xe8] sm:$0x3] %vm71_vm7, %v5610_v0  ;;  %102 = vst.msk [vmem:[#allocation3 + $0xf8] sm:$0x3] %vm71_vm7, %v5610_v0 }
  0x35   :  { %v267_v38 = vpack.c.bf16 %v256_v35, %v255_v34  ;;  %v462_v52 = vpack.c.bf16 %v257_v36, %v256_v35  ;;  %v588_v53 = vld [vmem:[#allocation2 + $0x131] sm:$0xff]  ;;  %103 = vst.msk [vmem:[#allocation3 + $0x100] sm:$0xff] %vm69_vm6, %v5610_v0  ;;  %105 = vst.msk [vmem:[#allocation3 + $0x110] sm:$0xff] %vm69_vm6, %v5610_v0 }
  0x36   :  { %v653_v10 = vld [vmem:[#allocation2 + $0x132] sm:$0xff]  ;;  %104 = vst.msk [vmem:[#allocation3 + $0x108] sm:$0x3] %vm71_vm7, %v5610_v0  ;;  %106 = vst.msk [vmem:[#allocation3 + $0x118] sm:$0x3] %vm71_vm7, %v5610_v0 }
  0x37   :  { %605 = vrot.lane.b32.xlu0 %v5807_v29, %s5617_s21  ;;  %v191_v29 = vld [vmem:[#allocation2 + $0xb1] sm:$0xff]  ;;  %v661_v13 = vpack.c.bf16 %v653_v10, %v5941_v5  ;;  %107 = vst.msk [vmem:[#allocation3 + $0x120] sm:$0xff] %vm69_vm6, %v5610_v0  ;;  %109 = vst.msk [vmem:[#allocation3 + $0x130] sm:$0xff] %vm69_vm6, %v5610_v0 }
  0x38   :  { %607 = vrot.lane.b32.xlu1 %v590_v62, %s5617_s21  ;;  %v202_v32 = vpack.c.bf16 %v191_v29, %v190_v28  ;;  %108 = vst.msk [vmem:[#allocation3 + $0x128] sm:$0x3] %vm71_vm7, %v5610_v0  ;;  %110 = vst.msk [vmem:[#allocation3 + $0x138] sm:$0x3] %vm71_vm7, %v5610_v0 }
  0x3b   :  { %670 = vrot.lane.b32.xlu0 %v5809_v30, %s5618_s22  ;;  %v192_v30 = vld [vmem:[#allocation2 + $0xc1] sm:$0xff] }
  0x3c   :  { %672 = vrot.lane.b32.xlu1 %v655_v2, %s5618_s22  ;;  %v203_v33 = vpack.c.bf16 %v193_v31, %v192_v30  ;;  %v397_v43 = vpack.c.bf16 %v192_v30, %v191_v29 }
  0x3f   :  { %218 = vrot.lane.b32.xlu0 %v590_v62, %s5611_s10  ;;  %v261_v62 = vld [vmem:[#allocation2 + $0x102] sm:$0xff] }
  0x40   :  { %220 = vrot.lane.b32.xlu1 %v201_v6, %s5611_s10 }
  0x43   :  { %283 = vrot.lane.b32.xlu0 %v655_v2, %s5612_s11  ;;  %v392_v2 = vld [vmem:[#allocation2 + $0x121] sm:$0xff] }
  0x44   :  { %285 = vrot.lane.b32.xlu1 %v266_v9, %s5612_s11  ;;  %v400_v4 = vpack.c.bf16 %v392_v2, %v197_v60 }
  0x47   :  { %348 = vrot.lane.b32.xlu0 %v330_v11, %s5613_s0 }
  0x48   :  { %350 = vrot.lane.b32.xlu1 %v331_v12, %s5613_s0 }
  0x4b   :  { %413 = vrot.lane.b32.xlu0 %v395_v14, %s5614_s12 }
  0x4c   :  { %415 = vrot.lane.b32.xlu1 %v396_v15, %s5614_s12 }
  0x4f   :  { %478 = vrot.lane.b32.xlu0 %v460_v17, %s5615_s13 }
  0x50   :  { %480 = vrot.lane.b32.xlu1 %v461_v18, %s5615_s13 }
  0x53   :  { %544 = vrot.lane.b32.xlu0 %v5825_v40, %s5616_s18  ;;  %v332_v40 = vpack.c.bf16 %v5832_v45, %v320_v20  ;;  %v584_v45 = vld [vmem:[#allocation2 + $0xf1] sm:$0xff] }
  0x54   :  { %546 = vrot.lane.b32.xlu1 %v527_v22, %s5616_s18  ;;  %v594_v46 = vpack.c.bf16 %v584_v45, %v388_v42  ;;  %v399_v3 = vpack.c.bf16 %v196_v59, %v584_v45 }
  0x57   :  { %609 = vrot.lane.b32.xlu0 %v201_v6, %s5617_s21  ;;  %v464_v6 = vpack.c.bf16 %v261_v62, %v649_v47 }
  0x58   :  { %611 = vrot.lane.b32.xlu1 %v592_v25, %s5617_s21 }
  0x5b   :  { %674 = vrot.lane.b32.xlu0 %v266_v9, %s5618_s22  ;;  %v596_v9 = vpack.c.bf16 %v588_v53, %v392_v2 }
  0x5c   :  { %676 = vrot.lane.b32.xlu1 %v657_v27, %s5618_s22 }
  0x5f   :  { %222 = vrot.lane.b32.xlu0 %v202_v32, %s5611_s10 }
  0x60   :  { %224 = vrot.lane.b32.xlu1 %v203_v33, %s5611_s10 }
  0x63   :  { %287 = vrot.lane.b32.xlu0 %v267_v38, %s5612_s11 }
  0x64   :  { %289 = vrot.lane.b32.xlu1 %v268_v39, %s5612_s11 }
  0x67   :  { %352 = vrot.lane.b32.xlu0 %v332_v40, %s5613_s0 }
  0x68   :  { %354 = vrot.lane.b32.xlu1 %v333_v41, %s5613_s0 }
  0x6b   :  { %417 = vrot.lane.b32.xlu0 %v397_v43, %s5614_s12 }
  0x6c   :  { %419 = vrot.lane.b32.xlu1 %v398_v44, %s5614_s12 }
  0x6f   :  { %482 = vrot.lane.b32.xlu0 %v462_v52, %s5615_s13 }
  0x70   :  { %484 = vrot.lane.b32.xlu1 %v463_v56, %s5615_s13 }
  0x73   :  { %548 = vrot.lane.b32.xlu0 %v5840_v48, %s5616_s18  ;;  %v5930_v48 = vpack.c.bf16 %v262_v63, %v261_v62 }
  0x74   :  { %550 = vrot.lane.b32.xlu1 %v5846_v50, %s5616_s18  ;;  %v327_v50 = vld [vmem:[#allocation2 + $0x120] sm:$0xff] }
  0x75   :  { %v335_v1 = vpack.c.bf16 %v327_v50, %v5856_v55  ;;  %v523_v55 = vld [vmem:[#allocation2 + $0x130] sm:$0xff] }
  0x76   :  { %v531_v49 = vpack.c.bf16 %v523_v55, %v327_v50 }
  0x77   :  { %613 = vrot.lane.b32.xlu0 %v203_v33, %s5617_s21 }
  0x78   :  { %615 = vrot.lane.b32.xlu1 %v594_v46, %s5617_s21 }
  0x7b   :  { %678 = vrot.lane.b32.xlu0 %v268_v39, %s5618_s22 }
  0x7c   :  { %680 = vrot.lane.b32.xlu1 %v659_v58, %s5618_s22 }
  0x7f   :  { %226 = vrot.lane.b32.xlu0 %v594_v46, %s5611_s10 }
  0x80   :  { %228 = vrot.lane.b32.xlu1 %v205_v61, %s5611_s10 }
  0x83   :  { %291 = vrot.lane.b32.xlu0 %v659_v58, %s5612_s11 }
  0x84   :  { %293 = vrot.lane.b32.xlu1 %v5930_v48, %s5612_s11 }
  0x87   :  { %356 = vrot.lane.b32.xlu0 %v334_v54, %s5613_s0 }
  0x88   :  { %358 = vrot.lane.b32.xlu1 %v335_v1, %s5613_s0 }
  0x8b   :  { %421 = vrot.lane.b32.xlu0 %v399_v3, %s5614_s12 }
  0x8c   :  { %423 = vrot.lane.b32.xlu1 %v400_v4, %s5614_s12 }
  0x8f   :  { %486 = vrot.lane.b32.xlu0 %v464_v6, %s5615_s13 }
  0x90   :  { %488 = vrot.lane.b32.xlu1 %v465_v7, %s5615_s13 }
  0x91   :  { %v215_v54 = vpop.permute.xlu0 %214 }
  0x92   :  { %v280_v8 = vpop.permute.xlu1 %279  ;;  %239 = vst.msk [vmem:[#allocation4] sm:$0xff] %vm238_vm3, %v215_v54 }
  0x93   :  { %304 = vst.msk [vmem:[#allocation4] sm:$0xff] %vm303_vm4, %v280_v8  ;;  %552 = vrot.lane.b32.xlu0 %v5862_v57, %s5616_s18 }
  0x94   :  { %554 = vrot.lane.b32.xlu1 %v531_v49, %s5616_s18 }
  0x95   :  { %v217_v11 = vpop.permute.xlu0 %216 }
  0x96   :  { %v282_v12 = vpop.permute.xlu1 %281  ;;  %240 = vst.msk [vmem:[#allocation4 + $0x8] sm:$0xff] %vm238_vm3, %v217_v11 }
  0x97   :  { %305 = vst.msk [vmem:[#allocation4 + $0x8] sm:$0xff] %vm303_vm4, %v282_v12  ;;  %617 = vrot.lane.b32.xlu0 %v205_v61, %s5617_s21 }
  0x98   :  { %619 = vrot.lane.b32.xlu1 %v596_v9, %s5617_s21 }
  0x99   :  { %v345_v57 = vpop.permute.xlu0 %344 }
  0x9a   :  { %v347_v14 = vpop.permute.xlu1 %346  ;;  %369 = vst.msk [vmem:[#allocation4] sm:$0xff] %vm368_vm5, %v345_v57 }
  0x9b   :  { %370 = vst.msk [vmem:[#allocation4 + $0x8] sm:$0xff] %vm368_vm5, %v347_v14  ;;  %682 = vrot.lane.b32.xlu0 %v5930_v48, %s5618_s22 }
  0x9c   :  { %684 = vrot.lane.b32.xlu1 %v661_v13, %s5618_s22 }
  0x9d   :  { %v410_v15 = vpop.permute.xlu0 %409 }
  0x9e   :  { %v412_v16 = vpop.permute.xlu1 %411  ;;  %434 = vst.msk [vmem:[#allocation4] sm:$0xff] %vm433_vm8, %v410_v15 }
  0x9f   :  { %435 = vst.msk [vmem:[#allocation4 + $0x8] sm:$0xff] %vm433_vm8, %v412_v16 }
  0xa1   :  { %v475_v0 = vpop.permute.xlu0 %474 }
  0xa2   :  { %v477_v17 = vpop.permute.xlu1 %476  ;;  %499 = vst.msk [vmem:[#allocation4] sm:$0xff] %vm498_vm9, %v475_v0  ;;  %v5534_v0 = vld [vmem:[%s7507_s3 + $0x40] sm:$0xff]  }
  0xa3   :  { %500 = vst.msk [vmem:[#allocation4 + $0x8] sm:$0xff] %vm498_vm9, %v477_v17  ;;  %v5535_v17 = vld [vmem:[%s7507_s3] sm:$0xff]   ;;  %5075 = vmatprep.subr.bf16.mxu0 %v5534_v0  ;;  %5503 = vmatprep.subr.bf16.mxu1 %v5534_v0 }
  0xa4   :  { %5511 = vmatpush3.bf16.msra.mxu1 %v5535_v17 }
  0xa5   :  { %v541_v18 = vpop.permute.xlu0 %540 }
  0xa6   :  { %v543_v19 = vpop.permute.xlu1 %542  ;;  %565 = vst.msk [vmem:[#allocation4] sm:$0xff] %vm564_vm10, %v541_v18  ;;  %v6118_v18 = vld [vmem:[%s7508_s2] ss:$0 sm:$0xff] }
  0xa7   :  { %566 = vst.msk [vmem:[#allocation4 + $0x8] sm:$0xff] %vm564_vm10, %v543_v19  ;;  %v5536_v19 = vld [vmem:[%s7507_s3 + $0x48] sm:$0xff]  }
  0xa8   :  { %5504 = vmatprep.subr.bf16.mxu1 %v5536_v19 }
  0xa9   :  { %v606_v20 = vpop.permute.xlu0 %605 }
  0xaa   :  { %v608_v21 = vpop.permute.xlu1 %607  ;;  %630 = vst.msk [vmem:[#allocation4] sm:$0xff] %vm629_vm11, %v606_v20  ;;  %v5537_v20 = vld [vmem:[%s7507_s3 + $0x8] sm:$0xff]  }
  0xab   :  { %631 = vst.msk [vmem:[#allocation4 + $0x8] sm:$0xff] %vm629_vm11, %v608_v21  ;;  %5512 = vmatpush3.bf16.msra.mxu1 %v5537_v20 }
  0xad   :  { %v671_v22 = vpop.permute.xlu0 %670 }
  0xae   :  { %v673_v23 = vpop.permute.xlu1 %672  ;;  %695 = vst.msk [vmem:[#allocation4] sm:$0xff] %vm694_vm12, %v671_v22  ;;  %v5538_v22 = vld [vmem:[%s7507_s3 + $0x50] sm:$0xff]  }
  0xaf   :  { %696 = vst.msk [vmem:[#allocation4 + $0x8] sm:$0xff] %vm694_vm12, %v673_v23  ;;  %v5539_v23 = vld [vmem:[%s7507_s3 + $0x10] sm:$0xff]   ;;  %5505 = vmatprep.subr.bf16.mxu1 %v5538_v22 }
  0xb0   :  { %5513 = vmatpush3.bf16.msra.mxu1 %v5539_v23 }
  0xb1   :  { %v219_v24 = vpop.permute.xlu0 %218 }
  0xb2   :  { %v221_v25 = vpop.permute.xlu1 %220  ;;  %241 = vst.msk [vmem:[#allocation4 + $0x10] sm:$0xff] %vm238_vm3, %v219_v24 }
  0xb3   :  { %242 = vst.msk [vmem:[#allocation4 + $0x18] sm:$0xff] %vm238_vm3, %v221_v25 }
  0xb5   :  { %v284_v26 = vpop.permute.xlu0 %283  ;;  %v703_v28 = vld [vmem:[#allocation4] sm:$0xff] }
  0xb6   :  { %v286_v27 = vpop.permute.xlu1 %285  ;;  %v704_v29 = vld [vmem:[#allocation4 + $0x8] sm:$0xff]  ;;  %306 = vst.msk [vmem:[#allocation4 + $0x10] sm:$0xff] %vm303_vm4, %v284_v26  ;;  %5387 = vmatprep.mubr.msk.bf16.mxu0 %vm732_vm13, %v703_v28 }
  0xb7   :  { %307 = vst.msk [vmem:[#allocation4 + $0x18] sm:$0xff] %vm303_vm4, %v286_v27  ;;  %5388 = vmatmul.mubr.msk.bf16.vlgmr.msra.gmra.mrb[0].mxu0 %vm732_vm13, %v704_v29 }
  0xb8   :  { %5076 = vmatpush3.bf16.msra.mxu0 %v5535_v17 }
  0xb9   :  { %v349_v30 = vpop.permute.xlu0 %348  ;;  %5077 = vmatprep.subr.bf16.mxu0 %v5536_v19 }
  0xba   :  { %v351_v31 = vpop.permute.xlu1 %350  ;;  %371 = vst.msk [vmem:[#allocation4 + $0x10] sm:$0xff] %vm368_vm5, %v349_v30 }
  0xbb   :  { %372 = vst.msk [vmem:[#allocation4 + $0x18] sm:$0xff] %vm368_vm5, %v351_v31 }
  0xbc   :  { %5078 = vmatpush3.bf16.msra.mxu0 %v5537_v20 }
  0xbd   :  { %v414_v32 = vpop.permute.xlu0 %413  ;;  %5079 = vmatprep.subr.bf16.mxu0 %v5538_v22  ;;  %v1387_v22 = vld [vmem:[#allocation3 + $0x92] sm:$0xff] }
  0xbe   :  { %v416_v33 = vpop.permute.xlu1 %415  ;;  %436 = vst.msk [vmem:[#allocation4 + $0x10] sm:$0xff] %vm433_vm8, %v414_v32 }
  0xbf   :  { %437 = vst.msk [vmem:[#allocation4 + $0x18] sm:$0xff] %vm433_vm8, %v416_v33  ;;  %v5540_v33 = vld [vmem:[%s7507_s3 + $0x58] sm:$0xff]  }
  0xc0   :  { %5080 = vmatpush3.bf16.msra.mxu0 %v5539_v23  ;;  %5506 = vmatprep.subr.bf16.mxu1 %v5540_v33 }
  0xc1   :  { %v479_v34 = vpop.permute.xlu0 %478  ;;  %5081 = vmatprep.subr.bf16.mxu0 %v5540_v33 }
  0xc2   :  { %v481_v35 = vpop.permute.xlu1 %480  ;;  %501 = vst.msk [vmem:[#allocation4 + $0x10] sm:$0xff] %vm498_vm9, %v479_v34  ;;  %v5541_v34 = vld [vmem:[%s7507_s3 + $0x18] sm:$0xff]  }
  0xc3   :  { %502 = vst.msk [vmem:[#allocation4 + $0x18] sm:$0xff] %vm498_vm9, %v481_v35  ;;  %5514 = vmatpush3.bf16.msra.mxu1 %v5541_v34 }
  0xc4   :  { %5082 = vmatpush3.bf16.msra.mxu0 %v5541_v34 }
  0xc5   :  { %v545_v36 = vpop.permute.xlu0 %544 }
  0xc6   :  { %v547_v37 = vpop.permute.xlu1 %546  ;;  %567 = vst.msk [vmem:[#allocation4 + $0x10] sm:$0xff] %vm564_vm10, %v545_v36 }
  0xc7   :  { %568 = vst.msk [vmem:[#allocation4 + $0x18] sm:$0xff] %vm564_vm10, %v547_v37  ;;  %v5542_v37 = vld [vmem:[%s7507_s3 + $0x60] sm:$0xff]  }
  0xc8   :  { %5083 = vmatprep.subr.bf16.mxu0 %v5542_v37  ;;  %5507 = vmatprep.subr.bf16.mxu1 %v5542_v37 }
  0xc9   :  { %v610_v38 = vpop.permute.xlu0 %609 }
  0xca   :  { %v612_v39 = vpop.permute.xlu1 %611  ;;  %632 = vst.msk [vmem:[#allocation4 + $0x10] sm:$0xff] %vm629_vm11, %v610_v38  ;;  %v5543_v38 = vld [vmem:[%s7507_s3 + $0x20] sm:$0xff]  }
  0xcb   :  { %633 = vst.msk [vmem:[#allocation4 + $0x18] sm:$0xff] %vm629_vm11, %v612_v39  ;;  %v960_v39 = vld [vmem:[#allocation3 + $0x1] sm:$0xff]  ;;  %5084 = vmatpush3.bf16.msra.mxu0 %v5543_v38  ;;  %5515 = vmatpush3.bf16.msra.mxu1 %v5543_v38 }
  0xcd   :  { %v675_v40 = vpop.permute.xlu0 %674 }
  0xce   :  { %v677_v41 = vpop.permute.xlu1 %676  ;;  %697 = vst.msk [vmem:[#allocation4 + $0x10] sm:$0xff] %vm694_vm12, %v675_v40  ;;  %v928_v40 = vld [vmem:[#allocation3] sm:$0xff] }
  0xcf   :  { %698 = vst.msk [vmem:[#allocation4 + $0x18] sm:$0xff] %vm694_vm12, %v677_v41 }
  0xd1   :  { %v223_v42 = vpop.permute.xlu0 %222 }
  0xd2   :  { %v225_v43 = vpop.permute.xlu1 %224  ;;  %243 = vst.msk [vmem:[#allocation4 + $0x20] sm:$0xff] %vm238_vm3, %v223_v42 }
  0xd3   :  { %244 = vst.msk [vmem:[#allocation4 + $0x28] sm:$0xff] %vm238_vm3, %v225_v43  ;;  %v1025_v43 = vld [vmem:[#allocation3 + $0x2] sm:$0xff] }
  0xd5   :  { %v288_v44 = vpop.permute.xlu0 %287  ;;  %v705_v52 = vld [vmem:[#allocation4 + $0x10] sm:$0xff] }
  0xd6   :  { %v290_v51 = vpop.permute.xlu1 %289  ;;  %v706_v56 = vld [vmem:[#allocation4 + $0x18] sm:$0xff]  ;;  %308 = vst.msk [vmem:[#allocation4 + $0x20] sm:$0xff] %vm303_vm4, %v288_v44  ;;  %5391 = vmatprep.mubr.msk.bf16.mxu0 %vm732_vm13, %v705_v52 }
  0xd7   :  { %309 = vst.msk [vmem:[#allocation4 + $0x28] sm:$0xff] %vm303_vm4, %v290_v51  ;;  %5392 = vmatmul.mubr.msk.bf16.gmra.mrb[4].mxu0 %vm732_vm13, %v706_v56 }
  0xd9   :  { %v353_v45 = vpop.permute.xlu0 %352 }
  0xda   :  { %v355_v46 = vpop.permute.xlu1 %354  ;;  %373 = vst.msk [vmem:[#allocation4 + $0x20] sm:$0xff] %vm368_vm5, %v353_v45 }
  0xdb   :  { %374 = vst.msk [vmem:[#allocation4 + $0x28] sm:$0xff] %vm368_vm5, %v355_v46 }
  0xdd   :  { %v418_v47 = vpop.permute.xlu0 %417 }
  0xde   :  { %v420_v58 = vpop.permute.xlu1 %419  ;;  %438 = vst.msk [vmem:[#allocation4 + $0x20] sm:$0xff] %vm433_vm8, %v418_v47 }
  0xdf   :  { %439 = vst.msk [vmem:[#allocation4 + $0x28] sm:$0xff] %vm433_vm8, %v420_v58 }
  0xe1   :  { %v483_v59 = vpop.permute.xlu0 %482 }
  0xe2   :  { %v485_v60 = vpop.permute.xlu1 %484  ;;  %503 = vst.msk [vmem:[#allocation4 + $0x20] sm:$0xff] %vm498_vm9, %v483_v59 }
  0xe3   :  { %504 = vst.msk [vmem:[#allocation4 + $0x28] sm:$0xff] %vm498_vm9, %v485_v60 }
  0xe5   :  { %v549_v61 = vpop.permute.xlu0 %548 }
  0xe6   :  { %v551_v62 = vpop.permute.xlu1 %550  ;;  %569 = vst.msk [vmem:[#allocation4 + $0x20] sm:$0xff] %vm564_vm10, %v549_v61 }
  0xe7   :  { %570 = vst.msk [vmem:[#allocation4 + $0x28] sm:$0xff] %vm564_vm10, %v551_v62 }
  0xe9   :  { %v614_v63 = vpop.permute.xlu0 %613 }
  0xea   :  { %v616_v48 = vpop.permute.xlu1 %615  ;;  %634 = vst.msk [vmem:[#allocation4 + $0x20] sm:$0xff] %vm629_vm11, %v614_v63 }
  0xeb   :  { %635 = vst.msk [vmem:[#allocation4 + $0x28] sm:$0xff] %vm629_vm11, %v616_v48 }
  0xed   :  { %v679_v50 = vpop.permute.xlu0 %678 }
  0xee   :  { %v681_v1 = vpop.permute.xlu1 %680  ;;  %699 = vst.msk [vmem:[#allocation4 + $0x20] sm:$0xff] %vm694_vm12, %v679_v50  ;;  %v5544_v50 = vld [vmem:[%s7507_s3 + $0x68] sm:$0xff]  }
  0xef   :  { %700 = vst.msk [vmem:[#allocation4 + $0x28] sm:$0xff] %vm694_vm12, %v681_v1  ;;  %v5545_v1 = vld [vmem:[%s7507_s3 + $0x28] sm:$0xff]   ;;  %5085 = vmatprep.subr.bf16.mxu0 %v5544_v50  ;;  %5508 = vmatprep.subr.bf16.mxu1 %v5544_v50 }
  0xf0   :  { %5086 = vmatpush3.bf16.msra.mxu0 %v5545_v1  ;;  %5516 = vmatpush3.bf16.msra.mxu1 %v5545_v1 }
  0xf1   :  { %v227_v2 = vpop.permute.xlu0 %226 }
  0xf2   :  { %v229_v3 = vpop.permute.xlu1 %228  ;;  %245 = vst.msk [vmem:[#allocation4 + $0x30] sm:$0xff] %vm238_vm3, %v227_v2  ;;  %v5546_v2 = vld [vmem:[%s7507_s3 + $0x70] sm:$0xff]  }
  0xf3   :  { %246 = vst.msk [vmem:[#allocation4 + $0x38] sm:$0xff] %vm238_vm3, %v229_v3  ;;  %5087 = vmatprep.subr.bf16.mxu0 %v5546_v2  ;;  %5509 = vmatprep.subr.bf16.mxu1 %v5546_v2 }
  0xf5   :  { %v292_v4 = vpop.permute.xlu0 %291  ;;  %v707_v6 = vld [vmem:[#allocation4 + $0x20] sm:$0xff] }
  0xf6   :  { %v294_v5 = vpop.permute.xlu1 %293  ;;  %v708_v7 = vld [vmem:[#allocation4 + $0x28] sm:$0xff]  ;;  %310 = vst.msk [vmem:[#allocation4 + $0x30] sm:$0xff] %vm303_vm4, %v292_v4  ;;  %5395 = vmatprep.mubr.msk.bf16.mxu0 %vm732_vm13, %v707_v6 }
  0xf7   :  { %311 = vst.msk [vmem:[#allocation4 + $0x38] sm:$0xff] %vm303_vm4, %v294_v5  ;;  %5396 = vmatmul.mubr.msk.bf16.gmra.mrb[8].mxu0 %vm732_vm13, %v708_v7 }
  0xf9   :  { %v357_v55 = vpop.permute.xlu0 %356 }
  0xfa   :  { %v359_v49 = vpop.permute.xlu1 %358  ;;  %375 = vst.msk [vmem:[#allocation4 + $0x30] sm:$0xff] %vm368_vm5, %v357_v55  ;;  %v5547_v55 = vld [vmem:[%s7507_s3 + $0x30] sm:$0xff]  }
  0xfb   :  { %376 = vst.msk [vmem:[#allocation4 + $0x38] sm:$0xff] %vm368_vm5, %v359_v49  ;;  %v5548_v49 = vld [vmem:[%s7507_s3 + $0x78] sm:$0xff]   ;;  %5088 = vmatpush3.bf16.msra.mxu0 %v5547_v55  ;;  %5517 = vmatpush3.bf16.msra.mxu1 %v5547_v55 }
  0xfc   :  { %5089 = vmatprep.subr.bf16.mxu0 %v5548_v49  ;;  %5510 = vmatprep.subr.bf16.mxu1 %v5548_v49 }
  0xfd   :  { %v422_v53 = vpop.permute.xlu0 %421 }
  0xfe   :  { %v424_v54 = vpop.permute.xlu1 %423  ;;  %440 = vst.msk [vmem:[#allocation4 + $0x30] sm:$0xff] %vm433_vm8, %v422_v53  ;;  %v5549_v53 = vld [vmem:[%s7507_s3 + $0x38] sm:$0xff]  }
  0xff   :  { %441 = vst.msk [vmem:[#allocation4 + $0x38] sm:$0xff] %vm433_vm8, %v424_v54  ;;  %5090 = vmatpush3.bf16.msra.mxu0 %v5549_v53  ;;  %5518 = vmatpush3.bf16.msra.mxu1 %v5549_v53 }
 0x101   :  { %v487_v8 = vpop.permute.xlu0 %486 }
 0x102   :  { %v489_v9 = vpop.permute.xlu1 %488  ;;  %505 = vst.msk [vmem:[#allocation4 + $0x30] sm:$0xff] %vm498_vm9, %v487_v8  ;;  %v6209_v8 = vld [vmem:[%s7507_s3 + $0x80] sm:$0xff]  }
 0x103   :  { %506 = vst.msk [vmem:[#allocation4 + $0x38] sm:$0xff] %vm498_vm9, %v489_v9  ;;  %5403 = vmatprep.subr.bf16.mxu0 %v6209_v8 }
 0x105   :  { %v553_v10 = vpop.permute.xlu0 %552 }
 0x106   :  { %v555_v11 = vpop.permute.xlu1 %554  ;;  %571 = vst.msk [vmem:[#allocation4 + $0x30] sm:$0xff] %vm564_vm10, %v553_v10 }
 0x107   :  { %572 = vst.msk [vmem:[#allocation4 + $0x38] sm:$0xff] %vm564_vm10, %v555_v11 }
 0x109   :  { %v618_v12 = vpop.permute.xlu0 %617 }
 0x10a   :  { %v620_v13 = vpop.permute.xlu1 %619  ;;  %636 = vst.msk [vmem:[#allocation4 + $0x30] sm:$0xff] %vm629_vm11, %v618_v12 }
 0x10b   :  { %637 = vst.msk [vmem:[#allocation4 + $0x38] sm:$0xff] %vm629_vm11, %v620_v13 }
 0x10d   :  { %v683_v57 = vpop.permute.xlu0 %682 }
 0x10e   :  { %v685_v14 = vpop.permute.xlu1 %684  ;;  %701 = vst.msk [vmem:[#allocation4 + $0x30] sm:$0xff] %vm694_vm12, %v683_v57 }
 0x10f   :  { %702 = vst.msk [vmem:[#allocation4 + $0x38] sm:$0xff] %vm694_vm12, %v685_v14 }
 0x115   :  { %v709_v15 = vld [vmem:[#allocation4 + $0x30] sm:$0xff] }
 0x116   :  { %v710_v16 = vld [vmem:[#allocation4 + $0x38] sm:$0xff]  ;;  %5399 = vmatprep.mubr.msk.bf16.mxu0 %vm732_vm13, %v709_v15 }
 0x117   :  { %5400 = vmatmul.mubr.msk.bf16.gmra.mrb[12].mxu0 %vm732_vm13, %v710_v16 }
 0x18a   :  { %v5389_v21 = vpop.f32.mrb[0].mxu0 }
 0x18b   :  { %v6133_v24 = vadd.f32 %v5389_v21, %v6118_v18  ;;  %v795_v25 = vpop.f32.mrb[1].mxu0 }
 0x18c   :  { %v6136_v26 = vadd.f32 %v6118_v18, %v795_v25  ;;  %v5390_v27 = vpop.f32.mrb[2].mxu0 }
 0x18d   :  { %v860_v28 = vmax.f32 %v6133_v24, 0.0  ;;  %v6140_v29 = vadd.f32 %v5390_v27, %v6118_v18  ;;  %v798_v30 = vpop.f32.mrb[3].mxu0 }
 0x18e   :  { %v858_v31 = vmax.f32 %v6136_v26, 0.0  ;;  %v6144_v32 = vadd.f32 %v6118_v18, %v798_v30  ;;  %v5573_v26 = vld [vmem:[%s7507_s3 + $0x120] sm:$0xff]  }
 0x18f   :  { %877 = vst.msk [vmem:[#allocation3 + $0x31] sm:$0xff] %vm69_vm6, %v860_v28  ;;  %v861_v35 = vmax.f32 %v6140_v29, 0.0  ;;  %v5585_v29 = vld [vmem:[%s7507_s3 + $0x150] sm:$0xff]  }
 0x190   :  { %875 = vst.msk [vmem:[#allocation3 + $0x11] sm:$0xff] %vm69_vm6, %v858_v31  ;;  %v859_v36 = vmax.f32 %v6144_v32, 0.0  ;;  %v2762_v32 = vld [vmem:[#allocation3] sm:$0xff] }
 0x191   :  { %878 = vst.msk [vmem:[#allocation3 + $0x41] sm:$0xff] %vm69_vm6, %v861_v35 }
 0x192   :  { %876 = vst.msk [vmem:[#allocation3 + $0x21] sm:$0xff] %vm69_vm6, %v859_v36 }
 0x196   :  { %v1381_v41 = vld [vmem:[#allocation3 + $0x32] sm:$0xff] }
 0x197   :  { %v961_v42 = vld [vmem:[#allocation3 + $0x11] sm:$0xff] }
 0x198   :  { %v1092_v44 = vld [vmem:[#allocation3 + $0x30] sm:$0xff]  ;;  %v6172_v56 = vld [vmem:[#allocation3 + $0x42] sm:$0xff]  ;;  %v976_v45 = vpack.c.bf16 %v961_v42, %v960_v39 }
 0x199   :  { %v1090_v51 = vld [vmem:[#allocation3 + $0x10] sm:$0xff]  ;;  %v6174_v47 = vld [vmem:[#allocation3 + $0x41] sm:$0xff]  ;;  %v1204_v60 = vpack.c.bf16 %v6172_v56, %v1381_v41 }
 0x19a   :  { %v1317_v52 = vld [vmem:[#allocation3 + $0x31] sm:$0xff]  ;;  %v944_v58 = vpack.c.bf16 %v1090_v51, %v928_v40  ;;  %v1380_v59 = vld [vmem:[#allocation3 + $0x22] sm:$0xff]  ;;  %992 = vrot.lane.b32.xlu1 %v976_v45, %s5618_s22 }
 0x19b   :  { %v1026_v46 = vld [vmem:[#allocation3 + $0x12] sm:$0xff]  ;;  %v1252_v61 = vld [vmem:[#allocation3 + $0x20] sm:$0xff]  ;;  %v1172_v63 = vpack.c.bf16 %v6174_v47, %v1317_v52  ;;  %1221 = vrot.lane.b32.xlu0 %v1204_v60, %s5618_s22  ;;  %v1042_v4 = vpack.c.bf16 %v1381_v41, %v1380_v59 }
 0x19c   :  { %v1316_v62 = vld [vmem:[#allocation3 + $0x21] sm:$0xff]  ;;  %v1268_v48 = vpack.c.bf16 %v1092_v44, %v1252_v61  ;;  %952 = vst.msk [vmem:[#allocation5] sm:$0xff] %vm69_vm6, %v944_v58  ;;  %v1041_v6 = vpack.c.bf16 %v1026_v46, %v1025_v43  ;;  %v1203_v7 = vpack.c.bf16 %v1380_v59, %v1026_v46  ;;  %v1106_v9 = vpack.c.bf16 %v1252_v61, %v1090_v51  ;;  %v1259_v60 = vld [vmem:[#allocation3 + $0x90] sm:$0xff] }
 0x19d   :  { %v1093_v3 = vld [vmem:[#allocation3 + $0x40] sm:$0xff]  ;;  %1180 = vst.msk [vmem:[#allocation5 + $0x20] sm:$0xff] %vm69_vm6, %v1172_v63  ;;  %v1171_v5 = vpack.c.bf16 %v1316_v62, %v961_v42  ;;  %1404 = vst.msk [vmem:[#allocation5 + $0x10] sm:$0xff] %vm69_vm6, %v1042_v4  ;;  %v1332_v10 = vpack.c.bf16 %v1317_v52, %v1316_v62  ;;  %v1323_v63 = vld [vmem:[#allocation3 + $0x91] sm:$0xff] }
 0x19e   :  { %953 = vst.msk [vmem:[#allocation5 + $0x18] sm:$0xff] %vm69_vm6, %v1268_v48  ;;  %1057 = vrot.lane.b32.xlu1 %v1041_v6, %s5619_s29  ;;  %v1107_v54 = vpack.c.bf16 %v1093_v3, %v1092_v44 }
 0x19f   :  { %1179 = vst.msk [vmem:[#allocation5 + $0x8] sm:$0xff] %vm69_vm6, %v1171_v5  ;;  %1219 = vrot.lane.b32.xlu0 %v1203_v7, %s5618_s22 }
 0x1a2   :  { %1124 = vrot.lane.b32.xlu1 %v1107_v54, %s5620_s9 }
 0x1a3   :  { %1284 = vrot.lane.b32.xlu0 %v1268_v48, %s5619_s29 }
 0x1a6   :  { %1122 = vrot.lane.b32.xlu1 %v1106_v9, %s5620_s9 }
 0x1a7   :  { %1348 = vrot.lane.b32.xlu0 %v1332_v10, %s5620_s9 }
 0x1aa   :  { %v5393_v11 = vpop.f32.mrb[4].mxu0  ;;  %994 = vrot.lane.b32.xlu1 %v1332_v10, %s5618_s22 }
 0x1ab   :  { %v6217_v12 = vadd.f32 %v5393_v11, %v6118_v18  ;;  %v811_v13 = vpop.f32.mrb[5].mxu0  ;;  %v968_v11 = vld [vmem:[#allocation3 + $0xa1] sm:$0xff] }
 0x1ac   :  { %v6220_v57 = vadd.f32 %v6118_v18, %v811_v13  ;;  %v5394_v14 = vpop.f32.mrb[6].mxu0  ;;  %v936_v13 = vld [vmem:[#allocation3 + $0xa0] sm:$0xff] }
 0x1ad   :  { %v864_v15 = vmax.f32 %v6217_v12, 0.0  ;;  %v6224_v16 = vadd.f32 %v5394_v14, %v6118_v18  ;;  %v814_v0 = vpop.f32.mrb[7].mxu0 }
 0x1ae   :  { %v862_v17 = vmax.f32 %v6220_v57, 0.0  ;;  %v6228_v19 = vadd.f32 %v6118_v18, %v814_v0  ;;  %1059 = vrot.lane.b32.xlu1 %v1042_v4, %s5619_s29 }
 0x1af   :  { %881 = vst.msk [vmem:[#allocation3 + $0x71] sm:$0xff] %vm69_vm6, %v864_v15  ;;  %v865_v20 = vmax.f32 %v6224_v16, 0.0 }
 0x1b0   :  { %879 = vst.msk [vmem:[#allocation3 + $0x51] sm:$0xff] %vm69_vm6, %v862_v17  ;;  %v863_v21 = vmax.f32 %v6228_v19, 0.0 }
 0x1b1   :  { %882 = vst.msk [vmem:[#allocation3 + $0x81] sm:$0xff] %vm69_vm6, %v865_v20 }
 0x1b2   :  { %880 = vst.msk [vmem:[#allocation3 + $0x61] sm:$0xff] %vm69_vm6, %v863_v21 }
 0x1b6   :  { %v1385_v30 = vld [vmem:[#allocation3 + $0x72] sm:$0xff] }
 0x1b7   :  { %v1383_v23 = vld [vmem:[#allocation3 + $0x52] sm:$0xff] }
 0x1b8   :  { %v1255_v25 = vld [vmem:[#allocation3 + $0x50] sm:$0xff]  ;;  %v1386_v33 = vld [vmem:[#allocation3 + $0x82] sm:$0xff]  ;;  %v1043_v38 = vpack.c.bf16 %v1383_v23, %v6172_v56 }
 0x1b9   :  { %v965_v27 = vld [vmem:[#allocation3 + $0x51] sm:$0xff]  ;;  %v1269_v34 = vpack.c.bf16 %v1255_v25, %v1093_v3  ;;  %v1322_v40 = vld [vmem:[#allocation3 + $0x81] sm:$0xff]  ;;  %v1399_v46 = vpack.c.bf16 %v1387_v22, %v1386_v33  ;;  %v1206_v58 = vpack.c.bf16 %v1386_v33, %v1385_v30 }
 0x1ba   :  { %v978_v37 = vpack.c.bf16 %v965_v27, %v6174_v47  ;;  %v1096_v39 = vld [vmem:[#allocation3 + $0x70] sm:$0xff]  ;;  %v1384_v41 = vld [vmem:[#allocation3 + $0x62] sm:$0xff]  ;;  %1405 = vst.msk [vmem:[#allocation5 + $0x28] sm:$0xff] %vm69_vm6, %v1043_v38  ;;  %v1335_v48 = vpack.c.bf16 %v1323_v63, %v1322_v40 }
 0x1bb   :  { %v1095_v42 = vld [vmem:[#allocation3 + $0x60] sm:$0xff]  ;;  %1286 = vrot.lane.b32.xlu0 %v1269_v34, %s5619_s29  ;;  %v967_v44 = vld [vmem:[#allocation3 + $0x71] sm:$0xff]  ;;  %954 = vst.msk [vmem:[#allocation5 + $0x30] sm:$0xff] %vm69_vm6, %v1269_v34  ;;  %v1044_v52 = vpack.c.bf16 %v1385_v30, %v1384_v41  ;;  %1407 = vst.msk [vmem:[#allocation5 + $0x58] sm:$0xff] %vm69_vm6, %v1399_v46  ;;  %v1205_v6 = vpack.c.bf16 %v1384_v41, %v1383_v23 }
 0x1bc   :  { %v966_v43 = vld [vmem:[#allocation3 + $0x61] sm:$0xff]  ;;  %996 = vrot.lane.b32.xlu1 %v978_v37, %s5618_s22  ;;  %v1270_v45 = vpack.c.bf16 %v1096_v39, %v1095_v42  ;;  %v1174_v47 = vpack.c.bf16 %v1322_v40, %v967_v44  ;;  %v1108_v62 = vpack.c.bf16 %v1095_v42, %v1255_v25 }
 0x1bd   :  { %v1097_v51 = vld [vmem:[#allocation3 + $0x80] sm:$0xff]  ;;  %v1173_v56 = vpack.c.bf16 %v966_v43, %v965_v27  ;;  %1406 = vst.msk [vmem:[#allocation5 + $0x40] sm:$0xff] %vm69_vm6, %v1044_v52  ;;  %v979_v50 = vpack.c.bf16 %v967_v44, %v966_v43 }
 0x1be   :  { %1182 = vst.msk [vmem:[#allocation5 + $0x50] sm:$0xff] %vm69_vm6, %v1174_v47  ;;  %955 = vst.msk [vmem:[#allocation5 + $0x48] sm:$0xff] %vm69_vm6, %v1270_v45  ;;  %v1109_v59 = vpack.c.bf16 %v1097_v51, %v1096_v39  ;;  %v1271_v61 = vpack.c.bf16 %v1259_v60, %v1097_v51  ;;  %v1033_v22 = vld [vmem:[#allocation3 + $0xa2] sm:$0xff] }
 0x1bf   :  { %1350 = vrot.lane.b32.xlu0 %v978_v37, %s5620_s9  ;;  %1181 = vst.msk [vmem:[#allocation5 + $0x38] sm:$0xff] %vm69_vm6, %v1173_v56 }
 0x1c0   :  { %1061 = vrot.lane.b32.xlu1 %v1043_v38, %s5619_s29 }
 0x1c3   :  { %1225 = vrot.lane.b32.xlu0 %v1206_v58, %s5618_s22 }
 0x1c4   :  { %1128 = vrot.lane.b32.xlu1 %v1109_v59, %s5620_s9 }
 0x1c7   :  { %1290 = vrot.lane.b32.xlu0 %v1271_v61, %s5619_s29 }
 0x1c8   :  { %1126 = vrot.lane.b32.xlu1 %v1108_v62, %s5620_s9 }
 0x1ca   :  { %v5397_v1 = vpop.f32.mrb[8].mxu0 }
 0x1cb   :  { %1354 = vrot.lane.b32.xlu0 %v1335_v48, %s5620_s9  ;;  %v6265_v2 = vadd.f32 %v5397_v1, %v6118_v18  ;;  %v827_v3 = vpop.f32.mrb[9].mxu0 }
 0x1cc   :  { %998 = vrot.lane.b32.xlu1 %v979_v50, %s5618_s22  ;;  %v6268_v4 = vadd.f32 %v6118_v18, %v827_v3  ;;  %v5398_v5 = vpop.f32.mrb[10].mxu0 }
 0x1cd   :  { %v868_v7 = vmax.f32 %v6265_v2, 0.0  ;;  %v6272_v55 = vadd.f32 %v5398_v5, %v6118_v18  ;;  %v830_v49 = vpop.f32.mrb[11].mxu0 }
 0x1ce   :  { %v866_v53 = vmax.f32 %v6268_v4, 0.0  ;;  %v6276_v54 = vadd.f32 %v6118_v18, %v830_v49 }
 0x1cf   :  { %1223 = vrot.lane.b32.xlu0 %v1205_v6, %s5618_s22  ;;  %885 = vst.msk [vmem:[#allocation3 + $0xd1] sm:$0xff] %vm69_vm6, %v868_v7  ;;  %v869_v9 = vmax.f32 %v6272_v55, 0.0 }
 0x1d0   :  { %1063 = vrot.lane.b32.xlu1 %v1044_v52, %s5619_s29  ;;  %883 = vst.msk [vmem:[#allocation3 + $0xb1] sm:$0xff] %vm69_vm6, %v866_v53  ;;  %v867_v10 = vmax.f32 %v6276_v54, 0.0 }
 0x1d1   :  { %886 = vst.msk [vmem:[#allocation3 + $0xe1] sm:$0xff] %vm69_vm6, %v869_v9 }
 0x1d2   :  { %884 = vst.msk [vmem:[#allocation3 + $0xc1] sm:$0xff] %vm69_vm6, %v867_v10 }
 0x1d3   :  { %1288 = vrot.lane.b32.xlu0 %v1270_v45, %s5619_s29 }
 0x1d6   :  { %v1389_v14 = vld [vmem:[#allocation3 + $0xd2] sm:$0xff] }
 0x1d7   :  { %1352 = vrot.lane.b32.xlu0 %v979_v50, %s5620_s9  ;;  %v969_v0 = vld [vmem:[#allocation3 + $0xb1] sm:$0xff] }
 0x1d8   :  { %v1100_v23 = vld [vmem:[#allocation3 + $0xd0] sm:$0xff]  ;;  %v1390_v30 = vld [vmem:[#allocation3 + $0xe2] sm:$0xff]  ;;  %v980_v33 = vpack.c.bf16 %v969_v0, %v968_v11 }
 0x1d9   :  { %v1098_v25 = vld [vmem:[#allocation3 + $0xb0] sm:$0xff]  ;;  %v972_v37 = vld [vmem:[#allocation3 + $0xe1] sm:$0xff]  ;;  %v1208_v40 = vpack.c.bf16 %v1390_v30, %v1389_v14 }
 0x1da   :  { %v1325_v27 = vld [vmem:[#allocation3 + $0xd1] sm:$0xff]  ;;  %v948_v38 = vpack.c.bf16 %v1098_v25, %v936_v13  ;;  %v1388_v39 = vld [vmem:[#allocation3 + $0xc2] sm:$0xff]  ;;  %1000 = vrot.lane.b32.xlu1 %v980_v33, %s5618_s22 }
 0x1db   :  { %v1034_v34 = vld [vmem:[#allocation3 + $0xb2] sm:$0xff]  ;;  %v1260_v41 = vld [vmem:[#allocation3 + $0xc0] sm:$0xff]  ;;  %v1176_v43 = vpack.c.bf16 %v972_v37, %v1325_v27  ;;  %1229 = vrot.lane.b32.xlu0 %v1208_v40, %s5618_s22  ;;  %v1046_v51 = vpack.c.bf16 %v1389_v14, %v1388_v39 }
 0x1dc   :  { %v1324_v42 = vld [vmem:[#allocation3 + $0xc1] sm:$0xff]  ;;  %v1272_v44 = vpack.c.bf16 %v1100_v23, %v1260_v41  ;;  %956 = vst.msk [vmem:[#allocation5 + $0x60] sm:$0xff] %vm69_vm6, %v948_v38  ;;  %v1045_v45 = vpack.c.bf16 %v1034_v34, %v1033_v22  ;;  %v1207_v46 = vpack.c.bf16 %v1388_v39, %v1034_v34  ;;  %v1110_v58 = vpack.c.bf16 %v1260_v41, %v1098_v25  ;;  %v1395_v33 = vld [vmem:[#allocation3 + $0x132] sm:$0xff] }
 0x1dd   :  { %1184 = vst.msk [vmem:[#allocation5 + $0x80] sm:$0xff] %vm69_vm6, %v1176_v43  ;;  %v1175_v52 = vpack.c.bf16 %v1324_v42, %v969_v0  ;;  %v1101_v47 = vld [vmem:[#allocation3 + $0xe0] sm:$0xff]  ;;  %1408 = vst.msk [vmem:[#allocation5 + $0x70] sm:$0xff] %vm69_vm6, %v1046_v51  ;;  %v1336_v59 = vpack.c.bf16 %v1325_v27, %v1324_v42 }
 0x1de   :  { %957 = vst.msk [vmem:[#allocation5 + $0x78] sm:$0xff] %vm69_vm6, %v1272_v44  ;;  %1065 = vrot.lane.b32.xlu1 %v1045_v45, %s5619_s29  ;;  %v1111_v56 = vpack.c.bf16 %v1101_v47, %v1100_v23 }
 0x1df   :  { %1183 = vst.msk [vmem:[#allocation5 + $0x68] sm:$0xff] %vm69_vm6, %v1175_v52  ;;  %1227 = vrot.lane.b32.xlu0 %v1207_v46, %s5618_s22 }
 0x1e2   :  { %1132 = vrot.lane.b32.xlu1 %v1111_v56, %s5620_s9 }
 0x1e3   :  { %1292 = vrot.lane.b32.xlu0 %v1272_v44, %s5619_s29 }
 0x1e6   :  { %1130 = vrot.lane.b32.xlu1 %v1110_v58, %s5620_s9 }
 0x1e7   :  { %1356 = vrot.lane.b32.xlu0 %v1336_v59, %s5620_s9 }
 0x1ea   :  { %v5401_v60 = vpop.f32.mrb[12].mxu0  ;;  %1002 = vrot.lane.b32.xlu1 %v1336_v59, %s5618_s22 }
 0x1eb   :  { %v6311_v61 = vadd.f32 %v5401_v60, %v6118_v18  ;;  %v843_v62 = vpop.f32.mrb[13].mxu0 }
 0x1ec   :  { %v6314_v63 = vadd.f32 %v6118_v18, %v843_v62  ;;  %v5402_v48 = vpop.f32.mrb[14].mxu0  ;;  %v1267_v62 = vld [vmem:[#allocation3 + $0x130] sm:$0xff] }
 0x1ed   :  { %v872_v50 = vmax.f32 %v6311_v61, 0.0  ;;  %v6318_v1 = vadd.f32 %v5402_v48, %v6118_v18  ;;  %v846_v3 = vpop.f32.mrb[15].mxu0 }
 0x1ee   :  { %v870_v5 = vmax.f32 %v6314_v63, 0.0  ;;  %v6322_v6 = vadd.f32 %v6118_v18, %v846_v3  ;;  %1067 = vrot.lane.b32.xlu1 %v1046_v51, %s5619_s29 }
 0x1ef   :  { %889 = vst.msk [vmem:[#allocation3 + $0x111] sm:$0xff] %vm69_vm6, %v872_v50  ;;  %v873_v49 = vmax.f32 %v6318_v1, 0.0 }
 0x1f0   :  { %887 = vst.msk [vmem:[#allocation3 + $0xf1] sm:$0xff] %vm69_vm6, %v870_v5  ;;  %v871_v11 = vmax.f32 %v6322_v6, 0.0 }
 0x1f1   :  { %890 = vst.msk [vmem:[#allocation3 + $0x121] sm:$0xff] %vm69_vm6, %v873_v49 }
 0x1f2   :  { %888 = vst.msk [vmem:[#allocation3 + $0x101] sm:$0xff] %vm69_vm6, %v871_v11 }
 0x1f6   :  { %v1393_v40 = vld [vmem:[#allocation3 + $0x112] sm:$0xff] }
 0x1f7   :  { %v1391_v18 = vld [vmem:[#allocation3 + $0xf2] sm:$0xff] }
 0x1f8   :  { %v1263_v13 = vld [vmem:[#allocation3 + $0xf0] sm:$0xff]  ;;  %v1394_v0 = vld [vmem:[#allocation3 + $0x122] sm:$0xff]  ;;  %v1047_v25 = vpack.c.bf16 %v1391_v18, %v1390_v30 }
 0x1f9   :  { %v973_v14 = vld [vmem:[#allocation3 + $0xf1] sm:$0xff]  ;;  %v1273_v22 = vpack.c.bf16 %v1263_v13, %v1101_v47  ;;  %v1330_v27 = vld [vmem:[#allocation3 + $0x121] sm:$0xff]  ;;  %v1210_v52 = vpack.c.bf16 %v1394_v0, %v1393_v40 }
 0x1fa   :  { %v982_v23 = vpack.c.bf16 %v973_v14, %v972_v37  ;;  %v1392_v34 = vld [vmem:[#allocation3 + $0x102] sm:$0xff]  ;;  %v975_v41 = vld [vmem:[#allocation3 + $0x111] sm:$0xff]  ;;  %1409 = vst.msk [vmem:[#allocation5 + $0x88] sm:$0xff] %vm69_vm6, %v1047_v25  ;;  %v1403_v37 = vpack.c.bf16 %v1395_v33, %v1394_v0 }
 0x1fb   :  { %v1103_v38 = vld [vmem:[#allocation3 + $0x100] sm:$0xff]  ;;  %1294 = vrot.lane.b32.xlu0 %v1273_v22, %s5619_s29  ;;  %v1265_v42 = vld [vmem:[#allocation3 + $0x110] sm:$0xff]  ;;  %958 = vst.msk [vmem:[#allocation5 + $0x90] sm:$0xff] %vm69_vm6, %v1273_v22  ;;  %v1048_v44 = vpack.c.bf16 %v1393_v40, %v1392_v34  ;;  %v1178_v30 = vpack.c.bf16 %v1330_v27, %v975_v41  ;;  %v1209_v46 = vpack.c.bf16 %v1392_v34, %v1391_v18 }
 0x1fc   :  { %v974_v39 = vld [vmem:[#allocation3 + $0x101] sm:$0xff]  ;;  %1004 = vrot.lane.b32.xlu1 %v982_v23, %s5618_s22  ;;  %v1274_v43 = vpack.c.bf16 %v1265_v42, %v1103_v38  ;;  %1411 = vst.msk [vmem:[#allocation5 + $0xb8] sm:$0xff] %vm69_vm6, %v1403_v37  ;;  %v1112_v45 = vpack.c.bf16 %v1103_v38, %v1263_v13  ;;  %v1331_v13 = vld [vmem:[#allocation3 + $0x131] sm:$0xff] }
 0x1fd   :  { %v1177_v51 = vpack.c.bf16 %v974_v39, %v973_v14  ;;  %1410 = vst.msk [vmem:[#allocation5 + $0xa0] sm:$0xff] %vm69_vm6, %v1048_v44  ;;  %1186 = vst.msk [vmem:[#allocation5 + $0xb0] sm:$0xff] %vm69_vm6, %v1178_v30  ;;  %v983_v47 = vpack.c.bf16 %v975_v41, %v974_v39  ;;  %v1105_v56 = vld [vmem:[#allocation3 + $0x120] sm:$0xff]  ;;  %v1339_v0 = vpack.c.bf16 %v1331_v13, %v1330_v27  ;;  %v5551_v27 = vld [vmem:[%s7507_s3 + $0x88] sm:$0xff]  }
 0x1fe   :  { %959 = vst.msk [vmem:[#allocation5 + $0xa8] sm:$0xff] %vm69_vm6, %v1274_v43  ;;  %v1113_v59 = vpack.c.bf16 %v1105_v56, %v1265_v42  ;;  %v1275_v3 = vpack.c.bf16 %v1267_v62, %v1105_v56  ;;  %v1414_v40 = vld [vmem:[#allocation5 + $0x10] sm:$0xff]  ;;  %v1417_v41 = vld [vmem:[#allocation5 + $0x28] sm:$0xff]  ;;  %v1420_v42 = vld [vmem:[#allocation5 + $0x40] sm:$0xff] }
 0x1ff   :  { %1358 = vrot.lane.b32.xlu0 %v982_v23, %s5620_s9  ;;  %1185 = vst.msk [vmem:[#allocation5 + $0x98] sm:$0xff] %vm69_vm6, %v1177_v51  ;;  %v1426_v51 = vld [vmem:[#allocation5 + $0x70] sm:$0xff] }
 0x200   :  { %1069 = vrot.lane.b32.xlu1 %v1047_v25, %s5619_s29 }
 0x203   :  { %1233 = vrot.lane.b32.xlu0 %v1210_v52, %s5618_s22  ;;  %v1435_v13 = vld [vmem:[#allocation5 + $0xb8] sm:$0xff] }
 0x204   :  { %1134 = vrot.lane.b32.xlu1 %v1112_v45, %s5620_s9 }
 0x207   :  { %1231 = vrot.lane.b32.xlu0 %v1209_v46, %s5618_s22 }
 0x208   :  { %1006 = vrot.lane.b32.xlu1 %v983_v47, %s5618_s22 }
 0x20b   :  { %1296 = vrot.lane.b32.xlu0 %v1274_v43, %s5619_s29 }
 0x20c   :  { %1071 = vrot.lane.b32.xlu1 %v1048_v44, %s5619_s29  ;;  %v993_v58 = vpop.permute.xlu1 %992 }
 0x20d   :  { %1017 = vst.msk [vmem:[#allocation5] sm:$0xff] %vm1016_vm14, %v993_v58  ;;  %v1222_v60 = vpop.permute.xlu0 %1221 }
 0x20e   :  { %1244 = vst.msk [vmem:[#allocation5 + $0x20] sm:$0xff] %vm1016_vm14, %v1222_v60  ;;  %v1432_v60 = vld [vmem:[#allocation5 + $0xa0] sm:$0xff] }
 0x20f   :  { %1360 = vrot.lane.b32.xlu0 %v983_v47, %s5620_s9 }
 0x210   :  { %1136 = vrot.lane.b32.xlu1 %v1113_v59, %s5620_s9  ;;  %v1058_v48 = vpop.permute.xlu1 %1057  ;;  %v1429_v59 = vld [vmem:[#allocation5 + $0x88] sm:$0xff] }
 0x211   :  { %1082 = vst.msk [vmem:[#allocation5] sm:$0xff] %vm1081_vm15, %v1058_v48  ;;  %v1220_v18 = vpop.permute.xlu0 %1219 }
 0x212   :  { %1243 = vst.msk [vmem:[#allocation5 + $0x8] sm:$0xff] %vm1016_vm14, %v1220_v18 }
 0x213   :  { %1298 = vrot.lane.b32.xlu0 %v1275_v3, %s5619_s29 }
 0x214   :  { %v1125_v14 = vpop.permute.xlu1 %1124 }
 0x215   :  { %v1285_v22 = vpop.permute.xlu0 %1284 }
 0x216   :  { %1308 = vst.msk [vmem:[#allocation5 + $0x8] sm:$0xff] %vm1081_vm15, %v1285_v22 }
 0x217   :  { %1362 = vrot.lane.b32.xlu0 %v1339_v0, %s5620_s9 }
 0x218   :  { %v1123_v23 = vpop.permute.xlu1 %1122 }
 0x219   :  { %1147 = vst.msk [vmem:[#allocation5] sm:$0xff] %vm1146_vm0, %v1123_v23  ;;  %v1349_v25 = vpop.permute.xlu0 %1348 }
 0x21a   :  { %1372 = vst.msk [vmem:[#allocation5 + $0x8] sm:$0xff] %vm1146_vm0, %v1349_v25 }
 0x21c   :  { %v995_v33 = vpop.permute.xlu1 %994 }
 0x21d   :  { %1018 = vst.msk [vmem:[#allocation5 + $0x18] sm:$0xff] %vm1016_vm14, %v995_v33 }
 0x220   :  { %v1060_v34 = vpop.permute.xlu1 %1059  ;;  %v1412_v39 = vld [vmem:[#allocation5] sm:$0xff] }
 0x221   :  { %1083 = vst.msk [vmem:[#allocation5 + $0x18] sm:$0xff] %vm1081_vm15, %v1060_v34  ;;  %v1413_v38 = vld [vmem:[#allocation5 + $0x8] sm:$0xff] }
 0x222   :  { %1148 = vst.msk [vmem:[#allocation5 + $0x18] sm:$0xff] %vm1146_vm0, %v1125_v14  ;;  %1606 = vmatprep.mubr.bf16.mxu0 %v1413_v38 }
 0x223   :  { %1607 = vmatmul.mubr.bf16.vlgmr.msra.gmra.mrb[16].mxu0 %v1412_v39 }
 0x224   :  { %5404 = vmatpush3.bf16.msra.mxu0 %v6209_v8  ;;  %5407 = vmatprep.mubr.msk.bf16.mxu0 %vm69_vm6, %v1414_v40  ;;  %v1423_v8 = vld [vmem:[#allocation5 + $0x58] sm:$0xff] }
 0x225   :  { %5405 = vmatprep.subr.bf16.mxu0 %v5551_v27 }
 0x228   :  { %5406 = vmatpush3.bf16.msra.mxu0 %v5551_v27 }
 0x229   :  { %v1415_v58 = vld [vmem:[#allocation5 + $0x18] sm:$0xff] }
 0x22b   :  { %5408 = vmatmul.mubr.msk.bf16.vlgmr.msra.gmra.mrb[20].mxu0 %vm69_vm6, %v1417_v41 }
 0x22c   :  { %5411 = vmatprep.mubr.msk.bf16.mxu0 %vm69_vm6, %v1420_v42 }
 0x22d   :  { %v1287_v43 = vpop.permute.xlu0 %1286 }
 0x22e   :  { %v997_v44 = vpop.permute.xlu1 %996  ;;  %1309 = vst.msk [vmem:[#allocation5 + $0x20] sm:$0xff] %vm1081_vm15, %v1287_v43 }
 0x22f   :  { %1019 = vst.msk [vmem:[#allocation5 + $0x30] sm:$0xff] %vm1016_vm14, %v997_v44 }
 0x231   :  { %v1351_v37 = vpop.permute.xlu0 %1350 }
 0x232   :  { %v1062_v30 = vpop.permute.xlu1 %1061  ;;  %1373 = vst.msk [vmem:[#allocation5 + $0x20] sm:$0xff] %vm1146_vm0, %v1351_v37 }
 0x233   :  { %1084 = vst.msk [vmem:[#allocation5 + $0x30] sm:$0xff] %vm1081_vm15, %v1062_v30  ;;  %5412 = vmatmul.mubr.msk.bf16.gmra.mrb[24].mxu0 %vm69_vm6, %v1423_v8 }
 0x234   :  { %5415 = vmatprep.mubr.msk.bf16.mxu0 %vm69_vm6, %v1426_v51 }
 0x235   :  { %v1226_v52 = vpop.permute.xlu0 %1225 }
 0x236   :  { %v1129_v45 = vpop.permute.xlu1 %1128  ;;  %1246 = vst.msk [vmem:[#allocation5 + $0x50] sm:$0xff] %vm1016_vm14, %v1226_v52 }
 0x239   :  { %v1291_v46 = vpop.permute.xlu0 %1290  ;;  %v1416_v56 = vld [vmem:[#allocation5 + $0x20] sm:$0xff] }
 0x23a   :  { %v1127_v47 = vpop.permute.xlu1 %1126  ;;  %1311 = vst.msk [vmem:[#allocation5 + $0x50] sm:$0xff] %vm1081_vm15, %v1291_v46  ;;  %1614 = vmatprep.mubr.bf16.mxu1 %v1416_v56 }
 0x23b   :  { %1149 = vst.msk [vmem:[#allocation5 + $0x30] sm:$0xff] %vm1146_vm0, %v1127_v47  ;;  %1615 = vmatmul.mubr.bf16.vlgmr.msra.gmra.mrb[0].mxu1 %v1415_v58  ;;  %5416 = vmatmul.mubr.msk.bf16.gmra.mrb[28].mxu0 %vm69_vm6, %v1429_v59 }
 0x23c   :  { %5419 = vmatprep.mubr.msk.bf16.mxu0 %vm69_vm6, %v1432_v60 }
 0x23d   :  { %v1355_v62 = vpop.permute.xlu0 %1354 }
 0x23e   :  { %v999_v48 = vpop.permute.xlu1 %998  ;;  %1375 = vst.msk [vmem:[#allocation5 + $0x50] sm:$0xff] %vm1146_vm0, %v1355_v62 }
 0x23f   :  { %1020 = vst.msk [vmem:[#allocation5 + $0x48] sm:$0xff] %vm1016_vm14, %v999_v48 }
 0x241   :  { %v1224_v3 = vpop.permute.xlu0 %1223 }
 0x242   :  { %v1064_v18 = vpop.permute.xlu1 %1063  ;;  %1245 = vst.msk [vmem:[#allocation5 + $0x38] sm:$0xff] %vm1016_vm14, %v1224_v3  ;;  %v1418_v38 = vld [vmem:[#allocation5 + $0x30] sm:$0xff] }
 0x243   :  { %1085 = vst.msk [vmem:[#allocation5 + $0x48] sm:$0xff] %vm1081_vm15, %v1064_v18  ;;  %5420 = vmatmul.mubr.msk.bf16.gmra.mrb[32].mxu0 %vm69_vm6, %v1435_v13 }
 0x244   :  { %1150 = vst.msk [vmem:[#allocation5 + $0x48] sm:$0xff] %vm1146_vm0, %v1129_v45 }
 0x245   :  { %v1289_v14 = vpop.permute.xlu0 %1288  ;;  %v1422_v27 = vld [vmem:[#allocation5 + $0x50] sm:$0xff] }
 0x246   :  { %1310 = vst.msk [vmem:[#allocation5 + $0x38] sm:$0xff] %vm1081_vm15, %v1289_v14 }
 0x249   :  { %v1353_v0 = vpop.permute.xlu0 %1352 }
 0x24a   :  { %1374 = vst.msk [vmem:[#allocation5 + $0x38] sm:$0xff] %vm1146_vm0, %v1353_v0 }
 0x24b   :  { %v1421_v43 = vld [vmem:[#allocation5 + $0x48] sm:$0xff] }
 0x24c   :  { %v1001_v22 = vpop.permute.xlu1 %1000 }
 0x24d   :  { %1021 = vst.msk [vmem:[#allocation5 + $0x60] sm:$0xff] %vm1016_vm14, %v1001_v22  ;;  %v1230_v23 = vpop.permute.xlu0 %1229 }
 0x24e   :  { %1248 = vst.msk [vmem:[#allocation5 + $0x80] sm:$0xff] %vm1016_vm14, %v1230_v23 }
 0x250   :  { %v1066_v25 = vpop.permute.xlu1 %1065 }
 0x251   :  { %v1419_v33 = vld [vmem:[#allocation5 + $0x38] sm:$0xff]  ;;  %1086 = vst.msk [vmem:[#allocation5 + $0x60] sm:$0xff] %vm1081_vm15, %v1066_v25  ;;  %v1228_v34 = vpop.permute.xlu0 %1227 }
 0x252   :  { %1622 = vmatprep.mubr.bf16.mxu1 %v1419_v33  ;;  %1247 = vst.msk [vmem:[#allocation5 + $0x68] sm:$0xff] %vm1016_vm14, %v1228_v34  ;;  %v5552_v34 = vld [vmem:[%s7507_s3 + $0x110] sm:$0xff]  }
 0x253   :  { %1623 = vmatmul.mubr.bf16.gmra.mrb[4].mxu1 %v1418_v38  ;;  %5423 = vmatprep.subr.bf16.mxu1 %v5552_v34  ;;  %v5553_v38 = vld [vmem:[%s7507_s3 + $0x118] sm:$0xff]  }
 0x254   :  { %1630 = vmatprep.mubr.bf16.mxu1 %v1422_v27  ;;  %v1133_v39 = vpop.permute.xlu1 %1132  ;;  %5424 = vmatpush3.bf16.msra.mxu1 %v5552_v34 }
 0x255   :  { %v1293_v40 = vpop.permute.xlu0 %1292  ;;  %5425 = vmatprep.subr.bf16.mxu1 %v5553_v38 }
 0x256   :  { %1312 = vst.msk [vmem:[#allocation5 + $0x68] sm:$0xff] %vm1081_vm15, %v1293_v40 }
 0x258   :  { %v1131_v41 = vpop.permute.xlu1 %1130  ;;  %5426 = vmatpush3.bf16.msra.mxu1 %v5553_v38 }
 0x259   :  { %1151 = vst.msk [vmem:[#allocation5 + $0x60] sm:$0xff] %vm1146_vm0, %v1131_v41  ;;  %v1357_v42 = vpop.permute.xlu0 %1356 }
 0x25a   :  { %1376 = vst.msk [vmem:[#allocation5 + $0x68] sm:$0xff] %vm1146_vm0, %v1357_v42 }
 0x25b   :  { %1631 = vmatmul.mubr.bf16.gmra.mrb[8].mxu1 %v1421_v43 }
 0x25c   :  { %v1003_v44 = vpop.permute.xlu1 %1002 }
 0x25d   :  { %1022 = vst.msk [vmem:[#allocation5 + $0x78] sm:$0xff] %vm1016_vm14, %v1003_v44  ;;  %v6429_v44 = vld [vmem:[%s7509_s4] ss:$0 sm:$0xff] }
 0x260   :  { %v1068_v37 = vpop.permute.xlu1 %1067  ;;  %v1424_v8 = vld [vmem:[#allocation5 + $0x60] sm:$0xff] }
 0x261   :  { %1087 = vst.msk [vmem:[#allocation5 + $0x78] sm:$0xff] %vm1081_vm15, %v1068_v37  ;;  %v1425_v30 = vld [vmem:[#allocation5 + $0x68] sm:$0xff] }
 0x262   :  { %1152 = vst.msk [vmem:[#allocation5 + $0x78] sm:$0xff] %vm1146_vm0, %v1133_v39  ;;  %1638 = vmatprep.mubr.bf16.mxu1 %v1425_v30 }
 0x263   :  { %1639 = vmatmul.mubr.bf16.gmra.mrb[12].mxu1 %v1424_v8 }
 0x269   :  { %v1427_v62 = vld [vmem:[#allocation5 + $0x78] sm:$0xff] }
 0x26d   :  { %v1295_v51 = vpop.permute.xlu0 %1294 }
 0x26e   :  { %v1005_v52 = vpop.permute.xlu1 %1004  ;;  %1313 = vst.msk [vmem:[#allocation5 + $0x80] sm:$0xff] %vm1081_vm15, %v1295_v51 }
 0x26f   :  { %1023 = vst.msk [vmem:[#allocation5 + $0x90] sm:$0xff] %vm1016_vm14, %v1005_v52 }
 0x271   :  { %v1359_v45 = vpop.permute.xlu0 %1358 }
 0x272   :  { %v1070_v46 = vpop.permute.xlu1 %1069  ;;  %1377 = vst.msk [vmem:[#allocation5 + $0x80] sm:$0xff] %vm1146_vm0, %v1359_v45 }
 0x273   :  { %1088 = vst.msk [vmem:[#allocation5 + $0x90] sm:$0xff] %vm1081_vm15, %v1070_v46 }
 0x275   :  { %v1234_v47 = vpop.permute.xlu0 %1233 }
 0x276   :  { %v1135_v56 = vpop.permute.xlu1 %1134  ;;  %1250 = vst.msk [vmem:[#allocation5 + $0xb0] sm:$0xff] %vm1016_vm14, %v1234_v47  ;;  %v5554_v47 = vld [vmem:[%s7507_s3 + $0xd0] sm:$0xff]  }
 0x277   :  { %1153 = vst.msk [vmem:[#allocation5 + $0x90] sm:$0xff] %vm1146_vm0, %v1135_v56  ;;  %5149 = vmatprep.subr.bf16.mxu0 %v5554_v47  ;;  %v5561_v47 = vld [vmem:[%s7507_s3 + $0xa8] sm:$0xff]  }
 0x279   :  { %v1232_v58 = vpop.permute.xlu0 %1231  ;;  %v1428_v60 = vld [vmem:[#allocation5 + $0x80] sm:$0xff] }
 0x27a   :  { %v1007_v59 = vpop.permute.xlu1 %1006  ;;  %1249 = vst.msk [vmem:[#allocation5 + $0x98] sm:$0xff] %vm1016_vm14, %v1232_v58  ;;  %1646 = vmatprep.mubr.bf16.mxu1 %v1428_v60 }
 0x27b   :  { %1024 = vst.msk [vmem:[#allocation5 + $0xa8] sm:$0xff] %vm1016_vm14, %v1007_v59  ;;  %1647 = vmatmul.mubr.bf16.gmra.mrb[16].mxu1 %v1427_v62  ;;  %v5555_v59 = vld [vmem:[%s7507_s3 + $0x90] sm:$0xff]   ;;  %v5556_v62 = vld [vmem:[%s7507_s3 + $0xd8] sm:$0xff]  }
 0x27c   :  { %5150 = vmatpush3.bf16.msra.mxu0 %v5555_v59 }
 0x27d   :  { %v1297_v48 = vpop.permute.xlu0 %1296  ;;  %5151 = vmatprep.subr.bf16.mxu0 %v5556_v62 }
 0x27e   :  { %v1072_v3 = vpop.permute.xlu1 %1071  ;;  %1314 = vst.msk [vmem:[#allocation5 + $0x98] sm:$0xff] %vm1081_vm15, %v1297_v48  ;;  %v1430_v23 = vld [vmem:[#allocation5 + $0x90] sm:$0xff] }
 0x27f   :  { %1089 = vst.msk [vmem:[#allocation5 + $0xa8] sm:$0xff] %vm1081_vm15, %v1072_v3  ;;  %v5557_v3 = vld [vmem:[%s7507_s3 + $0x98] sm:$0xff]  }
 0x280   :  { %5152 = vmatpush3.bf16.msra.mxu0 %v5557_v3 }
 0x281   :  { %v1361_v18 = vpop.permute.xlu0 %1360 }
 0x282   :  { %v1137_v13 = vpop.permute.xlu1 %1136  ;;  %1378 = vst.msk [vmem:[#allocation5 + $0x98] sm:$0xff] %vm1146_vm0, %v1361_v18 }
 0x283   :  { %1154 = vst.msk [vmem:[#allocation5 + $0xa8] sm:$0xff] %vm1146_vm0, %v1137_v13 }
 0x285   :  { %v1299_v14 = vpop.permute.xlu0 %1298 }
 0x286   :  { %1315 = vst.msk [vmem:[#allocation5 + $0xb0] sm:$0xff] %vm1081_vm15, %v1299_v14  ;;  %v1871_v14 = vld [vmem:[#allocation3 + $0x1] sm:$0xff] }
 0x289   :  { %v1363_v0 = vpop.permute.xlu0 %1362  ;;  %v1431_v22 = vld [vmem:[#allocation5 + $0x98] sm:$0xff] }
 0x28a   :  { %1379 = vst.msk [vmem:[#allocation5 + $0xb0] sm:$0xff] %vm1146_vm0, %v1363_v0  ;;  %1654 = vmatprep.mubr.bf16.mxu1 %v1431_v22  ;;  %v1433_v33 = vld [vmem:[#allocation5 + $0xa8] sm:$0xff]  ;;  %v1839_v0 = vld [vmem:[#allocation3] sm:$0xff] }
 0x28b   :  { %1655 = vmatmul.mubr.bf16.gmra.mrb[20].mxu1 %v1430_v23  ;;  %v5558_v23 = vld [vmem:[%s7507_s3 + $0xe0] sm:$0xff]  }
 0x28c   :  { %5153 = vmatprep.subr.bf16.mxu0 %v5558_v23 }
 0x291   :  { %v1434_v25 = vld [vmem:[#allocation5 + $0xb0] sm:$0xff] }
 0x292   :  { %1662 = vmatprep.mubr.bf16.mxu1 %v1434_v25  ;;  %v5559_v25 = vld [vmem:[%s7507_s3 + $0xa0] sm:$0xff]  }
 0x293   :  { %1663 = vmatmul.mubr.bf16.gmra.mrb[24].mxu1 %v1433_v33  ;;  %v5560_v33 = vld [vmem:[%s7507_s3 + $0xe8] sm:$0xff]   ;;  %5154 = vmatpush3.bf16.msra.mxu0 %v5559_v25 }
 0x294   :  { %5155 = vmatprep.subr.bf16.mxu0 %v5560_v33 }
 0x297   :  { %5156 = vmatpush3.bf16.msra.mxu0 %v5561_v47 }
 0x2f6   :  { %v5091_v27 = vpop.f32.mrb[16].mxu0 }
 0x2f7   :  { %v5092_v39 = vpop.f32.mrb[17].mxu0 }
 0x2f8   :  { %v5093_v40 = vadd.f32 %v5092_v39, %v5091_v27  ;;  %v5094_v41 = vpop.f32.mrb[18].mxu0  ;;  %v1935_v39 = vld [vmem:[#allocation3 + $0x2] sm:$0xff] }
 0x2f9   :  { %v5095_v42 = vpop.f32.mrb[19].mxu0 }
 0x2fa   :  { %v5096_v43 = vadd.f32 %v5095_v42, %v5094_v41  ;;  %v1609_v30 = vadd.f32 %v5093_v40, %v6429_v44 }
 0x2fc   :  { %v1612_v45 = vadd.f32 %v5096_v43, %v6429_v44 }
 0x2fe   :  { %v6431_v37 = vpop.f32.mrb[20].mxu0 }
 0x2ff   :  { %v1705_v8 = vpop.f32.mrb[21].mxu0 }
 0x300   :  { %v1706_v51 = vadd.f32 %v1705_v8, %v1609_v30  ;;  %v6434_v52 = vpop.f32.mrb[22].mxu0 }
 0x301   :  { %v1708_v46 = vpop.f32.mrb[23].mxu0 }
 0x302   :  { %v1768_v56 = vmax.f32 %v1706_v51, 0.0  ;;  %v1709_v58 = vadd.f32 %v1708_v46, %v1612_v45 }
 0x304   :  { %1784 = vst.msk [vmem:[#allocation3 + $0x11] sm:$0xff] %vm69_vm6, %v1768_v56  ;;  %v1769_v60 = vmax.f32 %v1709_v58, 0.0  ;;  %v5562_v56 = vld [vmem:[%s7507_s3 + $0xf0] sm:$0xff]  }
 0x305   :  { %5157 = vmatprep.subr.bf16.mxu0 %v5562_v56  ;;  %v5566_v56 = vld [vmem:[%s7507_s3 + $0x100] sm:$0xff]  }
 0x306   :  { %1785 = vst.msk [vmem:[#allocation3 + $0x21] sm:$0xff] %vm69_vm6, %v1769_v60  ;;  %v6448_v48 = vpop.f32.mrb[24].mxu0 }
 0x307   :  { %v6453_v18 = vpop.f32.mrb[25].mxu0 }
 0x308   :  { %v6455_v13 = vpop.f32.mrb[26].mxu0 }
 0x309   :  { %v6457_v22 = vpop.f32.mrb[27].mxu0 }
 0x30b   :  { %v1872_v34 = vld [vmem:[#allocation3 + $0x11] sm:$0xff] }
 0x30c   :  { %v1999_v38 = vld [vmem:[#allocation3 + $0x10] sm:$0xff]  ;;  %v1887_v27 = vpack.c.bf16 %v1872_v34, %v1871_v14 }
 0x30d   :  { %v1855_v40 = vpack.c.bf16 %v1999_v38, %v1839_v0  ;;  %v2095_v42 = vld [vmem:[#allocation3 + $0x12] sm:$0xff]  ;;  %v2096_v43 = vld [vmem:[#allocation3 + $0x22] sm:$0xff] }
 0x30e   :  { %v5097_v41 = vpop.f32.mrb[0].mxu1  ;;  %v1873_v30 = vld [vmem:[#allocation3 + $0x21] sm:$0xff]  ;;  %v6468_v51 = vpop.f32.mrb[28].mxu0  ;;  %1903 = vrot.lane.b32.xlu1 %v1887_v27, %s5618_s22  ;;  %v2111_v45 = vpack.c.bf16 %v2096_v43, %v2095_v42  ;;  %v1951_v14 = vpack.c.bf16 %v2095_v42, %v1935_v39  ;;  %v5563_v0 = vld [vmem:[%s7507_s3 + $0xb0] sm:$0xff]   ;;  %v5565_v42 = vld [vmem:[%s7507_s3 + $0xb8] sm:$0xff]  }
 0x30f   :  { %v5098_v8 = vpop.f32.mrb[1].mxu1  ;;  %1863 = vst.msk [vmem:[#allocation5] sm:$0xff] %vm69_vm6, %v1855_v40  ;;  %v2079_v46 = vpack.c.bf16 %v1873_v30, %v1872_v34  ;;  %v6478_v60 = vpop.f32.mrb[29].mxu0  ;;  %v2000_v34 = vld [vmem:[#allocation3 + $0x20] sm:$0xff]  ;;  %5158 = vmatpush3.bf16.msra.mxu0 %v5563_v0 }
 0x310   :  { %v5099_v58 = vadd.f32 %v5098_v8, %v5097_v41  ;;  %v5100_v59 = vpop.f32.mrb[2].mxu1  ;;  %v6480_v3 = vpop.f32.mrb[30].mxu0  ;;  %2127 = vrot.lane.b32.xlu0 %v2111_v45, %s5618_s22  ;;  %v2015_v40 = vpack.c.bf16 %v2000_v34, %v1999_v38  ;;  %v5564_v41 = vld [vmem:[%s7507_s3 + $0xf8] sm:$0xff]  }
 0x311   :  { %v5101_v62 = vpop.f32.mrb[3].mxu1  ;;  %2087 = vst.msk [vmem:[#allocation5 + $0x8] sm:$0xff] %vm69_vm6, %v2079_v46  ;;  %v6488_v33 = vpop.f32.mrb[31].mxu0  ;;  %5159 = vmatprep.subr.bf16.mxu0 %v5564_v41 }
 0x312   :  { %v1617_v23 = vadd.f32 %v5099_v58, %v6429_v44  ;;  %v5102_v25 = vadd.f32 %v5101_v62, %v5100_v59  ;;  %1967 = vrot.lane.b32.xlu1 %v1951_v14, %s5619_s29  ;;  %v5568_v59 = vld [vmem:[%s7507_s3 + $0x108] sm:$0xff]  }
 0x313   :  { %5160 = vmatpush3.bf16.msra.mxu0 %v5565_v42  ;;  %v5569_v62 = vld [vmem:[%s7507_s3 + $0xc8] sm:$0xff]  }
 0x314   :  { %v1714_v27 = vadd.f32 %v6431_v37, %v1617_v23  ;;  %v1620_v39 = vadd.f32 %v5102_v25, %v6429_v44  ;;  %5161 = vmatprep.subr.bf16.mxu0 %v5566_v56 }
 0x316   :  { %v1770_v8 = vmax.f32 %v1714_v27, 0.0  ;;  %v1717_v45 = vadd.f32 %v6434_v52, %v1620_v39  ;;  %v6500_v46 = vpop.f32.mrb[32].mxu0  ;;  %2031 = vrot.lane.b32.xlu1 %v2015_v40, %s5620_s9  ;;  %v5567_v52 = vld [vmem:[%s7507_s3 + $0xc0] sm:$0xff]  }
 0x317   :  { %v6504_v38 = vpop.f32.mrb[33].mxu0  ;;  %5162 = vmatpush3.bf16.msra.mxu0 %v5567_v52 }
 0x318   :  { %1786 = vst.msk [vmem:[#allocation3 + $0x31] sm:$0xff] %vm69_vm6, %v1770_v8  ;;  %v1771_v37 = vmax.f32 %v1717_v45, 0.0  ;;  %v6506_v47 = vpop.f32.mrb[34].mxu0  ;;  %5163 = vmatprep.subr.bf16.mxu0 %v5568_v59 }
 0x319   :  { %v6515_v58 = vpop.f32.mrb[35].mxu0 }
 0x31a   :  { %1787 = vst.msk [vmem:[#allocation3 + $0x41] sm:$0xff] %vm69_vm6, %v1771_v37 }
 0x31b   :  { %5164 = vmatpush3.bf16.msra.mxu0 %v5569_v62 }
 0x31f   :  { %v2160_v14 = vld [vmem:[#allocation3 + $0x30] sm:$0xff] }
 0x320   :  { %v1874_v0 = vld [vmem:[#allocation3 + $0x31] sm:$0xff]  ;;  %v2175_v25 = vpack.c.bf16 %v2160_v14, %v2000_v34 }
 0x321   :  { %v1938_v23 = vld [vmem:[#allocation3 + $0x32] sm:$0xff]  ;;  %v1888_v27 = vpack.c.bf16 %v1874_v0, %v1873_v30  ;;  %v1875_v40 = vld [vmem:[#allocation3 + $0x41] sm:$0xff] }
 0x322   :  { %v1952_v39 = vpack.c.bf16 %v1938_v23, %v2096_v43  ;;  %2191 = vrot.lane.b32.xlu0 %v2175_v25, %s5619_s29  ;;  %1864 = vst.msk [vmem:[#allocation5 + $0x18] sm:$0xff] %vm69_vm6, %v2175_v25  ;;  %v2080_v41 = vpack.c.bf16 %v1875_v40, %v1874_v0  ;;  %v2098_v42 = vld [vmem:[#allocation3 + $0x42] sm:$0xff] }
 0x323   :  { %1905 = vrot.lane.b32.xlu1 %v1888_v27, %s5618_s22  ;;  %v2002_v43 = vld [vmem:[#allocation3 + $0x40] sm:$0xff]  ;;  %v2112_v37 = vpack.c.bf16 %v2098_v42, %v1938_v23 }
 0x324   :  { %2311 = vst.msk [vmem:[#allocation5 + $0x10] sm:$0xff] %vm69_vm6, %v1952_v39  ;;  %2088 = vst.msk [vmem:[#allocation5 + $0x20] sm:$0xff] %vm69_vm6, %v2080_v41  ;;  %v2016_v59 = vpack.c.bf16 %v2002_v43, %v2160_v14 }
 0x326   :  { %v5103_v8 = vpop.f32.mrb[4].mxu1  ;;  %2255 = vrot.lane.b32.xlu0 %v1888_v27, %s5620_s9 }
 0x327   :  { %1969 = vrot.lane.b32.xlu1 %v1952_v39, %s5619_s29  ;;  %v5104_v30 = vpop.f32.mrb[5].mxu1 }
 0x328   :  { %v5105_v34 = vadd.f32 %v5104_v30, %v5103_v8  ;;  %v5106_v45 = vpop.f32.mrb[6].mxu1 }
 0x329   :  { %v5107_v56 = vpop.f32.mrb[7].mxu1 }
 0x32a   :  { %v1625_v62 = vadd.f32 %v5105_v34, %v6429_v44  ;;  %v5108_v25 = vadd.f32 %v5107_v56, %v5106_v45  ;;  %2129 = vrot.lane.b32.xlu0 %v2112_v37, %s5618_s22 }
 0x32b   :  { %v2321_v52 = vld [vmem:[#allocation5 + $0x10] sm:$0xff]  ;;  %2033 = vrot.lane.b32.xlu1 %v2016_v59, %s5620_s9 }
 0x32c   :  { %5427 = vmatprep.mubr.msk.bf16.mxu1 %vm69_vm6, %v2321_v52  ;;  %v1722_v0 = vadd.f32 %v6453_v18, %v1625_v62  ;;  %v1628_v27 = vadd.f32 %v5108_v25, %v6429_v44 }
 0x32e   :  { %v1772_v39 = vmax.f32 %v1722_v0, 0.0  ;;  %v1725_v41 = vadd.f32 %v6457_v22, %v1628_v27  ;;  %v5109_v23 = vpop.f32.mrb[8].mxu1 }
 0x32f   :  { %v5110_v8 = vpop.f32.mrb[9].mxu1 }
 0x330   :  { %1788 = vst.msk [vmem:[#allocation3 + $0x51] sm:$0xff] %vm69_vm6, %v1772_v39  ;;  %v1773_v14 = vmax.f32 %v1725_v41, 0.0  ;;  %v5111_v30 = vadd.f32 %v5110_v8, %v5109_v23  ;;  %v5112_v34 = vpop.f32.mrb[10].mxu1 }
 0x331   :  { %v5113_v45 = vpop.f32.mrb[11].mxu1 }
 0x332   :  { %1789 = vst.msk [vmem:[#allocation3 + $0x61] sm:$0xff] %vm69_vm6, %v1773_v14  ;;  %v1633_v37 = vadd.f32 %v5111_v30, %v6429_v44  ;;  %v5114_v56 = vadd.f32 %v5113_v45, %v5112_v34 }
 0x334   :  { %v1730_v18 = vadd.f32 %v6448_v48, %v1633_v37  ;;  %v1636_v52 = vadd.f32 %v5114_v56, %v6429_v44 }
 0x336   :  { %v1774_v59 = vmax.f32 %v1730_v18, 0.0  ;;  %v1733_v22 = vadd.f32 %v6455_v13, %v1636_v52  ;;  %v5115_v62 = vpop.f32.mrb[12].mxu1 }
 0x337   :  { %v2162_v25 = vld [vmem:[#allocation3 + $0x50] sm:$0xff]  ;;  %v5116_v41 = vpop.f32.mrb[13].mxu1 }
 0x338   :  { %v1876_v0 = vld [vmem:[#allocation3 + $0x51] sm:$0xff]  ;;  %1790 = vst.msk [vmem:[#allocation3 + $0x71] sm:$0xff] %vm69_vm6, %v1774_v59  ;;  %v1775_v39 = vmax.f32 %v1733_v22, 0.0  ;;  %v2176_v23 = vpack.c.bf16 %v2162_v25, %v2002_v43  ;;  %v5117_v30 = vadd.f32 %v5116_v41, %v5115_v62  ;;  %v5118_v34 = vpop.f32.mrb[14].mxu1 }
 0x339   :  { %v1940_v27 = vld [vmem:[#allocation3 + $0x52] sm:$0xff]  ;;  %v1889_v8 = vpack.c.bf16 %v1876_v0, %v1875_v40  ;;  %v1877_v45 = vld [vmem:[#allocation3 + $0x61] sm:$0xff]  ;;  %v5119_v48 = vpop.f32.mrb[15].mxu1 }
 0x33a   :  { %v1953_v14 = vpack.c.bf16 %v1940_v27, %v2098_v42  ;;  %1791 = vst.msk [vmem:[#allocation3 + $0x81] sm:$0xff] %vm69_vm6, %v1775_v39  ;;  %2193 = vrot.lane.b32.xlu0 %v2176_v23, %s5619_s29  ;;  %1865 = vst.msk [vmem:[#allocation5 + $0x30] sm:$0xff] %vm69_vm6, %v2176_v23  ;;  %v2081_v13 = vpack.c.bf16 %v1877_v45, %v1876_v0  ;;  %v1641_v37 = vadd.f32 %v5117_v30, %v6429_v44  ;;  %v2100_v56 = vld [vmem:[#allocation3 + $0x62] sm:$0xff] }
 0x33b   :  { %1907 = vrot.lane.b32.xlu1 %v1889_v8, %s5618_s22  ;;  %v5120_v43 = vadd.f32 %v5119_v48, %v5118_v34  ;;  %v2004_v18 = vld [vmem:[#allocation3 + $0x60] sm:$0xff]  ;;  %v2113_v0 = vpack.c.bf16 %v2100_v56, %v1940_v27 }
 0x33c   :  { %2312 = vst.msk [vmem:[#allocation5 + $0x28] sm:$0xff] %vm69_vm6, %v1953_v14  ;;  %2089 = vst.msk [vmem:[#allocation5 + $0x38] sm:$0xff] %vm69_vm6, %v2081_v13  ;;  %v1738_v40 = vadd.f32 %v6478_v60, %v1641_v37  ;;  %v2017_v30 = vpack.c.bf16 %v2004_v18, %v2162_v25  ;;  %v1847_v13 = vld [vmem:[#allocation3 + $0xa0] sm:$0xff] }
 0x33d   :  { %v1644_v42 = vadd.f32 %v5120_v43, %v6429_v44 }
 0x33e   :  { %2257 = vrot.lane.b32.xlu0 %v1889_v8, %s5620_s9  ;;  %v1776_v52 = vmax.f32 %v1738_v40, 0.0 }
 0x33f   :  { %1971 = vrot.lane.b32.xlu1 %v1953_v14, %s5619_s29  ;;  %v1741_v59 = vadd.f32 %v6488_v33, %v1644_v42  ;;  %v2164_v22 = vld [vmem:[#allocation3 + $0x70] sm:$0xff] }
 0x340   :  { %v2292_v62 = vld [vmem:[#allocation3 + $0x72] sm:$0xff]  ;;  %v2177_v39 = vpack.c.bf16 %v2164_v22, %v2004_v18  ;;  %1792 = vst.msk [vmem:[#allocation3 + $0xb1] sm:$0xff] %vm69_vm6, %v1776_v52 }
 0x341   :  { %v2305_v41 = vpack.c.bf16 %v2292_v62, %v2100_v56  ;;  %v1777_v23 = vmax.f32 %v1741_v59, 0.0  ;;  %v2293_v34 = vld [vmem:[#allocation3 + $0x82] sm:$0xff]  ;;  %v1878_v8 = vld [vmem:[#allocation3 + $0x71] sm:$0xff] }
 0x342   :  { %2131 = vrot.lane.b32.xlu0 %v2113_v0, %s5618_s22  ;;  %v5608_v14 = vld [vmem:[#allocation3 + $0x92] sm:$0xff]  ;;  %v2229_v48 = vld [vmem:[#allocation3 + $0x81] sm:$0xff]  ;;  %1866 = vst.msk [vmem:[#allocation5 + $0x48] sm:$0xff] %vm69_vm6, %v2177_v39  ;;  %v1890_v25 = vpack.c.bf16 %v1878_v8, %v1877_v45  ;;  %v2114_v59 = vpack.c.bf16 %v2293_v34, %v2292_v62 }
 0x343   :  { %v2324_v60 = vld [vmem:[#allocation5 + $0x28] sm:$0xff]  ;;  %2313 = vst.msk [vmem:[#allocation5 + $0x40] sm:$0xff] %vm69_vm6, %v2305_v41  ;;  %v2306_v33 = vpack.c.bf16 %v5608_v14, %v2293_v34  ;;  %1793 = vst.msk [vmem:[#allocation3 + $0xc1] sm:$0xff] %vm69_vm6, %v1777_v23  ;;  %2035 = vrot.lane.b32.xlu1 %v2017_v30, %s5620_s9  ;;  %v2082_v27 = vpack.c.bf16 %v2229_v48, %v1878_v8  ;;  %v2006_v42 = vld [vmem:[#allocation3 + $0x80] sm:$0xff] }
 0x344   :  { %5428 = vmatmul.mubr.msk.bf16.vlgmr.msra.gmra.mrb[28].mxu1 %vm69_vm6, %v2324_v60  ;;  %v2018_v0 = vpack.c.bf16 %v2006_v42, %v2164_v22  ;;  %v1879_v60 = vld [vmem:[#allocation3 + $0xa1] sm:$0xff] }
 0x345   :  { %2314 = vst.msk [vmem:[#allocation5 + $0x58] sm:$0xff] %vm69_vm6, %v2306_v33  ;;  %2090 = vst.msk [vmem:[#allocation5 + $0x50] sm:$0xff] %vm69_vm6, %v2082_v27  ;;  %v1943_v22 = vld [vmem:[#allocation3 + $0xa2] sm:$0xff] }
 0x346   :  { %2195 = vrot.lane.b32.xlu0 %v2177_v39, %s5619_s29  ;;  %v2166_v39 = vld [vmem:[#allocation3 + $0x90] sm:$0xff] }
 0x347   :  { %1909 = vrot.lane.b32.xlu1 %v1890_v25, %s5618_s22  ;;  %v2007_v37 = vld [vmem:[#allocation3 + $0xb0] sm:$0xff]  ;;  %v2178_v14 = vpack.c.bf16 %v2166_v39, %v2006_v42 }
 0x348   :  { %v1859_v40 = vpack.c.bf16 %v2007_v37, %v1847_v13  ;;  %v1880_v56 = vld [vmem:[#allocation3 + $0xb1] sm:$0xff] }
 0x349   :  { %v1891_v27 = vpack.c.bf16 %v1880_v56, %v1879_v60  ;;  %v1944_v34 = vld [vmem:[#allocation3 + $0xb2] sm:$0xff] }
 0x34a   :  { %v2327_v43 = vld [vmem:[#allocation5 + $0x40] sm:$0xff]  ;;  %2259 = vrot.lane.b32.xlu0 %v1890_v25, %s5620_s9  ;;  %1867 = vst.msk [vmem:[#allocation5 + $0x60] sm:$0xff] %vm69_vm6, %v1859_v40  ;;  %v2230_v25 = vld [vmem:[#allocation3 + $0x91] sm:$0xff] }
 0x34b   :  { %5431 = vmatprep.mubr.msk.bf16.mxu1 %vm69_vm6, %v2327_v43  ;;  %v1881_v18 = vld [vmem:[#allocation3 + $0xc1] sm:$0xff]  ;;  %1973 = vrot.lane.b32.xlu1 %v2305_v41, %s5619_s29 }
 0x34c   :  { %v2330_v45 = vld [vmem:[#allocation5 + $0x58] sm:$0xff]  ;;  %v2083_v52 = vpack.c.bf16 %v1881_v18, %v1880_v56 }
 0x34d   :  { %5432 = vmatmul.mubr.msk.bf16.gmra.mrb[32].mxu1 %vm69_vm6, %v2330_v45  ;;  %v2242_v45 = vpack.c.bf16 %v2230_v25, %v2229_v48 }
 0x34e   :  { %2091 = vst.msk [vmem:[#allocation5 + $0x68] sm:$0xff] %vm69_vm6, %v2083_v52  ;;  %v5121_v23 = vpop.f32.mrb[16].mxu1  ;;  %2133 = vrot.lane.b32.xlu0 %v2114_v59, %s5618_s22  ;;  %v1955_v52 = vpack.c.bf16 %v1944_v34, %v1943_v22  ;;  %v2104_v59 = vld [vmem:[#allocation3 + $0xc2] sm:$0xff] }
 0x34f   :  { %2037 = vrot.lane.b32.xlu1 %v2018_v0, %s5620_s9  ;;  %v5122_v30 = vpop.f32.mrb[17].mxu1  ;;  %v2008_v0 = vld [vmem:[#allocation3 + $0xc0] sm:$0xff] }
 0x350   :  { %v5123_v8 = vadd.f32 %v5122_v30, %v5121_v23  ;;  %v5124_v41 = vpop.f32.mrb[18].mxu1  ;;  %v2115_v23 = vpack.c.bf16 %v2104_v59, %v1944_v34  ;;  %v2019_v60 = vpack.c.bf16 %v2008_v0, %v2007_v37 }
 0x351   :  { %v5125_v33 = vpop.f32.mrb[19].mxu1 }
 0x352   :  { %v1649_v13 = vadd.f32 %v5123_v8, %v6429_v44  ;;  %v5126_v62 = vadd.f32 %v5125_v33, %v5124_v41  ;;  %2197 = vrot.lane.b32.xlu0 %v2178_v14, %s5619_s29 }
 0x353   :  { %1911 = vrot.lane.b32.xlu1 %v1891_v27, %s5618_s22 }
 0x354   :  { %v1746_v43 = vadd.f32 %v6468_v51, %v1649_v13  ;;  %v1652_v40 = vadd.f32 %v5126_v62, %v6429_v44 }
 0x356   :  { %v1778_v42 = vmax.f32 %v1746_v43, 0.0  ;;  %v1749_v56 = vadd.f32 %v6480_v3, %v1652_v40  ;;  %2261 = vrot.lane.b32.xlu0 %v2242_v45, %s5620_s9 }
 0x357   :  { %1975 = vrot.lane.b32.xlu1 %v1955_v52, %s5619_s29 }
 0x358   :  { %1794 = vst.msk [vmem:[#allocation3 + $0xd1] sm:$0xff] %vm69_vm6, %v1778_v42  ;;  %v1779_v39 = vmax.f32 %v1749_v56, 0.0 }
 0x35a   :  { %1795 = vst.msk [vmem:[#allocation3 + $0xe1] sm:$0xff] %vm69_vm6, %v1779_v39  ;;  %2135 = vrot.lane.b32.xlu0 %v2115_v23, %s5618_s22 }
 0x35b   :  { %2039 = vrot.lane.b32.xlu1 %v2019_v60, %s5620_s9 }
 0x35e   :  { %v5127_v51 = vpop.f32.mrb[20].mxu1 }
 0x35f   :  { %v5128_v48 = vpop.f32.mrb[21].mxu1  ;;  %v2168_v30 = vld [vmem:[#allocation3 + $0xd0] sm:$0xff] }
 0x360   :  { %v1882_v3 = vld [vmem:[#allocation3 + $0xd1] sm:$0xff]  ;;  %v5129_v41 = vadd.f32 %v5128_v48, %v5127_v51  ;;  %v5130_v14 = vpop.f32.mrb[22].mxu1  ;;  %v2179_v33 = vpack.c.bf16 %v2168_v30, %v2008_v0 }
 0x361   :  { %v1946_v8 = vld [vmem:[#allocation3 + $0xd2] sm:$0xff]  ;;  %v1892_v27 = vpack.c.bf16 %v1882_v3, %v1881_v18  ;;  %v5131_v13 = vpop.f32.mrb[23].mxu1  ;;  %v1883_v62 = vld [vmem:[#allocation3 + $0xe1] sm:$0xff] }
 0x362   :  { %v1956_v25 = vpack.c.bf16 %v1946_v8, %v2104_v59  ;;  %v1657_v37 = vadd.f32 %v5129_v41, %v6429_v44  ;;  %v5132_v22 = vadd.f32 %v5131_v13, %v5130_v14  ;;  %2199 = vrot.lane.b32.xlu0 %v2179_v33, %s5619_s29  ;;  %1868 = vst.msk [vmem:[#allocation5 + $0x78] sm:$0xff] %vm69_vm6, %v2179_v33  ;;  %v2106_v18 = vld [vmem:[#allocation3 + $0xe2] sm:$0xff] }
 0x363   :  { %1913 = vrot.lane.b32.xlu1 %v1892_v27, %s5618_s22  ;;  %v2084_v34 = vpack.c.bf16 %v1883_v62, %v1882_v3  ;;  %v2010_v42 = vld [vmem:[#allocation3 + $0xe0] sm:$0xff]  ;;  %v2116_v23 = vpack.c.bf16 %v2106_v18, %v1946_v8 }
 0x364   :  { %2315 = vst.msk [vmem:[#allocation5 + $0x70] sm:$0xff] %vm69_vm6, %v1956_v25  ;;  %v1754_v43 = vadd.f32 %v6504_v38, %v1657_v37  ;;  %v1660_v40 = vadd.f32 %v5132_v22, %v6429_v44  ;;  %v2020_v48 = vpack.c.bf16 %v2010_v42, %v2168_v30 }
 0x365   :  { %2092 = vst.msk [vmem:[#allocation5 + $0x80] sm:$0xff] %vm69_vm6, %v2084_v34 }
 0x366   :  { %v1780_v45 = vmax.f32 %v1754_v43, 0.0  ;;  %v1757_v52 = vadd.f32 %v6515_v58, %v1660_v40  ;;  %v5133_v59 = vpop.f32.mrb[24].mxu1  ;;  %2263 = vrot.lane.b32.xlu0 %v1892_v27, %s5620_s9 }
 0x367   :  { %1977 = vrot.lane.b32.xlu1 %v1956_v25, %s5619_s29  ;;  %v5134_v56 = vpop.f32.mrb[25].mxu1 }
 0x368   :  { %1796 = vst.msk [vmem:[#allocation3 + $0xf1] sm:$0xff] %vm69_vm6, %v1780_v45  ;;  %v1781_v0 = vmax.f32 %v1757_v52, 0.0  ;;  %v5135_v39 = vadd.f32 %v5134_v56, %v5133_v59  ;;  %v5136_v38 = vpop.f32.mrb[26].mxu1 }
 0x369   :  { %v5137_v60 = vpop.f32.mrb[27].mxu1 }
 0x36a   :  { %1797 = vst.msk [vmem:[#allocation3 + $0x101] sm:$0xff] %vm69_vm6, %v1781_v0  ;;  %v1665_v58 = vadd.f32 %v5135_v39, %v6429_v44  ;;  %v5138_v3 = vadd.f32 %v5137_v60, %v5136_v38  ;;  %2137 = vrot.lane.b32.xlu0 %v2116_v23, %s5618_s22  ;;  %v5609_v39 = vld [vmem:[#allocation3 + $0x132] sm:$0xff] }
 0x36b   :  { %v2333_v51 = vld [vmem:[#allocation5 + $0x70] sm:$0xff]  ;;  %2041 = vrot.lane.b32.xlu1 %v2020_v48, %s5620_s9 }
 0x36c   :  { %5435 = vmatprep.mubr.msk.bf16.mxu1 %vm69_vm6, %v2333_v51  ;;  %v1762_v41 = vadd.f32 %v6500_v46, %v1665_v58  ;;  %v1668_v14 = vadd.f32 %v5138_v3, %v6429_v44 }
 0x36e   :  { %v1782_v33 = vmax.f32 %v1762_v41, 0.0  ;;  %v1765_v8 = vadd.f32 %v6506_v47, %v1668_v14 }
 0x36f   :  { %v2170_v27 = vld [vmem:[#allocation3 + $0xf0] sm:$0xff] }
 0x370   :  { %v1884_v30 = vld [vmem:[#allocation3 + $0xf1] sm:$0xff]  ;;  %1798 = vst.msk [vmem:[#allocation3 + $0x111] sm:$0xff] %vm69_vm6, %v1782_v33  ;;  %v1783_v13 = vmax.f32 %v1765_v8, 0.0  ;;  %v2180_v37 = vpack.c.bf16 %v2170_v27, %v2010_v42 }
 0x371   :  { %v1948_v25 = vld [vmem:[#allocation3 + $0xf2] sm:$0xff]  ;;  %v1893_v22 = vpack.c.bf16 %v1884_v30, %v1883_v62  ;;  %v1885_v43 = vld [vmem:[#allocation3 + $0x101] sm:$0xff] }
 0x372   :  { %v1957_v34 = vpack.c.bf16 %v1948_v25, %v2106_v18  ;;  %1799 = vst.msk [vmem:[#allocation3 + $0x121] sm:$0xff] %vm69_vm6, %v1783_v13  ;;  %2201 = vrot.lane.b32.xlu0 %v2180_v37, %s5619_s29  ;;  %1869 = vst.msk [vmem:[#allocation5 + $0x90] sm:$0xff] %vm69_vm6, %v2180_v37  ;;  %v2085_v44 = vpack.c.bf16 %v1885_v43, %v1884_v30  ;;  %v2108_v46 = vld [vmem:[#allocation3 + $0x102] sm:$0xff]  ;;  %v2174_v30 = vld [vmem:[#allocation3 + $0x130] sm:$0xff] }
 0x373   :  { %1915 = vrot.lane.b32.xlu1 %v1893_v22, %s5618_s22  ;;  %v2012_v47 = vld [vmem:[#allocation3 + $0x100] sm:$0xff]  ;;  %v2117_v18 = vpack.c.bf16 %v2108_v46, %v1948_v25  ;;  %v2238_v37 = vld [vmem:[#allocation3 + $0x131] sm:$0xff] }
 0x374   :  { %2316 = vst.msk [vmem:[#allocation5 + $0x88] sm:$0xff] %vm69_vm6, %v1957_v34  ;;  %2093 = vst.msk [vmem:[#allocation5 + $0x98] sm:$0xff] %vm69_vm6, %v2085_v44  ;;  %v2021_v42 = vpack.c.bf16 %v2012_v47, %v2170_v27 }
 0x376   :  { %2265 = vrot.lane.b32.xlu0 %v1893_v22, %s5620_s9 }
 0x377   :  { %1979 = vrot.lane.b32.xlu1 %v1957_v34, %s5619_s29  ;;  %v2172_v62 = vld [vmem:[#allocation3 + $0x110] sm:$0xff] }
 0x378   :  { %v2300_v40 = vld [vmem:[#allocation3 + $0x112] sm:$0xff]  ;;  %v2181_v45 = vpack.c.bf16 %v2172_v62, %v2012_v47 }
 0x379   :  { %v2309_v52 = vpack.c.bf16 %v2300_v40, %v2108_v46  ;;  %v2301_v56 = vld [vmem:[#allocation3 + $0x122] sm:$0xff]  ;;  %v1886_v0 = vld [vmem:[#allocation3 + $0x111] sm:$0xff] }
 0x37a   :  { %2139 = vrot.lane.b32.xlu0 %v2117_v18, %s5618_s22  ;;  %v2310_v38 = vpack.c.bf16 %v5609_v39, %v2301_v56  ;;  %v2237_v23 = vld [vmem:[#allocation3 + $0x121] sm:$0xff]  ;;  %1870 = vst.msk [vmem:[#allocation5 + $0xa8] sm:$0xff] %vm69_vm6, %v2181_v45  ;;  %v1894_v51 = vpack.c.bf16 %v1886_v0, %v1885_v43  ;;  %v2118_v33 = vpack.c.bf16 %v2301_v56, %v2300_v40 }
 0x37b   :  { %v2336_v59 = vld [vmem:[#allocation5 + $0x88] sm:$0xff]  ;;  %2317 = vst.msk [vmem:[#allocation5 + $0xa0] sm:$0xff] %vm69_vm6, %v2309_v52  ;;  %2043 = vrot.lane.b32.xlu1 %v2021_v42, %s5620_s9  ;;  %v2086_v60 = vpack.c.bf16 %v2237_v23, %v1886_v0  ;;  %v2014_v3 = vld [vmem:[#allocation3 + $0x120] sm:$0xff]  ;;  %v2246_v22 = vpack.c.bf16 %v2238_v37, %v2237_v23 }
 0x37c   :  { %5436 = vmatmul.mubr.msk.bf16.gmra.mrb[36].mxu1 %vm69_vm6, %v2336_v59  ;;  %2318 = vst.msk [vmem:[#allocation5 + $0xb8] sm:$0xff] %vm69_vm6, %v2310_v38  ;;  %v2022_v27 = vpack.c.bf16 %v2014_v3, %v2172_v62  ;;  %v2182_v25 = vpack.c.bf16 %v2174_v30, %v2014_v3 }
 0x37d   :  { %2094 = vst.msk [vmem:[#allocation5 + $0xb0] sm:$0xff] %vm69_vm6, %v2086_v60 }
 0x37e   :  { %2203 = vrot.lane.b32.xlu0 %v2181_v45, %s5619_s29 }
 0x37f   :  { %1917 = vrot.lane.b32.xlu1 %v1894_v51, %s5618_s22 }
 0x380   :  { %v1904_v48 = vpop.permute.xlu1 %1903 }
 0x381   :  { %1927 = vst.msk [vmem:[#allocation5] sm:$0xff] %vm1016_vm14, %v1904_v48 }
 0x382   :  { %v2339_v58 = vld [vmem:[#allocation5 + $0xa0] sm:$0xff]  ;;  %2267 = vrot.lane.b32.xlu0 %v1894_v51, %s5620_s9  ;;  %v2128_v41 = vpop.permute.xlu0 %2127 }
 0x383   :  { %5439 = vmatprep.mubr.msk.bf16.mxu1 %vm69_vm6, %v2339_v58  ;;  %1981 = vrot.lane.b32.xlu1 %v2309_v52, %s5619_s29  ;;  %v2342_v14 = vld [vmem:[#allocation5 + $0xb8] sm:$0xff]  ;;  %2151 = vst.msk [vmem:[#allocation5 + $0x8] sm:$0xff] %vm1016_vm14, %v2128_v41 }
 0x384   :  { %5440 = vmatmul.mubr.msk.bf16.gmra.mrb[40].mxu1 %vm69_vm6, %v2342_v14  ;;  %v1968_v8 = vpop.permute.xlu1 %1967 }
 0x385   :  { %1991 = vst.msk [vmem:[#allocation5] sm:$0xff] %vm1081_vm15, %v1968_v8 }
 0x386   :  { %2141 = vrot.lane.b32.xlu0 %v2118_v33, %s5618_s22 }
 0x387   :  { %2045 = vrot.lane.b32.xlu1 %v2022_v27, %s5620_s9 }
 0x388   :  { %v2032_v13 = vpop.permute.xlu1 %2031 }
 0x389   :  { %2055 = vst.msk [vmem:[#allocation5] sm:$0xff] %vm1146_vm0, %v2032_v13 }
 0x38a   :  { %2205 = vrot.lane.b32.xlu0 %v2182_v25, %s5619_s29 }
 0x38e   :  { %2269 = vrot.lane.b32.xlu0 %v2246_v22, %s5620_s9 }
 0x390   :  { %v2319_v18 = vld [vmem:[#allocation5] sm:$0xff] }
 0x394   :  { %v2192_v34 = vpop.permute.xlu0 %2191 }
 0x395   :  { %v1906_v43 = vpop.permute.xlu1 %1905  ;;  %2215 = vst.msk [vmem:[#allocation5 + $0x8] sm:$0xff] %vm1081_vm15, %v2192_v34 }
 0x396   :  { %1928 = vst.msk [vmem:[#allocation5 + $0x18] sm:$0xff] %vm1016_vm14, %v1906_v43 }
 0x398   :  { %v2256_v44 = vpop.permute.xlu0 %2255 }
 0x399   :  { %v1970_v46 = vpop.permute.xlu1 %1969  ;;  %2279 = vst.msk [vmem:[#allocation5 + $0x8] sm:$0xff] %vm1146_vm0, %v2256_v44 }
 0x39a   :  { %1992 = vst.msk [vmem:[#allocation5 + $0x18] sm:$0xff] %vm1081_vm15, %v1970_v46 }
 0x39c   :  { %v2130_v47 = vpop.permute.xlu0 %2129 }
 0x39d   :  { %2152 = vst.msk [vmem:[#allocation5 + $0x20] sm:$0xff] %vm1016_vm14, %v2130_v47  ;;  %v2034_v62 = vpop.permute.xlu1 %2033 }
 0x39e   :  { %2056 = vst.msk [vmem:[#allocation5 + $0x18] sm:$0xff] %vm1146_vm0, %v2034_v62 }
 0x3a0   :  { %v2320_v40 = vld [vmem:[#allocation5 + $0x8] sm:$0xff] }
 0x3a1   :  { %2513 = vmatprep.mubr.bf16.mxu0 %v2320_v40 }
 0x3a2   :  { %2514 = vmatmul.mubr.bf16.vlgmr.msra.gmra.mrb[36].mxu0 %v2319_v18 }
 0x3a5   :  { %v2322_v60 = vld [vmem:[#allocation5 + $0x18] sm:$0xff] }
 0x3ac   :  { %v2194_v45 = vpop.permute.xlu0 %2193 }
 0x3ad   :  { %v1908_v52 = vpop.permute.xlu1 %1907  ;;  %2216 = vst.msk [vmem:[#allocation5 + $0x20] sm:$0xff] %vm1081_vm15, %v2194_v45 }
 0x3ae   :  { %1929 = vst.msk [vmem:[#allocation5 + $0x30] sm:$0xff] %vm1016_vm14, %v1908_v52 }
 0x3b0   :  { %v2258_v59 = vpop.permute.xlu0 %2257 }
 0x3b1   :  { %v1972_v42 = vpop.permute.xlu1 %1971  ;;  %2280 = vst.msk [vmem:[#allocation5 + $0x20] sm:$0xff] %vm1146_vm0, %v2258_v59 }
 0x3b2   :  { %1993 = vst.msk [vmem:[#allocation5 + $0x30] sm:$0xff] %vm1081_vm15, %v1972_v42 }
 0x3b4   :  { %v2132_v56 = vpop.permute.xlu0 %2131 }
 0x3b5   :  { %2153 = vst.msk [vmem:[#allocation5 + $0x38] sm:$0xff] %vm1016_vm14, %v2132_v56  ;;  %v2036_v0 = vpop.permute.xlu1 %2035 }
 0x3b6   :  { %2057 = vst.msk [vmem:[#allocation5 + $0x30] sm:$0xff] %vm1146_vm0, %v2036_v0 }
 0x3b8   :  { %v2196_v39 = vpop.permute.xlu0 %2195  ;;  %v2323_v38 = vld [vmem:[#allocation5 + $0x20] sm:$0xff] }
 0x3b9   :  { %2217 = vst.msk [vmem:[#allocation5 + $0x38] sm:$0xff] %vm1081_vm15, %v2196_v39  ;;  %v1910_v23 = vpop.permute.xlu1 %1909  ;;  %2521 = vmatprep.mubr.bf16.mxu0 %v2323_v38 }
 0x3ba   :  { %1930 = vst.msk [vmem:[#allocation5 + $0x48] sm:$0xff] %vm1016_vm14, %v1910_v23  ;;  %2522 = vmatmul.mubr.bf16.gmra.mrb[40].mxu0 %v2322_v60 }
 0x3bc   :  { %v2260_v51 = vpop.permute.xlu0 %2259 }
 0x3bd   :  { %2281 = vst.msk [vmem:[#allocation5 + $0x38] sm:$0xff] %vm1146_vm0, %v2260_v51  ;;  %v1974_v48 = vpop.permute.xlu1 %1973  ;;  %v2325_v8 = vld [vmem:[#allocation5 + $0x30] sm:$0xff] }
 0x3be   :  { %1994 = vst.msk [vmem:[#allocation5 + $0x48] sm:$0xff] %vm1081_vm15, %v1974_v48 }
 0x3c0   :  { %v2134_v58 = vpop.permute.xlu0 %2133 }
 0x3c1   :  { %2154 = vst.msk [vmem:[#allocation5 + $0x50] sm:$0xff] %vm1016_vm14, %v2134_v58  ;;  %v2038_v3 = vpop.permute.xlu1 %2037 }
 0x3c2   :  { %2058 = vst.msk [vmem:[#allocation5 + $0x48] sm:$0xff] %vm1146_vm0, %v2038_v3 }
 0x3c4   :  { %v2198_v41 = vpop.permute.xlu0 %2197  ;;  %v2326_v14 = vld [vmem:[#allocation5 + $0x38] sm:$0xff] }
 0x3c5   :  { %2218 = vst.msk [vmem:[#allocation5 + $0x50] sm:$0xff] %vm1081_vm15, %v2198_v41  ;;  %v1912_v33 = vpop.permute.xlu1 %1911  ;;  %2529 = vmatprep.mubr.bf16.mxu0 %v2326_v14 }
 0x3c6   :  { %1931 = vst.msk [vmem:[#allocation5 + $0x60] sm:$0xff] %vm1016_vm14, %v1912_v33  ;;  %2530 = vmatmul.mubr.bf16.gmra.mrb[44].mxu0 %v2325_v8 }
 0x3c8   :  { %v2262_v27 = vpop.permute.xlu0 %2261 }
 0x3c9   :  { %2282 = vst.msk [vmem:[#allocation5 + $0x50] sm:$0xff] %vm1146_vm0, %v2262_v27  ;;  %v1976_v30 = vpop.permute.xlu1 %1975  ;;  %v2328_v22 = vld [vmem:[#allocation5 + $0x48] sm:$0xff] }
 0x3ca   :  { %1995 = vst.msk [vmem:[#allocation5 + $0x60] sm:$0xff] %vm1081_vm15, %v1976_v30 }
 0x3cc   :  { %v2136_v25 = vpop.permute.xlu0 %2135 }
 0x3cd   :  { %2155 = vst.msk [vmem:[#allocation5 + $0x68] sm:$0xff] %vm1016_vm14, %v2136_v25  ;;  %v2040_v13 = vpop.permute.xlu1 %2039 }
 0x3ce   :  { %2059 = vst.msk [vmem:[#allocation5 + $0x60] sm:$0xff] %vm1146_vm0, %v2040_v13 }
 0x3d0   :  { %v2329_v37 = vld [vmem:[#allocation5 + $0x50] sm:$0xff] }
 0x3d1   :  { %2537 = vmatprep.mubr.bf16.mxu0 %v2329_v37 }
 0x3d2   :  { %2538 = vmatmul.mubr.bf16.gmra.mrb[48].mxu0 %v2328_v22 }
 0x3d4   :  { %v2200_v34 = vpop.permute.xlu0 %2199 }
 0x3d5   :  { %v1914_v43 = vpop.permute.xlu1 %1913  ;;  %2219 = vst.msk [vmem:[#allocation5 + $0x68] sm:$0xff] %vm1081_vm15, %v2200_v34  ;;  %v2331_v18 = vld [vmem:[#allocation5 + $0x60] sm:$0xff] }
 0x3d6   :  { %1932 = vst.msk [vmem:[#allocation5 + $0x78] sm:$0xff] %vm1016_vm14, %v1914_v43 }
 0x3d8   :  { %v2264_v44 = vpop.permute.xlu0 %2263 }
 0x3d9   :  { %v1978_v46 = vpop.permute.xlu1 %1977  ;;  %2283 = vst.msk [vmem:[#allocation5 + $0x68] sm:$0xff] %vm1146_vm0, %v2264_v44 }
 0x3da   :  { %1996 = vst.msk [vmem:[#allocation5 + $0x78] sm:$0xff] %vm1081_vm15, %v1978_v46 }
 0x3dc   :  { %v2138_v47 = vpop.permute.xlu0 %2137 }
 0x3dd   :  { %2156 = vst.msk [vmem:[#allocation5 + $0x80] sm:$0xff] %vm1016_vm14, %v2138_v47  ;;  %v2042_v62 = vpop.permute.xlu1 %2041  ;;  %v5570_v47 = vld [vmem:[%s7507_s3 + $0x1a0] sm:$0xff]  }
 0x3de   :  { %2060 = vst.msk [vmem:[#allocation5 + $0x78] sm:$0xff] %vm1146_vm0, %v2042_v62  ;;  %5443 = vmatprep.subr.bf16.mxu0 %v5570_v47  ;;  %v5571_v62 = vld [vmem:[%s7507_s3 + $0x1a8] sm:$0xff]  }
 0x3df   :  { %5444 = vmatpush3.bf16.msra.mxu0 %v5570_v47 }
 0x3e0   :  { %v2332_v40 = vld [vmem:[#allocation5 + $0x68] sm:$0xff]  ;;  %5445 = vmatprep.subr.bf16.mxu0 %v5571_v62 }
 0x3e1   :  { %2545 = vmatprep.mubr.bf16.mxu0 %v2332_v40 }
 0x3e2   :  { %2546 = vmatmul.mubr.bf16.gmra.mrb[52].mxu0 %v2331_v18 }
 0x3e3   :  { %5446 = vmatpush3.bf16.msra.mxu0 %v5571_v62  ;;  %v5576_v62 = vld [vmem:[%s7507_s3 + $0x170] sm:$0xff]  }
 0x3e4   :  { %v2202_v45 = vpop.permute.xlu0 %2201 }
 0x3e5   :  { %v1916_v52 = vpop.permute.xlu1 %1915  ;;  %2220 = vst.msk [vmem:[#allocation5 + $0x80] sm:$0xff] %vm1081_vm15, %v2202_v45  ;;  %v2334_v60 = vld [vmem:[#allocation5 + $0x78] sm:$0xff] }
 0x3e6   :  { %1933 = vst.msk [vmem:[#allocation5 + $0x90] sm:$0xff] %vm1016_vm14, %v1916_v52 }
 0x3e8   :  { %v2266_v59 = vpop.permute.xlu0 %2265 }
 0x3e9   :  { %v1980_v42 = vpop.permute.xlu1 %1979  ;;  %2284 = vst.msk [vmem:[#allocation5 + $0x80] sm:$0xff] %vm1146_vm0, %v2266_v59 }
 0x3ea   :  { %1997 = vst.msk [vmem:[#allocation5 + $0x90] sm:$0xff] %vm1081_vm15, %v1980_v42 }
 0x3ec   :  { %v2140_v56 = vpop.permute.xlu0 %2139 }
 0x3ed   :  { %2157 = vst.msk [vmem:[#allocation5 + $0x98] sm:$0xff] %vm1016_vm14, %v2140_v56  ;;  %v2044_v0 = vpop.permute.xlu1 %2043 }
 0x3ee   :  { %2061 = vst.msk [vmem:[#allocation5 + $0x90] sm:$0xff] %vm1146_vm0, %v2044_v0 }
 0x3f0   :  { %v2204_v39 = vpop.permute.xlu0 %2203  ;;  %v2335_v38 = vld [vmem:[#allocation5 + $0x80] sm:$0xff] }
 0x3f1   :  { %2221 = vst.msk [vmem:[#allocation5 + $0x98] sm:$0xff] %vm1081_vm15, %v2204_v39  ;;  %v1918_v23 = vpop.permute.xlu1 %1917  ;;  %2553 = vmatprep.mubr.bf16.mxu0 %v2335_v38  ;;  %v6718_v38 = vld [vmem:[%s7509_s4 + $0x1] ss:$0 sm:$0xff] }
 0x3f2   :  { %1934 = vst.msk [vmem:[#allocation5 + $0xa8] sm:$0xff] %vm1016_vm14, %v1918_v23  ;;  %2554 = vmatmul.mubr.bf16.gmra.mrb[56].mxu0 %v2334_v60 }
 0x3f4   :  { %v2268_v51 = vpop.permute.xlu0 %2267 }
 0x3f5   :  { %2285 = vst.msk [vmem:[#allocation5 + $0x98] sm:$0xff] %vm1146_vm0, %v2268_v51  ;;  %v1982_v48 = vpop.permute.xlu1 %1981  ;;  %v2337_v33 = vld [vmem:[#allocation5 + $0x90] sm:$0xff] }
 0x3f6   :  { %1998 = vst.msk [vmem:[#allocation5 + $0xa8] sm:$0xff] %vm1081_vm15, %v1982_v48 }
 0x3f8   :  { %v2142_v58 = vpop.permute.xlu0 %2141 }
 0x3f9   :  { %2158 = vst.msk [vmem:[#allocation5 + $0xb0] sm:$0xff] %vm1016_vm14, %v2142_v58  ;;  %v2046_v3 = vpop.permute.xlu1 %2045 }
 0x3fa   :  { %2062 = vst.msk [vmem:[#allocation5 + $0xa8] sm:$0xff] %vm1146_vm0, %v2046_v3 }
 0x3fc   :  { %v2206_v41 = vpop.permute.xlu0 %2205  ;;  %v2338_v14 = vld [vmem:[#allocation5 + $0x98] sm:$0xff] }
 0x3fd   :  { %2222 = vst.msk [vmem:[#allocation5 + $0xb0] sm:$0xff] %vm1081_vm15, %v2206_v41  ;;  %2561 = vmatprep.mubr.bf16.mxu0 %v2338_v14 }
 0x3fe   :  { %2562 = vmatmul.mubr.bf16.gmra.mrb[60].mxu0 %v2337_v33 }
 0x400   :  { %v2270_v8 = vpop.permute.xlu0 %2269 }
 0x401   :  { %2286 = vst.msk [vmem:[#allocation5 + $0xb0] sm:$0xff] %vm1146_vm0, %v2270_v8  ;;  %v2340_v30 = vld [vmem:[#allocation5 + $0xa8] sm:$0xff] }
 0x408   :  { %v2341_v27 = vld [vmem:[#allocation5 + $0xb0] sm:$0xff] }
 0x409   :  { %2569 = vmatprep.mubr.bf16.mxu0 %v2341_v27 }
 0x40a   :  { %2570 = vmatmul.mubr.bf16.gmra.mrb[64].mxu0 %v2340_v30 }
 0x417   :  { %v6681_v25 = vpop.f32.mrb[28].mxu1 }
 0x418   :  { %v2612_v13 = vpop.f32.mrb[29].mxu1 }
 0x419   :  { %v6683_v37 = vpop.f32.mrb[30].mxu1 }
 0x41a   :  { %v2615_v22 = vpop.f32.mrb[31].mxu1 }
 0x420   :  { %v6685_v34 = vpop.f32.mrb[32].mxu1 }
 0x421   :  { %v6687_v43 = vpop.f32.mrb[33].mxu1 }
 0x422   :  { %v6689_v44 = vpop.f32.mrb[34].mxu1 }
 0x423   :  { %v6691_v46 = vpop.f32.mrb[35].mxu1 }
 0x44f   :  { %v6699_v40 = vpop.f32.mrb[36].mxu1 }
 0x450   :  { %v6701_v18 = vpop.f32.mrb[37].mxu1 }
 0x451   :  { %v6703_v45 = vpop.f32.mrb[38].mxu1 }
 0x452   :  { %v6705_v52 = vpop.f32.mrb[39].mxu1 }
 0x457   :  { %v6707_v59 = vpop.f32.mrb[40].mxu1 }
 0x458   :  { %v6709_v42 = vpop.f32.mrb[41].mxu1 }
 0x459   :  { %v6711_v56 = vpop.f32.mrb[42].mxu1 }
 0x45a   :  { %v6713_v0 = vpop.f32.mrb[43].mxu1 }
 0x475   :  { %v5165_v39 = vpop.f32.mrb[36].mxu0 }
 0x476   :  { %v5166_v23 = vpop.f32.mrb[37].mxu0 }
 0x477   :  { %v5167_v60 = vadd.f32 %v5166_v23, %v5165_v39  ;;  %v5168_v51 = vpop.f32.mrb[38].mxu0 }
 0x478   :  { %v5169_v48 = vpop.f32.mrb[39].mxu0 }
 0x479   :  { %v2516_v58 = vadd.f32 %v5167_v60, %v6718_v38  ;;  %v5170_v3 = vadd.f32 %v5169_v48, %v5168_v51  ;;  %v2858_v51 = vld [vmem:[#allocation3 + $0x2] sm:$0xff] }
 0x47b   :  { %v2613_v41 = vadd.f32 %v2612_v13, %v2516_v58  ;;  %v2519_v14 = vadd.f32 %v5170_v3, %v6718_v38  ;;  %v5572_v13 = vld [vmem:[%s7507_s3 + $0x160] sm:$0xff]   ;;  %v5577_v58 = vld [vmem:[%s7507_s3 + $0x130] sm:$0xff]   ;;  %v5578_v3 = vld [vmem:[%s7507_s3 + $0x178] sm:$0xff]  }
 0x47c   :  { %5223 = vmatprep.subr.bf16.mxu1 %v5572_v13 }
 0x47d   :  { %v6724_v33 = vadd.f32 %v2613_v41, %v858_v31  ;;  %v2616_v8 = vadd.f32 %v2615_v22, %v2519_v14  ;;  %v2794_v31 = vld [vmem:[#allocation3 + $0x1] sm:$0xff]  ;;  %5224 = vmatpush3.bf16.msra.mxu1 %v5573_v26 }
 0x47e   :  { %v5575_v22 = vld [vmem:[%s7507_s3 + $0x128] sm:$0xff]  }
 0x47f   :  { %v2691_v27 = vmax.f32 %v6724_v33, 0.0  ;;  %v6729_v30 = vadd.f32 %v2616_v8, %v859_v36  ;;  %v5574_v36 = vld [vmem:[%s7507_s3 + $0x168] sm:$0xff]  }
 0x480   :  { %5225 = vmatprep.subr.bf16.mxu1 %v5574_v36  ;;  %v5579_v36 = vld [vmem:[%s7507_s3 + $0x138] sm:$0xff]  }
 0x481   :  { %2707 = vst.msk [vmem:[#allocation3 + $0x11] sm:$0xff] %vm69_vm6, %v2691_v27  ;;  %v7513_v47 = vmax.f32 %v6729_v30, 0.0  ;;  %5226 = vmatpush3.bf16.msra.mxu1 %v5575_v22 }
 0x482   :  { %5227 = vmatprep.subr.bf16.mxu1 %v5576_v62 }
 0x483   :  { %2708 = vst.msk [vmem:[#allocation3 + $0x21] sm:$0xff] %vm69_vm6, %v7513_v47 }
 0x485   :  { %5228 = vmatpush3.bf16.msra.mxu1 %v5577_v58 }
 0x486   :  { %5229 = vmatprep.subr.bf16.mxu1 %v5578_v3 }
 0x488   :  { %v2795_v39 = vld [vmem:[#allocation3 + $0x11] sm:$0xff] }
 0x489   :  { %v2922_v23 = vld [vmem:[#allocation3 + $0x10] sm:$0xff]  ;;  %v2810_v60 = vpack.c.bf16 %v2795_v39, %v2794_v31  ;;  %5230 = vmatpush3.bf16.msra.mxu1 %v5579_v36  ;;  %v5583_v36 = vld [vmem:[%s7507_s3 + $0x148] sm:$0xff]  }
 0x48a   :  { %v2778_v48 = vpack.c.bf16 %v2922_v23, %v2762_v32  ;;  %v3018_v41 = vld [vmem:[#allocation3 + $0x12] sm:$0xff]  ;;  %v6759_v14 = vld [vmem:[#allocation3 + $0x22] sm:$0xff] }
 0x48b   :  { %v6761_v8 = vld [vmem:[#allocation3 + $0x21] sm:$0xff]  ;;  %2826 = vrot.lane.b32.xlu1 %v2810_v60, %s5618_s22  ;;  %v3034_v13 = vpack.c.bf16 %v6759_v14, %v3018_v41  ;;  %v2874_v32 = vpack.c.bf16 %v3018_v41, %v2858_v51 }
 0x48c   :  { %2786 = vst.msk [vmem:[#allocation5] sm:$0xff] %vm69_vm6, %v2778_v48  ;;  %v3002_v26 = vpack.c.bf16 %v6761_v8, %v2795_v39  ;;  %v2923_v62 = vld [vmem:[#allocation3 + $0x20] sm:$0xff] }
 0x48d   :  { %v5171_v31 = vpop.f32.mrb[40].mxu0  ;;  %3050 = vrot.lane.b32.xlu0 %v3034_v13, %s5618_s22  ;;  %v5580_v60 = vld [vmem:[%s7507_s3 + $0x180] sm:$0xff]   ;;  %v2938_v58 = vpack.c.bf16 %v2923_v62, %v2922_v23  ;;  %v5582_v23 = vld [vmem:[%s7507_s3 + $0x188] sm:$0xff]  }
 0x48e   :  { %3010 = vst.msk [vmem:[#allocation5 + $0x8] sm:$0xff] %vm69_vm6, %v3002_v26  ;;  %v5172_v22 = vpop.f32.mrb[41].mxu0  ;;  %v5581_v26 = vld [vmem:[%s7507_s3 + $0x140] sm:$0xff]   ;;  %5231 = vmatprep.subr.bf16.mxu1 %v5580_v60 }
 0x48f   :  { %v5173_v48 = vadd.f32 %v5172_v22, %v5171_v31  ;;  %v5174_v39 = vpop.f32.mrb[42].mxu0  ;;  %2890 = vrot.lane.b32.xlu1 %v2874_v32, %s5619_s29  ;;  %5232 = vmatpush3.bf16.msra.mxu1 %v5581_v26 }
 0x490   :  { %v5175_v13 = vpop.f32.mrb[43].mxu0  ;;  %5233 = vmatprep.subr.bf16.mxu1 %v5582_v23 }
 0x491   :  { %v2524_v51 = vadd.f32 %v5173_v48, %v6718_v38  ;;  %v5176_v41 = vadd.f32 %v5175_v13, %v5174_v39 }
 0x493   :  { %v2621_v3 = vadd.f32 %v6681_v25, %v2524_v51  ;;  %v2527_v47 = vadd.f32 %v5176_v41, %v6718_v38  ;;  %2954 = vrot.lane.b32.xlu1 %v2938_v58, %s5620_s9  ;;  %5234 = vmatpush3.bf16.msra.mxu1 %v5583_v36  ;;  %v5586_v51 = vld [vmem:[%s7507_s3 + $0x198] sm:$0xff]  }
 0x494   :  { %v5587_v41 = vld [vmem:[%s7507_s3 + $0x158] sm:$0xff]  }
 0x495   :  { %v6785_v31 = vadd.f32 %v2621_v3, %v860_v28  ;;  %v2624_v32 = vadd.f32 %v6683_v37, %v2527_v47  ;;  %v5584_v47 = vld [vmem:[%s7507_s3 + $0x190] sm:$0xff]  }
 0x496   :  { %5235 = vmatprep.subr.bf16.mxu1 %v5584_v47 }
 0x497   :  { %v2693_v25 = vmax.f32 %v6785_v31, 0.0  ;;  %v6797_v22 = vadd.f32 %v2624_v32, %v861_v35  ;;  %5236 = vmatpush3.bf16.msra.mxu1 %v5585_v29 }
 0x498   :  { %5237 = vmatprep.subr.bf16.mxu1 %v5586_v51 }
 0x499   :  { %2709 = vst.msk [vmem:[#allocation3 + $0x31] sm:$0xff] %vm69_vm6, %v2693_v25  ;;  %v2694_v24 = vmax.f32 %v6797_v22, 0.0  ;;  %v5177_v28 = vpop.f32.mrb[44].mxu0 }
 0x49a   :  { %v5178_v37 = vpop.f32.mrb[45].mxu0 }
 0x49b   :  { %2710 = vst.msk [vmem:[#allocation3 + $0x41] sm:$0xff] %vm69_vm6, %v2694_v24  ;;  %v5179_v35 = vadd.f32 %v5178_v37, %v5177_v28  ;;  %v5180_v60 = vpop.f32.mrb[46].mxu0  ;;  %5238 = vmatpush3.bf16.msra.mxu1 %v5587_v41 }
 0x49c   :  { %v5181_v48 = vpop.f32.mrb[47].mxu0 }
 0x49d   :  { %v2532_v39 = vadd.f32 %v5179_v35, %v6718_v38  ;;  %v5182_v13 = vadd.f32 %v5181_v48, %v5180_v60 }
 0x49f   :  { %v2629_v58 = vadd.f32 %v6687_v43, %v2532_v39  ;;  %v2535_v26 = vadd.f32 %v5182_v13, %v6718_v38 }
 0x4a0   :  { %v3083_v3 = vld [vmem:[#allocation3 + $0x30] sm:$0xff] }
 0x4a1   :  { %v2797_v32 = vld [vmem:[#allocation3 + $0x31] sm:$0xff]  ;;  %v6823_v36 = vadd.f32 %v2629_v58, %v862_v17  ;;  %v2632_v28 = vadd.f32 %v6691_v46, %v2535_v26  ;;  %v3098_v37 = vpack.c.bf16 %v3083_v3, %v2923_v62 }
 0x4a2   :  { %v2861_v23 = vld [vmem:[#allocation3 + $0x32] sm:$0xff]  ;;  %v2811_v47 = vpack.c.bf16 %v2797_v32, %v6761_v8  ;;  %v2798_v35 = vld [vmem:[#allocation3 + $0x41] sm:$0xff] }
 0x4a3   :  { %v2875_v29 = vpack.c.bf16 %v2861_v23, %v6759_v14  ;;  %v2695_v43 = vmax.f32 %v6823_v36, 0.0  ;;  %v6831_v60 = vadd.f32 %v2632_v28, %v863_v21  ;;  %3114 = vrot.lane.b32.xlu0 %v3098_v37, %s5619_s29  ;;  %2787 = vst.msk [vmem:[#allocation5 + $0x18] sm:$0xff] %vm69_vm6, %v3098_v37  ;;  %v3003_v57 = vpack.c.bf16 %v2798_v35, %v2797_v32  ;;  %v3021_v19 = vld [vmem:[#allocation3 + $0x42] sm:$0xff] }
 0x4a4   :  { %2828 = vrot.lane.b32.xlu1 %v2811_v47, %s5618_s22  ;;  %v2925_v21 = vld [vmem:[#allocation3 + $0x40] sm:$0xff]  ;;  %v3035_v51 = vpack.c.bf16 %v3021_v19, %v2861_v23 }
 0x4a5   :  { %3234 = vst.msk [vmem:[#allocation5 + $0x10] sm:$0xff] %vm69_vm6, %v2875_v29  ;;  %2711 = vst.msk [vmem:[#allocation3 + $0x51] sm:$0xff] %vm69_vm6, %v2695_v43  ;;  %v2696_v17 = vmax.f32 %v6831_v60, 0.0  ;;  %v5183_v46 = vpop.f32.mrb[48].mxu0  ;;  %v2939_v41 = vpack.c.bf16 %v2925_v21, %v3083_v3 }
 0x4a6   :  { %v5184_v14 = vpop.f32.mrb[49].mxu0  ;;  %3011 = vst.msk [vmem:[#allocation5 + $0x20] sm:$0xff] %vm69_vm6, %v3003_v57 }
 0x4a7   :  { %2712 = vst.msk [vmem:[#allocation3 + $0x61] sm:$0xff] %vm69_vm6, %v2696_v17  ;;  %v5185_v8 = vadd.f32 %v5184_v14, %v5183_v46  ;;  %v5186_v62 = vpop.f32.mrb[50].mxu0  ;;  %3178 = vrot.lane.b32.xlu0 %v2811_v47, %s5620_s9 }
 0x4a8   :  { %2892 = vrot.lane.b32.xlu1 %v2875_v29, %s5619_s29  ;;  %v5187_v48 = vpop.f32.mrb[51].mxu0 }
 0x4a9   :  { %v2540_v39 = vadd.f32 %v5185_v8, %v6718_v38  ;;  %v5188_v13 = vadd.f32 %v5187_v48, %v5186_v62 }
 0x4ab   :  { %v2637_v58 = vadd.f32 %v6685_v34, %v2540_v39  ;;  %v2543_v26 = vadd.f32 %v5188_v13, %v6718_v38  ;;  %3052 = vrot.lane.b32.xlu0 %v3035_v51, %s5618_s22 }
 0x4ac   :  { %v3244_v32 = vld [vmem:[#allocation5 + $0x10] sm:$0xff]  ;;  %2956 = vrot.lane.b32.xlu1 %v2939_v41, %s5620_s9 }
 0x4ad   :  { %5447 = vmatprep.mubr.msk.bf16.mxu0 %vm69_vm6, %v3244_v32  ;;  %v3085_v28 = vld [vmem:[#allocation3 + $0x50] sm:$0xff]  ;;  %v6855_v29 = vadd.f32 %v2637_v58, %v864_v15  ;;  %v2640_v3 = vadd.f32 %v6689_v44, %v2543_v26 }
 0x4ae   :  { %v2799_v37 = vld [vmem:[#allocation3 + $0x51] sm:$0xff]  ;;  %v3099_v23 = vpack.c.bf16 %v3085_v28, %v2925_v21  ;;  %v2800_v46 = vld [vmem:[#allocation3 + $0x61] sm:$0xff] }
 0x4af   :  { %v2863_v47 = vld [vmem:[#allocation3 + $0x52] sm:$0xff]  ;;  %v2812_v34 = vpack.c.bf16 %v2799_v37, %v2798_v35  ;;  %v2697_v14 = vmax.f32 %v6855_v29, 0.0  ;;  %v6861_v8 = vadd.f32 %v2640_v3, %v865_v20  ;;  %v3004_v12 = vpack.c.bf16 %v2800_v46, %v2799_v37  ;;  %v3023_v44 = vld [vmem:[#allocation3 + $0x62] sm:$0xff] }
 0x4b0   :  { %v2876_v57 = vpack.c.bf16 %v2863_v47, %v3021_v19  ;;  %3116 = vrot.lane.b32.xlu0 %v3099_v23, %s5619_s29  ;;  %2788 = vst.msk [vmem:[#allocation5 + $0x30] sm:$0xff] %vm69_vm6, %v3099_v23  ;;  %v2927_v35 = vld [vmem:[#allocation3 + $0x60] sm:$0xff]  ;;  %v3036_v20 = vpack.c.bf16 %v3023_v44, %v2863_v47 }
 0x4b1   :  { %2830 = vrot.lane.b32.xlu1 %v2812_v34, %s5618_s22  ;;  %2713 = vst.msk [vmem:[#allocation3 + $0x71] sm:$0xff] %vm69_vm6, %v2697_v14  ;;  %v2698_v15 = vmax.f32 %v6861_v8, 0.0  ;;  %3012 = vst.msk [vmem:[#allocation5 + $0x38] sm:$0xff] %vm69_vm6, %v3004_v12  ;;  %v2940_v19 = vpack.c.bf16 %v2927_v35, %v3085_v28  ;;  %v3217_v28 = vld [vmem:[#allocation3 + $0x92] sm:$0xff] }
 0x4b2   :  { %3235 = vst.msk [vmem:[#allocation5 + $0x28] sm:$0xff] %vm69_vm6, %v2876_v57 }
 0x4b3   :  { %2714 = vst.msk [vmem:[#allocation3 + $0x81] sm:$0xff] %vm69_vm6, %v2698_v15 }
 0x4b4   :  { %3180 = vrot.lane.b32.xlu0 %v2812_v34, %s5620_s9 }
 0x4b5   :  { %2894 = vrot.lane.b32.xlu1 %v2876_v57, %s5619_s29  ;;  %v5189_v16 = vpop.f32.mrb[52].mxu0 }
 0x4b6   :  { %v5190_v21 = vpop.f32.mrb[53].mxu0 }
 0x4b7   :  { %v5191_v62 = vadd.f32 %v5190_v21, %v5189_v16  ;;  %v5192_v48 = vpop.f32.mrb[54].mxu0  ;;  %v3089_v21 = vld [vmem:[#allocation3 + $0x90] sm:$0xff] }
 0x4b8   :  { %3054 = vrot.lane.b32.xlu0 %v3036_v20, %s5618_s22  ;;  %v5193_v13 = vpop.f32.mrb[55].mxu0  ;;  %v3087_v51 = vld [vmem:[#allocation3 + $0x70] sm:$0xff] }
 0x4b9   :  { %v3247_v39 = vld [vmem:[#allocation5 + $0x28] sm:$0xff]  ;;  %2958 = vrot.lane.b32.xlu1 %v2940_v19, %s5620_s9  ;;  %v2801_v41 = vld [vmem:[#allocation3 + $0x71] sm:$0xff]  ;;  %v2548_v26 = vadd.f32 %v5191_v62, %v6718_v38  ;;  %v5194_v32 = vadd.f32 %v5193_v13, %v5192_v48  ;;  %v3100_v37 = vpack.c.bf16 %v3087_v51, %v2927_v35 }
 0x4ba   :  { %5448 = vmatmul.mubr.msk.bf16.vlgmr.msra.gmra.mrb[68].mxu0 %vm69_vm6, %v3247_v39  ;;  %v2865_v58 = vld [vmem:[#allocation3 + $0x72] sm:$0xff]  ;;  %v2813_v47 = vpack.c.bf16 %v2801_v41, %v2800_v46  ;;  %v3025_v23 = vld [vmem:[#allocation3 + $0x82] sm:$0xff] }
 0x4bb   :  { %v2877_v3 = vpack.c.bf16 %v2865_v58, %v3023_v44  ;;  %v3152_v34 = vld [vmem:[#allocation3 + $0x81] sm:$0xff]  ;;  %v2645_v57 = vadd.f32 %v6701_v18, %v2548_v26  ;;  %v2551_v12 = vadd.f32 %v5194_v32, %v6718_v38  ;;  %2789 = vst.msk [vmem:[#allocation5 + $0x48] sm:$0xff] %vm69_vm6, %v3100_v37  ;;  %v3229_v16 = vpack.c.bf16 %v3217_v28, %v3025_v23  ;;  %v3153_v13 = vld [vmem:[#allocation3 + $0x91] sm:$0xff] }
 0x4bc   :  { %3118 = vrot.lane.b32.xlu0 %v3100_v37, %s5619_s29  ;;  %v3005_v35 = vpack.c.bf16 %v3152_v34, %v2801_v41  ;;  %v2929_v20 = vld [vmem:[#allocation3 + $0x80] sm:$0xff] }
 0x4bd   :  { %2832 = vrot.lane.b32.xlu1 %v2813_v47, %s5618_s22  ;;  %3236 = vst.msk [vmem:[#allocation5 + $0x40] sm:$0xff] %vm69_vm6, %v2877_v3  ;;  %v6889_v46 = vadd.f32 %v2645_v57, %v866_v53  ;;  %v2648_v44 = vadd.f32 %v6705_v52, %v2551_v12  ;;  %3237 = vst.msk [vmem:[#allocation5 + $0x58] sm:$0xff] %vm69_vm6, %v3229_v16  ;;  %v3037_v53 = vpack.c.bf16 %v3025_v23, %v2865_v58  ;;  %v2770_v26 = vld [vmem:[#allocation3 + $0xa0] sm:$0xff] }
 0x4be   :  { %3013 = vst.msk [vmem:[#allocation5 + $0x50] sm:$0xff] %vm69_vm6, %v3005_v35  ;;  %v2941_v52 = vpack.c.bf16 %v2929_v20, %v3087_v51  ;;  %v3101_v48 = vpack.c.bf16 %v3089_v21, %v2929_v20  ;;  %v2802_v51 = vld [vmem:[#allocation3 + $0xa1] sm:$0xff]  ;;  %v3165_v23 = vpack.c.bf16 %v3153_v13, %v3152_v34 }
 0x4bf   :  { %v2699_v18 = vmax.f32 %v6889_v46, 0.0  ;;  %v6896_v19 = vadd.f32 %v2648_v44, %v867_v10  ;;  %v2866_v12 = vld [vmem:[#allocation3 + $0xa2] sm:$0xff] }
 0x4c0   :  { %3182 = vrot.lane.b32.xlu0 %v2813_v47, %s5620_s9 }
 0x4c1   :  { %2896 = vrot.lane.b32.xlu1 %v2877_v3, %s5619_s29  ;;  %2715 = vst.msk [vmem:[#allocation3 + $0xb1] sm:$0xff] %vm69_vm6, %v2699_v18  ;;  %v2700_v4 = vmax.f32 %v6896_v19, 0.0 }
 0x4c3   :  { %2716 = vst.msk [vmem:[#allocation3 + $0xc1] sm:$0xff] %vm69_vm6, %v2700_v4 }
 0x4c4   :  { %v3250_v54 = vld [vmem:[#allocation5 + $0x40] sm:$0xff]  ;;  %3056 = vrot.lane.b32.xlu0 %v3037_v53, %s5618_s22  ;;  %v3253_v62 = vld [vmem:[#allocation5 + $0x58] sm:$0xff] }
 0x4c5   :  { %2960 = vrot.lane.b32.xlu1 %v2941_v52, %s5620_s9  ;;  %5451 = vmatprep.mubr.msk.bf16.mxu0 %vm69_vm6, %v3250_v54  ;;  %v5195_v10 = vpop.f32.mrb[56].mxu0 }
 0x4c6   :  { %5452 = vmatmul.mubr.msk.bf16.gmra.mrb[72].mxu0 %vm69_vm6, %v3253_v62  ;;  %v5196_v39 = vpop.f32.mrb[57].mxu0 }
 0x4c7   :  { %v5197_v41 = vadd.f32 %v5196_v39, %v5195_v10  ;;  %v5198_v58 = vpop.f32.mrb[58].mxu0 }
 0x4c8   :  { %3120 = vrot.lane.b32.xlu0 %v3101_v48, %s5619_s29  ;;  %v5199_v32 = vpop.f32.mrb[59].mxu0  ;;  %v2803_v37 = vld [vmem:[#allocation3 + $0xb1] sm:$0xff] }
 0x4c9   :  { %v2930_v47 = vld [vmem:[#allocation3 + $0xb0] sm:$0xff]  ;;  %v2556_v28 = vadd.f32 %v5197_v41, %v6718_v38  ;;  %v5200_v3 = vadd.f32 %v5199_v32, %v5198_v58  ;;  %v2814_v57 = vpack.c.bf16 %v2803_v37, %v2802_v51 }
 0x4ca   :  { %v3026_v16 = vld [vmem:[#allocation3 + $0xb2] sm:$0xff]  ;;  %v3027_v44 = vld [vmem:[#allocation3 + $0xc2] sm:$0xff]  ;;  %v2782_v20 = vpack.c.bf16 %v2930_v47, %v2770_v26 }
 0x4cb   :  { %v2804_v35 = vld [vmem:[#allocation3 + $0xc1] sm:$0xff]  ;;  %v2653_v53 = vadd.f32 %v6699_v40, %v2556_v28  ;;  %v2559_v52 = vadd.f32 %v5200_v3, %v6718_v38  ;;  %2834 = vrot.lane.b32.xlu1 %v2814_v57, %s5618_s22  ;;  %v3038_v10 = vpack.c.bf16 %v3027_v44, %v3026_v16  ;;  %v2878_v62 = vpack.c.bf16 %v3026_v16, %v2866_v12 }
 0x4cc   :  { %3184 = vrot.lane.b32.xlu0 %v3165_v23, %s5620_s9  ;;  %2790 = vst.msk [vmem:[#allocation5 + $0x60] sm:$0xff] %vm69_vm6, %v2782_v20  ;;  %v3006_v21 = vpack.c.bf16 %v2804_v35, %v2803_v37  ;;  %v2931_v48 = vld [vmem:[#allocation3 + $0xc0] sm:$0xff] }
 0x4cd   :  { %v6921_v34 = vadd.f32 %v2653_v53, %v868_v7  ;;  %v2656_v54 = vadd.f32 %v6703_v45, %v2559_v52  ;;  %v2942_v45 = vpack.c.bf16 %v2931_v48, %v2930_v47 }
 0x4ce   :  { %3014 = vst.msk [vmem:[#allocation5 + $0x68] sm:$0xff] %vm69_vm6, %v3006_v21 }
 0x4cf   :  { %v2701_v40 = vmax.f32 %v6921_v34, 0.0  ;;  %v6928_v39 = vadd.f32 %v2656_v54, %v869_v9  ;;  %2898 = vrot.lane.b32.xlu1 %v2878_v62, %s5619_s29 }
 0x4d0   :  { %3058 = vrot.lane.b32.xlu0 %v3038_v10, %s5618_s22 }
 0x4d1   :  { %2717 = vst.msk [vmem:[#allocation3 + $0xd1] sm:$0xff] %vm69_vm6, %v2701_v40  ;;  %v2702_v2 = vmax.f32 %v6928_v39, 0.0  ;;  %v5201_v7 = vpop.f32.mrb[60].mxu0 }
 0x4d2   :  { %v5202_v13 = vpop.f32.mrb[61].mxu0 }
 0x4d3   :  { %2718 = vst.msk [vmem:[#allocation3 + $0xe1] sm:$0xff] %vm69_vm6, %v2702_v2  ;;  %v5203_v55 = vadd.f32 %v5202_v13, %v5201_v7  ;;  %v5204_v9 = vpop.f32.mrb[62].mxu0  ;;  %2962 = vrot.lane.b32.xlu1 %v2942_v45, %s5620_s9 }
 0x4d4   :  { %v5205_v51 = vpop.f32.mrb[63].mxu0 }
 0x4d5   :  { %v2564_v41 = vadd.f32 %v5203_v55, %v6718_v38  ;;  %v5206_v58 = vadd.f32 %v5205_v51, %v5204_v9 }
 0x4d7   :  { %v2661_v26 = vadd.f32 %v6709_v42, %v2564_v41  ;;  %v2567_v32 = vadd.f32 %v5206_v58, %v6718_v38 }
 0x4d8   :  { %v3091_v37 = vld [vmem:[#allocation3 + $0xd0] sm:$0xff] }
 0x4d9   :  { %v2805_v28 = vld [vmem:[#allocation3 + $0xd1] sm:$0xff]  ;;  %v6945_v3 = vadd.f32 %v2661_v26, %v870_v5  ;;  %v2664_v23 = vadd.f32 %v6713_v0, %v2567_v32  ;;  %v3102_v57 = vpack.c.bf16 %v3091_v37, %v2931_v48 }
 0x4da   :  { %v2869_v47 = vld [vmem:[#allocation3 + $0xd2] sm:$0xff]  ;;  %v2815_v12 = vpack.c.bf16 %v2805_v28, %v2804_v35  ;;  %v2806_v20 = vld [vmem:[#allocation3 + $0xe1] sm:$0xff] }
 0x4db   :  { %v2879_v16 = vpack.c.bf16 %v2869_v47, %v3027_v44  ;;  %v2703_v53 = vmax.f32 %v6945_v3, 0.0  ;;  %v6951_v42 = vadd.f32 %v2664_v23, %v871_v11  ;;  %3122 = vrot.lane.b32.xlu0 %v3102_v57, %s5619_s29  ;;  %2791 = vst.msk [vmem:[#allocation5 + $0x78] sm:$0xff] %vm69_vm6, %v3102_v57  ;;  %v3007_v63 = vpack.c.bf16 %v2806_v20, %v2805_v28  ;;  %v3029_v6 = vld [vmem:[#allocation3 + $0xe2] sm:$0xff]  ;;  %v3225_v57 = vld [vmem:[#allocation3 + $0x132] sm:$0xff] }
 0x4dc   :  { %2836 = vrot.lane.b32.xlu1 %v2815_v12, %s5618_s22  ;;  %v2933_v11 = vld [vmem:[#allocation3 + $0xe0] sm:$0xff]  ;;  %v3039_v62 = vpack.c.bf16 %v3029_v6, %v2869_v47 }
 0x4dd   :  { %3238 = vst.msk [vmem:[#allocation5 + $0x70] sm:$0xff] %vm69_vm6, %v2879_v16  ;;  %2719 = vst.msk [vmem:[#allocation3 + $0xf1] sm:$0xff] %vm69_vm6, %v2703_v53  ;;  %v7516_v5 = vmax.f32 %v6951_v42, 0.0  ;;  %v5207_v0 = vpop.f32.mrb[64].mxu0  ;;  %v2943_v48 = vpack.c.bf16 %v2933_v11, %v3091_v37 }
 0x4de   :  { %v5208_v44 = vpop.f32.mrb[65].mxu0  ;;  %3015 = vst.msk [vmem:[#allocation5 + $0x80] sm:$0xff] %vm69_vm6, %v3007_v63 }
 0x4df   :  { %2720 = vst.msk [vmem:[#allocation3 + $0x101] sm:$0xff] %vm69_vm6, %v7516_v5  ;;  %v5209_v35 = vadd.f32 %v5208_v44, %v5207_v0  ;;  %v5210_v52 = vpop.f32.mrb[66].mxu0  ;;  %3186 = vrot.lane.b32.xlu0 %v2815_v12, %s5620_s9 }
 0x4e0   :  { %2900 = vrot.lane.b32.xlu1 %v2879_v16, %s5619_s29  ;;  %v5211_v21 = vpop.f32.mrb[67].mxu0 }
 0x4e1   :  { %v2572_v54 = vadd.f32 %v5209_v35, %v6718_v38  ;;  %v5212_v10 = vadd.f32 %v5211_v21, %v5210_v52 }
 0x4e3   :  { %v2669_v7 = vadd.f32 %v6707_v59, %v2572_v54  ;;  %v2575_v45 = vadd.f32 %v5212_v10, %v6718_v38  ;;  %3060 = vrot.lane.b32.xlu0 %v3039_v62, %s5618_s22 }
 0x4e4   :  { %v3256_v13 = vld [vmem:[#allocation5 + $0x70] sm:$0xff]  ;;  %2964 = vrot.lane.b32.xlu1 %v2943_v48, %s5620_s9 }
 0x4e5   :  { %5455 = vmatprep.mubr.msk.bf16.mxu0 %vm69_vm6, %v3256_v13  ;;  %v3093_v55 = vld [vmem:[#allocation3 + $0xf0] sm:$0xff]  ;;  %v6975_v41 = vadd.f32 %v2669_v7, %v872_v50  ;;  %v2672_v58 = vadd.f32 %v6711_v56, %v2575_v45 }
 0x4e6   :  { %v2807_v9 = vld [vmem:[#allocation3 + $0xf1] sm:$0xff]  ;;  %v3103_v26 = vpack.c.bf16 %v3093_v55, %v2933_v11  ;;  %v2808_v38 = vld [vmem:[#allocation3 + $0x101] sm:$0xff] }
 0x4e7   :  { %v2871_v51 = vld [vmem:[#allocation3 + $0xf2] sm:$0xff]  ;;  %v2816_v59 = vpack.c.bf16 %v2807_v9, %v2806_v20  ;;  %v7515_v37 = vmax.f32 %v6975_v41, 0.0  ;;  %v6981_v28 = vadd.f32 %v2672_v58, %v873_v49  ;;  %v3008_v61 = vpack.c.bf16 %v2808_v38, %v2807_v9  ;;  %v3031_v56 = vld [vmem:[#allocation3 + $0x102] sm:$0xff] }
 0x4e8   :  { %v2880_v32 = vpack.c.bf16 %v2871_v51, %v3029_v6  ;;  %3124 = vrot.lane.b32.xlu0 %v3103_v26, %s5619_s29  ;;  %2792 = vst.msk [vmem:[#allocation5 + $0x90] sm:$0xff] %vm69_vm6, %v3103_v26  ;;  %v2935_v47 = vld [vmem:[#allocation3 + $0x100] sm:$0xff]  ;;  %v3040_v1 = vpack.c.bf16 %v3031_v56, %v2871_v51  ;;  %v3097_v48 = vld [vmem:[#allocation3 + $0x130] sm:$0xff] }
 0x4e9   :  { %2838 = vrot.lane.b32.xlu1 %v2816_v59, %s5618_s22  ;;  %2721 = vst.msk [vmem:[#allocation3 + $0x111] sm:$0xff] %vm69_vm6, %v7515_v37  ;;  %v7514_v50 = vmax.f32 %v6981_v28, 0.0  ;;  %3016 = vst.msk [vmem:[#allocation5 + $0x98] sm:$0xff] %vm69_vm6, %v3008_v61  ;;  %v2944_v49 = vpack.c.bf16 %v2935_v47, %v3093_v55  ;;  %v3161_v55 = vld [vmem:[#allocation3 + $0x131] sm:$0xff] }
 0x4ea   :  { %3239 = vst.msk [vmem:[#allocation5 + $0x88] sm:$0xff] %vm69_vm6, %v2880_v32 }
 0x4eb   :  { %2722 = vst.msk [vmem:[#allocation3 + $0x121] sm:$0xff] %vm69_vm6, %v7514_v50 }
 0x4ec   :  { %3188 = vrot.lane.b32.xlu0 %v2816_v59, %s5620_s9 }
 0x4ed   :  { %2902 = vrot.lane.b32.xlu1 %v2880_v32, %s5619_s29 }
 0x4f0   :  { %3062 = vrot.lane.b32.xlu0 %v3040_v1, %s5618_s22  ;;  %v3095_v12 = vld [vmem:[#allocation3 + $0x110] sm:$0xff] }
 0x4f1   :  { %v3259_v23 = vld [vmem:[#allocation5 + $0x88] sm:$0xff]  ;;  %2966 = vrot.lane.b32.xlu1 %v2944_v49, %s5620_s9  ;;  %v2809_v16 = vld [vmem:[#allocation3 + $0x111] sm:$0xff]  ;;  %v3104_v63 = vpack.c.bf16 %v3095_v12, %v2935_v47 }
 0x4f2   :  { %5456 = vmatmul.mubr.msk.bf16.gmra.mrb[76].mxu0 %vm69_vm6, %v3259_v23  ;;  %v2873_v20 = vld [vmem:[#allocation3 + $0x112] sm:$0xff]  ;;  %v2817_v0 = vpack.c.bf16 %v2809_v16, %v2808_v38  ;;  %v3033_v6 = vld [vmem:[#allocation3 + $0x122] sm:$0xff] }
 0x4f3   :  { %v2881_v44 = vpack.c.bf16 %v2873_v20, %v3031_v56  ;;  %v3160_v11 = vld [vmem:[#allocation3 + $0x121] sm:$0xff]  ;;  %v3233_v35 = vpack.c.bf16 %v3225_v57, %v3033_v6  ;;  %2793 = vst.msk [vmem:[#allocation5 + $0xa8] sm:$0xff] %vm69_vm6, %v3104_v63  ;;  %v3041_v54 = vpack.c.bf16 %v3033_v6, %v2873_v20 }
 0x4f4   :  { %3126 = vrot.lane.b32.xlu0 %v3104_v63, %s5619_s29  ;;  %v3009_v52 = vpack.c.bf16 %v3160_v11, %v2809_v16  ;;  %v2937_v21 = vld [vmem:[#allocation3 + $0x120] sm:$0xff]  ;;  %v3169_v58 = vpack.c.bf16 %v3161_v55, %v3160_v11 }
 0x4f5   :  { %2840 = vrot.lane.b32.xlu1 %v2817_v0, %s5618_s22  ;;  %3240 = vst.msk [vmem:[#allocation5 + $0xa0] sm:$0xff] %vm69_vm6, %v2881_v44  ;;  %3241 = vst.msk [vmem:[#allocation5 + $0xb8] sm:$0xff] %vm69_vm6, %v3233_v35  ;;  %v2945_v62 = vpack.c.bf16 %v2937_v21, %v3095_v12  ;;  %v3105_v13 = vpack.c.bf16 %v3097_v48, %v2937_v21 }
 0x4f6   :  { %3017 = vst.msk [vmem:[#allocation5 + $0xb0] sm:$0xff] %vm69_vm6, %v3009_v52 }
 0x4f8   :  { %3190 = vrot.lane.b32.xlu0 %v2817_v0, %s5620_s9 }
 0x4f9   :  { %2904 = vrot.lane.b32.xlu1 %v2881_v44, %s5619_s29 }
 0x4fc   :  { %v3262_v10 = vld [vmem:[#allocation5 + $0xa0] sm:$0xff]  ;;  %3064 = vrot.lane.b32.xlu0 %v3041_v54, %s5618_s22  ;;  %v3265_v7 = vld [vmem:[#allocation5 + $0xb8] sm:$0xff] }
 0x4fd   :  { %5459 = vmatprep.mubr.msk.bf16.mxu0 %vm69_vm6, %v3262_v10  ;;  %2968 = vrot.lane.b32.xlu1 %v2945_v62, %s5620_s9  ;;  %v2827_v45 = vpop.permute.xlu1 %2826 }
 0x4fe   :  { %5460 = vmatmul.mubr.msk.bf16.gmra.mrb[80].mxu0 %vm69_vm6, %v3265_v7  ;;  %2850 = vst.msk [vmem:[#allocation5] sm:$0xff] %vm1016_vm14, %v2827_v45 }
 0x4ff   :  { %v3051_v9 = vpop.permute.xlu0 %3050 }
 0x500   :  { %3128 = vrot.lane.b32.xlu0 %v3105_v13, %s5619_s29  ;;  %3074 = vst.msk [vmem:[#allocation5 + $0x8] sm:$0xff] %vm1016_vm14, %v3051_v9 }
 0x501   :  { %v2891_v51 = vpop.permute.xlu1 %2890 }
 0x502   :  { %2914 = vst.msk [vmem:[#allocation5] sm:$0xff] %vm1081_vm15, %v2891_v51 }
 0x504   :  { %3192 = vrot.lane.b32.xlu0 %v3169_v58, %s5620_s9 }
 0x505   :  { %v2955_v26 = vpop.permute.xlu1 %2954 }
 0x506   :  { %2978 = vst.msk [vmem:[#allocation5] sm:$0xff] %vm1146_vm0, %v2955_v26 }
 0x50d   :  { %v3242_v57 = vld [vmem:[#allocation5] sm:$0xff] }
 0x515   :  { %v3115_v59 = vpop.permute.xlu0 %3114 }
 0x516   :  { %v2829_v32 = vpop.permute.xlu1 %2828  ;;  %3138 = vst.msk [vmem:[#allocation5 + $0x8] sm:$0xff] %vm1081_vm15, %v3115_v59 }
 0x517   :  { %2851 = vst.msk [vmem:[#allocation5 + $0x18] sm:$0xff] %vm1016_vm14, %v2829_v32 }
 0x519   :  { %v3179_v38 = vpop.permute.xlu0 %3178 }
 0x51a   :  { %v2893_v61 = vpop.permute.xlu1 %2892  ;;  %3202 = vst.msk [vmem:[#allocation5 + $0x8] sm:$0xff] %vm1146_vm0, %v3179_v38 }
 0x51b   :  { %2915 = vst.msk [vmem:[#allocation5 + $0x18] sm:$0xff] %vm1081_vm15, %v2893_v61 }
 0x51d   :  { %v3053_v56 = vpop.permute.xlu0 %3052 }
 0x51e   :  { %v2957_v47 = vpop.permute.xlu1 %2956  ;;  %3075 = vst.msk [vmem:[#allocation5 + $0x20] sm:$0xff] %vm1016_vm14, %v3053_v56 }
 0x51f   :  { %2979 = vst.msk [vmem:[#allocation5 + $0x18] sm:$0xff] %vm1146_vm0, %v2957_v47 }
 0x521   :  { %v3243_v23 = vld [vmem:[#allocation5 + $0x8] sm:$0xff] }
 0x522   :  { %v3117_v1 = vpop.permute.xlu0 %3116  ;;  %3436 = vmatprep.mubr.bf16.mxu1 %v3243_v23 }
 0x523   :  { %v2831_v49 = vpop.permute.xlu1 %2830  ;;  %3139 = vst.msk [vmem:[#allocation5 + $0x20] sm:$0xff] %vm1081_vm15, %v3117_v1  ;;  %3437 = vmatmul.mubr.bf16.vlgmr.msra.gmra.mrb[44].mxu1 %v3242_v57 }
 0x524   :  { %2852 = vst.msk [vmem:[#allocation5 + $0x30] sm:$0xff] %vm1016_vm14, %v2831_v49 }
 0x526   :  { %v3181_v12 = vpop.permute.xlu0 %3180  ;;  %v3245_v11 = vld [vmem:[#allocation5 + $0x18] sm:$0xff] }
 0x527   :  { %v2895_v16 = vpop.permute.xlu1 %2894  ;;  %3203 = vst.msk [vmem:[#allocation5 + $0x20] sm:$0xff] %vm1146_vm0, %v3181_v12 }
 0x528   :  { %2916 = vst.msk [vmem:[#allocation5 + $0x30] sm:$0xff] %vm1081_vm15, %v2895_v16 }
 0x52a   :  { %v3055_v20 = vpop.permute.xlu0 %3054 }
 0x52b   :  { %v2959_v63 = vpop.permute.xlu1 %2958  ;;  %3076 = vst.msk [vmem:[#allocation5 + $0x38] sm:$0xff] %vm1016_vm14, %v3055_v20 }
 0x52c   :  { %2980 = vst.msk [vmem:[#allocation5 + $0x30] sm:$0xff] %vm1146_vm0, %v2959_v63 }
 0x52e   :  { %v3119_v0 = vpop.permute.xlu0 %3118  ;;  %v3246_v6 = vld [vmem:[#allocation5 + $0x20] sm:$0xff] }
 0x52f   :  { %v2833_v44 = vpop.permute.xlu1 %2832  ;;  %3140 = vst.msk [vmem:[#allocation5 + $0x38] sm:$0xff] %vm1081_vm15, %v3119_v0  ;;  %3444 = vmatprep.mubr.bf16.mxu1 %v3246_v6 }
 0x530   :  { %2853 = vst.msk [vmem:[#allocation5 + $0x48] sm:$0xff] %vm1016_vm14, %v2833_v44  ;;  %3445 = vmatmul.mubr.bf16.gmra.mrb[48].mxu1 %v3245_v11 }
 0x532   :  { %v3183_v35 = vpop.permute.xlu0 %3182 }
 0x533   :  { %v2897_v52 = vpop.permute.xlu1 %2896  ;;  %3204 = vst.msk [vmem:[#allocation5 + $0x38] sm:$0xff] %vm1146_vm0, %v3183_v35  ;;  %v3248_v48 = vld [vmem:[#allocation5 + $0x30] sm:$0xff] }
 0x534   :  { %2917 = vst.msk [vmem:[#allocation5 + $0x48] sm:$0xff] %vm1081_vm15, %v2897_v52 }
 0x536   :  { %v3057_v21 = vpop.permute.xlu0 %3056 }
 0x537   :  { %v2961_v54 = vpop.permute.xlu1 %2960  ;;  %3077 = vst.msk [vmem:[#allocation5 + $0x50] sm:$0xff] %vm1016_vm14, %v3057_v21 }
 0x538   :  { %2981 = vst.msk [vmem:[#allocation5 + $0x48] sm:$0xff] %vm1146_vm0, %v2961_v54 }
 0x53a   :  { %v3121_v10 = vpop.permute.xlu0 %3120  ;;  %v3249_v62 = vld [vmem:[#allocation5 + $0x38] sm:$0xff] }
 0x53b   :  { %3141 = vst.msk [vmem:[#allocation5 + $0x50] sm:$0xff] %vm1081_vm15, %v3121_v10  ;;  %3452 = vmatprep.mubr.bf16.mxu1 %v3249_v62 }
 0x53c   :  { %3453 = vmatmul.mubr.bf16.gmra.mrb[52].mxu1 %v3248_v48 }
 0x53d   :  { %v2835_v45 = vpop.permute.xlu1 %2834 }
 0x53e   :  { %v3185_v7 = vpop.permute.xlu0 %3184  ;;  %2854 = vst.msk [vmem:[#allocation5 + $0x60] sm:$0xff] %vm1016_vm14, %v2835_v45 }
 0x53f   :  { %3205 = vst.msk [vmem:[#allocation5 + $0x50] sm:$0xff] %vm1146_vm0, %v3185_v7  ;;  %v3251_v58 = vld [vmem:[#allocation5 + $0x48] sm:$0xff] }
 0x541   :  { %v2899_v55 = vpop.permute.xlu1 %2898 }
 0x542   :  { %v3059_v13 = vpop.permute.xlu0 %3058  ;;  %2918 = vst.msk [vmem:[#allocation5 + $0x60] sm:$0xff] %vm1081_vm15, %v2899_v55 }
 0x543   :  { %3078 = vst.msk [vmem:[#allocation5 + $0x68] sm:$0xff] %vm1016_vm14, %v3059_v13 }
 0x545   :  { %v2963_v9 = vpop.permute.xlu1 %2962 }
 0x546   :  { %v3252_v51 = vld [vmem:[#allocation5 + $0x50] sm:$0xff]  ;;  %2982 = vst.msk [vmem:[#allocation5 + $0x60] sm:$0xff] %vm1146_vm0, %v2963_v9 }
 0x547   :  { %3460 = vmatprep.mubr.bf16.mxu1 %v3252_v51 }
 0x548   :  { %3461 = vmatmul.mubr.bf16.gmra.mrb[56].mxu1 %v3251_v58 }
 0x54d   :  { %v3123_v26 = vpop.permute.xlu0 %3122  ;;  %v3254_v23 = vld [vmem:[#allocation5 + $0x60] sm:$0xff] }
 0x54e   :  { %v2837_v59 = vpop.permute.xlu1 %2836  ;;  %3142 = vst.msk [vmem:[#allocation5 + $0x68] sm:$0xff] %vm1081_vm15, %v3123_v26 }
 0x54f   :  { %2855 = vst.msk [vmem:[#allocation5 + $0x78] sm:$0xff] %vm1016_vm14, %v2837_v59 }
 0x551   :  { %v3187_v32 = vpop.permute.xlu0 %3186 }
 0x552   :  { %v2901_v38 = vpop.permute.xlu1 %2900  ;;  %3206 = vst.msk [vmem:[#allocation5 + $0x68] sm:$0xff] %vm1146_vm0, %v3187_v32 }
 0x553   :  { %2919 = vst.msk [vmem:[#allocation5 + $0x78] sm:$0xff] %vm1081_vm15, %v2901_v38  ;;  %v5588_v38 = vld [vmem:[%s7507_s3 + $0x230] sm:$0xff]  }
 0x554   :  { %5463 = vmatprep.subr.bf16.mxu1 %v5588_v38 }
 0x555   :  { %v3061_v61 = vpop.permute.xlu0 %3060  ;;  %5464 = vmatpush3.bf16.msra.mxu1 %v5588_v38 }
 0x556   :  { %v2965_v56 = vpop.permute.xlu1 %2964  ;;  %3079 = vst.msk [vmem:[#allocation5 + $0x80] sm:$0xff] %vm1016_vm14, %v3061_v61  ;;  %v5589_v61 = vld [vmem:[%s7507_s3 + $0x238] sm:$0xff]  }
 0x557   :  { %2983 = vst.msk [vmem:[#allocation5 + $0x78] sm:$0xff] %vm1146_vm0, %v2965_v56  ;;  %5465 = vmatprep.subr.bf16.mxu1 %v5589_v61 }
 0x559   :  { %v3255_v49 = vld [vmem:[#allocation5 + $0x68] sm:$0xff]  ;;  %5466 = vmatpush3.bf16.msra.mxu1 %v5589_v61 }
 0x55a   :  { %v3125_v47 = vpop.permute.xlu0 %3124  ;;  %3468 = vmatprep.mubr.bf16.mxu1 %v3255_v49 }
 0x55b   :  { %v2839_v1 = vpop.permute.xlu1 %2838  ;;  %3143 = vst.msk [vmem:[#allocation5 + $0x80] sm:$0xff] %vm1081_vm15, %v3125_v47  ;;  %3469 = vmatmul.mubr.bf16.gmra.mrb[60].mxu1 %v3254_v23 }
 0x55c   :  { %2856 = vst.msk [vmem:[#allocation5 + $0x90] sm:$0xff] %vm1016_vm14, %v2839_v1 }
 0x55e   :  { %v3189_v57 = vpop.permute.xlu0 %3188  ;;  %v3257_v6 = vld [vmem:[#allocation5 + $0x78] sm:$0xff] }
 0x55f   :  { %v2903_v12 = vpop.permute.xlu1 %2902  ;;  %3207 = vst.msk [vmem:[#allocation5 + $0x80] sm:$0xff] %vm1146_vm0, %v3189_v57 }
 0x560   :  { %2920 = vst.msk [vmem:[#allocation5 + $0x90] sm:$0xff] %vm1081_vm15, %v2903_v12 }
 0x562   :  { %v3063_v16 = vpop.permute.xlu0 %3062 }
 0x563   :  { %v2967_v20 = vpop.permute.xlu1 %2966  ;;  %3080 = vst.msk [vmem:[#allocation5 + $0x98] sm:$0xff] %vm1016_vm14, %v3063_v16 }
 0x564   :  { %2984 = vst.msk [vmem:[#allocation5 + $0x90] sm:$0xff] %vm1146_vm0, %v2967_v20  ;;  %v5590_v20 = vld [vmem:[%s7507_s3 + $0x1f0] sm:$0xff]  }
 0x565   :  { %5297 = vmatprep.subr.bf16.mxu0 %v5590_v20  ;;  %v5595_v20 = vld [vmem:[%s7507_s3 + $0x1c0] sm:$0xff]  }
 0x566   :  { %v3127_v63 = vpop.permute.xlu0 %3126  ;;  %v3258_v44 = vld [vmem:[#allocation5 + $0x80] sm:$0xff] }
 0x567   :  { %v2841_v0 = vpop.permute.xlu1 %2840  ;;  %3144 = vst.msk [vmem:[#allocation5 + $0x98] sm:$0xff] %vm1081_vm15, %v3127_v63  ;;  %3476 = vmatprep.mubr.bf16.mxu1 %v3258_v44  ;;  %v5592_v44 = vld [vmem:[%s7507_s3 + $0x1f8] sm:$0xff]  }
 0x568   :  { %2857 = vst.msk [vmem:[#allocation5 + $0xa8] sm:$0xff] %vm1016_vm14, %v2841_v0  ;;  %3477 = vmatmul.mubr.bf16.gmra.mrb[64].mxu1 %v3257_v6  ;;  %v5591_v0 = vld [vmem:[%s7507_s3 + $0x1b0] sm:$0xff]   ;;  %v7108_v6 = vld [vmem:[%s7509_s4 + $0x2] ss:$0 sm:$0xff] }
 0x569   :  { %5298 = vmatpush3.bf16.msra.mxu0 %v5591_v0  ;;  %v5597_v0 = vld [vmem:[%s7507_s3 + $0x1c8] sm:$0xff]  }
 0x56a   :  { %v3191_v11 = vpop.permute.xlu0 %3190  ;;  %5299 = vmatprep.subr.bf16.mxu0 %v5592_v44 }
 0x56b   :  { %v2905_v35 = vpop.permute.xlu1 %2904  ;;  %3208 = vst.msk [vmem:[#allocation5 + $0x98] sm:$0xff] %vm1146_vm0, %v3191_v11  ;;  %v3260_v62 = vld [vmem:[#allocation5 + $0x90] sm:$0xff] }
 0x56c   :  { %2921 = vst.msk [vmem:[#allocation5 + $0xa8] sm:$0xff] %vm1081_vm15, %v2905_v35 }
 0x56e   :  { %v3065_v52 = vpop.permute.xlu0 %3064 }
 0x56f   :  { %3081 = vst.msk [vmem:[#allocation5 + $0xb0] sm:$0xff] %vm1016_vm14, %v3065_v52  ;;  %v2969_v21 = vpop.permute.xlu1 %2968 }
 0x570   :  { %2985 = vst.msk [vmem:[#allocation5 + $0xa8] sm:$0xff] %vm1146_vm0, %v2969_v21  ;;  %v5593_v21 = vld [vmem:[%s7507_s3 + $0x1b8] sm:$0xff]  }
 0x571   :  { %5300 = vmatpush3.bf16.msra.mxu0 %v5593_v21  ;;  %v3701_v21 = vld [vmem:[#allocation3 + $0x1] sm:$0xff] }
 0x572   :  { %v3129_v54 = vpop.permute.xlu0 %3128  ;;  %v3261_v10 = vld [vmem:[#allocation5 + $0x98] sm:$0xff] }
 0x573   :  { %3145 = vst.msk [vmem:[#allocation5 + $0xb0] sm:$0xff] %vm1081_vm15, %v3129_v54  ;;  %3484 = vmatprep.mubr.bf16.mxu1 %v3261_v10 }
 0x574   :  { %3485 = vmatmul.mubr.bf16.gmra.mrb[68].mxu1 %v3260_v62 }
 0x576   :  { %v3193_v48 = vpop.permute.xlu0 %3192 }
 0x577   :  { %3209 = vst.msk [vmem:[#allocation5 + $0xb0] sm:$0xff] %vm1146_vm0, %v3193_v48  ;;  %v3263_v45 = vld [vmem:[#allocation5 + $0xa8] sm:$0xff] }
 0x57e   :  { %v3264_v7 = vld [vmem:[#allocation5 + $0xb0] sm:$0xff] }
 0x57f   :  { %3492 = vmatprep.mubr.bf16.mxu1 %v3264_v7 }
 0x580   :  { %3493 = vmatmul.mubr.bf16.gmra.mrb[72].mxu1 %v3263_v45  ;;  %v5594_v45 = vld [vmem:[%s7507_s3 + $0x200] sm:$0xff]  }
 0x581   :  { %5301 = vmatprep.subr.bf16.mxu0 %v5594_v45 }
 0x582   :  { %5302 = vmatpush3.bf16.msra.mxu0 %v5595_v20 }
 0x58d   :  { %v7062_v13 = vpop.f32.mrb[68].mxu0 }
 0x58e   :  { %v3535_v55 = vpop.f32.mrb[69].mxu0 }
 0x58f   :  { %v7064_v9 = vpop.f32.mrb[70].mxu0 }
 0x590   :  { %v3538_v51 = vpop.f32.mrb[71].mxu0 }
 0x599   :  { %v7066_v58 = vpop.f32.mrb[72].mxu0 }
 0x59a   :  { %v7068_v26 = vpop.f32.mrb[73].mxu0 }
 0x59b   :  { %v7070_v59 = vpop.f32.mrb[74].mxu0 }
 0x59c   :  { %v7072_v32 = vpop.f32.mrb[75].mxu0 }
 0x5c5   :  { %v7080_v56 = vpop.f32.mrb[76].mxu0 }
 0x5c6   :  { %v7082_v47 = vpop.f32.mrb[77].mxu0 }
 0x5c7   :  { %v7084_v1 = vpop.f32.mrb[78].mxu0 }
 0x5c8   :  { %v7086_v49 = vpop.f32.mrb[79].mxu0 }
 0x5d1   :  { %v7088_v23 = vpop.f32.mrb[80].mxu0 }
 0x5d2   :  { %v7090_v57 = vpop.f32.mrb[81].mxu0 }
 0x5d3   :  { %v7092_v12 = vpop.f32.mrb[82].mxu0 }
 0x5d4   :  { %v7094_v16 = vpop.f32.mrb[83].mxu0 }
 0x5f6   :  { %v5239_v63 = vpop.f32.mrb[44].mxu1 }
 0x5f7   :  { %v5240_v11 = vpop.f32.mrb[45].mxu1 }
 0x5f8   :  { %v5241_v35 = vadd.f32 %v5240_v11, %v5239_v63  ;;  %v5242_v52 = vpop.f32.mrb[46].mxu1 }
 0x5f9   :  { %v5243_v54 = vpop.f32.mrb[47].mxu1 }
 0x5fa   :  { %v3439_v10 = vadd.f32 %v5241_v35, %v7108_v6  ;;  %v5244_v62 = vadd.f32 %v5243_v54, %v5242_v52  ;;  %v5598_v54 = vld [vmem:[%s7507_s3 + $0x210] sm:$0xff]  }
 0x5fc   :  { %v3536_v48 = vadd.f32 %v3535_v55, %v3439_v10  ;;  %v3442_v7 = vadd.f32 %v5244_v62, %v7108_v6  ;;  %v5596_v55 = vld [vmem:[%s7507_s3 + $0x208] sm:$0xff]   ;;  %v5599_v10 = vld [vmem:[%s7507_s3 + $0x1d0] sm:$0xff]  }
 0x5fd   :  { %5303 = vmatprep.subr.bf16.mxu0 %v5596_v55  ;;  %v3765_v55 = vld [vmem:[#allocation3 + $0x2] sm:$0xff] }
 0x5fe   :  { %v3598_v38 = vmax.f32 %v3536_v48, 0.0  ;;  %v3539_v61 = vadd.f32 %v3538_v51, %v3442_v7  ;;  %5304 = vmatpush3.bf16.msra.mxu0 %v5597_v0  ;;  %v3669_v7 = vld [vmem:[#allocation3] sm:$0xff] }
 0x5ff   :  { %5305 = vmatprep.subr.bf16.mxu0 %v5598_v54 }
 0x600   :  { %3614 = vst.msk [vmem:[#allocation3 + $0x11] sm:$0xff] %vm69_vm6, %v3598_v38  ;;  %v3599_v63 = vmax.f32 %v3539_v61, 0.0 }
 0x602   :  { %3615 = vst.msk [vmem:[#allocation3 + $0x21] sm:$0xff] %vm69_vm6, %v3599_v63  ;;  %5306 = vmatpush3.bf16.msra.mxu0 %v5599_v10  ;;  %v5602_v10 = vld [vmem:[%s7507_s3 + $0x220] sm:$0xff]  }
 0x603   :  { %v5245_v51 = vpop.f32.mrb[48].mxu1 }
 0x604   :  { %v5246_v44 = vpop.f32.mrb[49].mxu1 }
 0x605   :  { %v5247_v11 = vadd.f32 %v5246_v44, %v5245_v51  ;;  %v5248_v35 = vpop.f32.mrb[50].mxu1 }
 0x606   :  { %v5249_v52 = vpop.f32.mrb[51].mxu1 }
 0x607   :  { %v3447_v62 = vadd.f32 %v5247_v11, %v7108_v6  ;;  %v5250_v48 = vadd.f32 %v5249_v52, %v5248_v35  ;;  %v3702_v45 = vld [vmem:[#allocation3 + $0x11] sm:$0xff] }
 0x608   :  { %v3829_v38 = vld [vmem:[#allocation3 + $0x10] sm:$0xff]  ;;  %v3717_v63 = vpack.c.bf16 %v3702_v45, %v3701_v21  ;;  %v5600_v35 = vld [vmem:[%s7507_s3 + $0x218] sm:$0xff]  }
 0x609   :  { %v3544_v61 = vadd.f32 %v7062_v13, %v3447_v62  ;;  %v3450_v20 = vadd.f32 %v5250_v48, %v7108_v6  ;;  %v3925_v0 = vld [vmem:[#allocation3 + $0x12] sm:$0xff]  ;;  %v3926_v51 = vld [vmem:[#allocation3 + $0x22] sm:$0xff]  ;;  %v3685_v50 = vpack.c.bf16 %v3829_v38, %v3669_v7  ;;  %5307 = vmatprep.subr.bf16.mxu0 %v5600_v35 }
 0x60a   :  { %v3703_v44 = vld [vmem:[#allocation3 + $0x21] sm:$0xff]  ;;  %3733 = vrot.lane.b32.xlu1 %v3717_v63, %s5618_s22  ;;  %v3941_v11 = vpack.c.bf16 %v3926_v51, %v3925_v0  ;;  %v5601_v13 = vld [vmem:[%s7507_s3 + $0x1d8] sm:$0xff]  }
 0x60b   :  { %v3600_v37 = vmax.f32 %v3544_v61, 0.0  ;;  %v3547_v5 = vadd.f32 %v7064_v9, %v3450_v20  ;;  %3693 = vst.msk [vmem:[#allocation5] sm:$0xff] %vm69_vm6, %v3685_v50  ;;  %v3909_v52 = vpack.c.bf16 %v3703_v44, %v3702_v45  ;;  %v3781_v9 = vpack.c.bf16 %v3925_v0, %v3765_v55  ;;  %v3830_v54 = vld [vmem:[#allocation3 + $0x20] sm:$0xff]  ;;  %5308 = vmatpush3.bf16.msra.mxu0 %v5601_v13  ;;  %v5604_v61 = vld [vmem:[%s7507_s3 + $0x228] sm:$0xff]  }
 0x60c   :  { %3957 = vrot.lane.b32.xlu0 %v3941_v11, %s5618_s22  ;;  %v5603_v50 = vld [vmem:[%s7507_s3 + $0x1e0] sm:$0xff]   ;;  %5309 = vmatprep.subr.bf16.mxu0 %v5602_v10  ;;  %v3845_v7 = vpack.c.bf16 %v3830_v54, %v3829_v38  ;;  %v5605_v20 = vld [vmem:[%s7507_s3 + $0x1e8] sm:$0xff]  }
 0x60d   :  { %3616 = vst.msk [vmem:[#allocation3 + $0x31] sm:$0xff] %vm69_vm6, %v3600_v37  ;;  %v3601_v21 = vmax.f32 %v3547_v5, 0.0  ;;  %3917 = vst.msk [vmem:[#allocation5 + $0x8] sm:$0xff] %vm69_vm6, %v3909_v52 }
 0x60e   :  { %3797 = vrot.lane.b32.xlu1 %v3781_v9, %s5619_s29 }
 0x60f   :  { %3617 = vst.msk [vmem:[#allocation3 + $0x41] sm:$0xff] %vm69_vm6, %v3601_v21  ;;  %v5251_v37 = vpop.f32.mrb[52].mxu1  ;;  %5310 = vmatpush3.bf16.msra.mxu0 %v5603_v50 }
 0x610   :  { %v5252_v5 = vpop.f32.mrb[53].mxu1  ;;  %5311 = vmatprep.subr.bf16.mxu0 %v5604_v61 }
 0x611   :  { %v5253_v62 = vadd.f32 %v5252_v5, %v5251_v37  ;;  %v5254_v48 = vpop.f32.mrb[54].mxu1 }
 0x612   :  { %v5255_v45 = vpop.f32.mrb[55].mxu1  ;;  %3861 = vrot.lane.b32.xlu1 %v3845_v7, %s5620_s9 }
 0x613   :  { %v3455_v63 = vadd.f32 %v5253_v62, %v7108_v6  ;;  %v5256_v55 = vadd.f32 %v5255_v45, %v5254_v48  ;;  %5312 = vmatpush3.bf16.msra.mxu0 %v5605_v20 }
 0x614   :  { %v3990_v0 = vld [vmem:[#allocation3 + $0x30] sm:$0xff] }
 0x615   :  { %v3704_v11 = vld [vmem:[#allocation3 + $0x31] sm:$0xff]  ;;  %v3552_v38 = vadd.f32 %v7068_v26, %v3455_v63  ;;  %v3458_v13 = vadd.f32 %v5256_v55, %v7108_v6  ;;  %v4005_v52 = vpack.c.bf16 %v3990_v0, %v3830_v54 }
 0x616   :  { %v3768_v35 = vld [vmem:[#allocation3 + $0x32] sm:$0xff]  ;;  %v3718_v21 = vpack.c.bf16 %v3704_v11, %v3703_v44  ;;  %v3705_v10 = vld [vmem:[#allocation3 + $0x41] sm:$0xff] }
 0x617   :  { %v3782_v9 = vpack.c.bf16 %v3768_v35, %v3926_v51  ;;  %v3602_v50 = vmax.f32 %v3552_v38, 0.0  ;;  %v3555_v37 = vadd.f32 %v7072_v32, %v3458_v13  ;;  %4021 = vrot.lane.b32.xlu0 %v4005_v52, %s5619_s29  ;;  %3694 = vst.msk [vmem:[#allocation5 + $0x18] sm:$0xff] %vm69_vm6, %v4005_v52  ;;  %v3910_v5 = vpack.c.bf16 %v3705_v10, %v3704_v11  ;;  %v3928_v54 = vld [vmem:[#allocation3 + $0x42] sm:$0xff] }
 0x618   :  { %3735 = vrot.lane.b32.xlu1 %v3718_v21, %s5618_s22  ;;  %v3832_v44 = vld [vmem:[#allocation3 + $0x40] sm:$0xff]  ;;  %v3942_v7 = vpack.c.bf16 %v3928_v54, %v3768_v35 }
 0x619   :  { %4141 = vst.msk [vmem:[#allocation5 + $0x10] sm:$0xff] %vm69_vm6, %v3782_v9  ;;  %3618 = vst.msk [vmem:[#allocation3 + $0x51] sm:$0xff] %vm69_vm6, %v3602_v50  ;;  %v3603_v26 = vmax.f32 %v3555_v37, 0.0  ;;  %v3846_v45 = vpack.c.bf16 %v3832_v44, %v3990_v0 }
 0x61a   :  { %3918 = vst.msk [vmem:[#allocation5 + $0x20] sm:$0xff] %vm69_vm6, %v3910_v5 }
 0x61b   :  { %3619 = vst.msk [vmem:[#allocation3 + $0x61] sm:$0xff] %vm69_vm6, %v3603_v26  ;;  %v5257_v51 = vpop.f32.mrb[56].mxu1  ;;  %4085 = vrot.lane.b32.xlu0 %v3718_v21, %s5620_s9 }
 0x61c   :  { %3799 = vrot.lane.b32.xlu1 %v3782_v9, %s5619_s29  ;;  %v5258_v32 = vpop.f32.mrb[57].mxu1 }
 0x61d   :  { %v5259_v62 = vadd.f32 %v5258_v32, %v5257_v51  ;;  %v5260_v48 = vpop.f32.mrb[58].mxu1  ;;  %v4124_v32 = vld [vmem:[#allocation3 + $0x92] sm:$0xff] }
 0x61e   :  { %v5261_v61 = vpop.f32.mrb[59].mxu1 }
 0x61f   :  { %v3463_v20 = vadd.f32 %v5259_v62, %v7108_v6  ;;  %v5262_v63 = vadd.f32 %v5261_v61, %v5260_v48  ;;  %3959 = vrot.lane.b32.xlu0 %v3942_v7, %s5618_s22 }
 0x620   :  { %v4151_v55 = vld [vmem:[#allocation5 + $0x10] sm:$0xff]  ;;  %3863 = vrot.lane.b32.xlu1 %v3846_v45, %s5620_s9 }
 0x621   :  { %5467 = vmatprep.mubr.msk.bf16.mxu1 %vm69_vm6, %v4151_v55  ;;  %v3992_v11 = vld [vmem:[#allocation3 + $0x50] sm:$0xff]  ;;  %v3560_v52 = vadd.f32 %v7066_v58, %v3463_v20  ;;  %v3466_v21 = vadd.f32 %v5262_v63, %v7108_v6 }
 0x622   :  { %v3706_v38 = vld [vmem:[#allocation3 + $0x51] sm:$0xff]  ;;  %v4006_v35 = vpack.c.bf16 %v3992_v11, %v3832_v44  ;;  %v3707_v50 = vld [vmem:[#allocation3 + $0x61] sm:$0xff] }
 0x623   :  { %v3770_v13 = vld [vmem:[#allocation3 + $0x52] sm:$0xff]  ;;  %v3719_v0 = vpack.c.bf16 %v3706_v38, %v3705_v10  ;;  %v3604_v37 = vmax.f32 %v3560_v52, 0.0  ;;  %v3563_v5 = vadd.f32 %v7070_v59, %v3466_v21  ;;  %v3911_v26 = vpack.c.bf16 %v3707_v50, %v3706_v38  ;;  %v3930_v51 = vld [vmem:[#allocation3 + $0x62] sm:$0xff] }
 0x624   :  { %v3783_v9 = vpack.c.bf16 %v3770_v13, %v3928_v54  ;;  %4023 = vrot.lane.b32.xlu0 %v4006_v35, %s5619_s29  ;;  %3695 = vst.msk [vmem:[#allocation5 + $0x30] sm:$0xff] %vm69_vm6, %v4006_v35  ;;  %v3834_v44 = vld [vmem:[#allocation3 + $0x60] sm:$0xff]  ;;  %v3943_v59 = vpack.c.bf16 %v3930_v51, %v3770_v13 }
 0x625   :  { %3737 = vrot.lane.b32.xlu1 %v3719_v0, %s5618_s22  ;;  %3620 = vst.msk [vmem:[#allocation3 + $0x71] sm:$0xff] %vm69_vm6, %v3604_v37  ;;  %v3605_v58 = vmax.f32 %v3563_v5, 0.0  ;;  %3919 = vst.msk [vmem:[#allocation5 + $0x38] sm:$0xff] %vm69_vm6, %v3911_v26  ;;  %v3847_v10 = vpack.c.bf16 %v3834_v44, %v3992_v11 }
 0x626   :  { %4142 = vst.msk [vmem:[#allocation5 + $0x28] sm:$0xff] %vm69_vm6, %v3783_v9 }
 0x627   :  { %3621 = vst.msk [vmem:[#allocation3 + $0x81] sm:$0xff] %vm69_vm6, %v3605_v58 }
 0x628   :  { %4087 = vrot.lane.b32.xlu0 %v3719_v0, %s5620_s9 }
 0x629   :  { %3801 = vrot.lane.b32.xlu1 %v3783_v9, %s5619_s29 }
 0x62c   :  { %3961 = vrot.lane.b32.xlu0 %v3943_v59, %s5618_s22  ;;  %v3994_v62 = vld [vmem:[#allocation3 + $0x70] sm:$0xff] }
 0x62d   :  { %v4154_v54 = vld [vmem:[#allocation5 + $0x28] sm:$0xff]  ;;  %3865 = vrot.lane.b32.xlu1 %v3847_v10, %s5620_s9  ;;  %v3708_v48 = vld [vmem:[#allocation3 + $0x71] sm:$0xff]  ;;  %v4007_v45 = vpack.c.bf16 %v3994_v62, %v3834_v44 }
 0x62e   :  { %5468 = vmatmul.mubr.msk.bf16.vlgmr.msra.gmra.mrb[76].mxu1 %vm69_vm6, %v4154_v54  ;;  %v3772_v7 = vld [vmem:[#allocation3 + $0x72] sm:$0xff]  ;;  %v3720_v61 = vpack.c.bf16 %v3708_v48, %v3707_v50  ;;  %v3932_v63 = vld [vmem:[#allocation3 + $0x82] sm:$0xff]  ;;  %v5263_v38 = vpop.f32.mrb[60].mxu1 }
 0x62f   :  { %v3784_v20 = vpack.c.bf16 %v3772_v7, %v3930_v51  ;;  %v4059_v55 = vld [vmem:[#allocation3 + $0x81] sm:$0xff]  ;;  %v4136_v11 = vpack.c.bf16 %v4124_v32, %v3932_v63  ;;  %3696 = vst.msk [vmem:[#allocation5 + $0x48] sm:$0xff] %vm69_vm6, %v4007_v45  ;;  %v5264_v13 = vpop.f32.mrb[61].mxu1  ;;  %v3944_v58 = vpack.c.bf16 %v3932_v63, %v3772_v7  ;;  %v3996_v59 = vld [vmem:[#allocation3 + $0x90] sm:$0xff] }
 0x630   :  { %4025 = vrot.lane.b32.xlu0 %v4007_v45, %s5619_s29  ;;  %v3912_v52 = vpack.c.bf16 %v4059_v55, %v3708_v48  ;;  %v5265_v21 = vadd.f32 %v5264_v13, %v5263_v38  ;;  %v5266_v35 = vpop.f32.mrb[62].mxu1  ;;  %v3836_v37 = vld [vmem:[#allocation3 + $0x80] sm:$0xff]  ;;  %v4060_v7 = vld [vmem:[#allocation3 + $0x91] sm:$0xff] }
 0x631   :  { %3739 = vrot.lane.b32.xlu1 %v3720_v61, %s5618_s22  ;;  %4143 = vst.msk [vmem:[#allocation5 + $0x40] sm:$0xff] %vm69_vm6, %v3784_v20  ;;  %4144 = vst.msk [vmem:[#allocation5 + $0x58] sm:$0xff] %vm69_vm6, %v4136_v11  ;;  %v5267_v0 = vpop.f32.mrb[63].mxu1  ;;  %v3848_v44 = vpack.c.bf16 %v3836_v37, %v3994_v62  ;;  %v3709_v38 = vld [vmem:[#allocation3 + $0xa1] sm:$0xff] }
 0x632   :  { %3920 = vst.msk [vmem:[#allocation5 + $0x50] sm:$0xff] %vm69_vm6, %v3912_v52  ;;  %v3471_v9 = vadd.f32 %v5265_v21, %v7108_v6  ;;  %v5268_v50 = vadd.f32 %v5267_v0, %v5266_v35  ;;  %v3677_v52 = vld [vmem:[#allocation3 + $0xa0] sm:$0xff] }
 0x634   :  { %4089 = vrot.lane.b32.xlu0 %v3720_v61, %s5620_s9  ;;  %v3568_v5 = vadd.f32 %v7082_v47, %v3471_v9  ;;  %v3474_v26 = vadd.f32 %v5268_v50, %v7108_v6  ;;  %v4008_v47 = vpack.c.bf16 %v3996_v59, %v3836_v37  ;;  %v3773_v37 = vld [vmem:[#allocation3 + $0xa2] sm:$0xff] }
 0x635   :  { %3803 = vrot.lane.b32.xlu1 %v3784_v20, %s5619_s29  ;;  %v4072_v20 = vpack.c.bf16 %v4060_v7, %v4059_v55 }
 0x636   :  { %v3606_v10 = vmax.f32 %v3568_v5, 0.0  ;;  %v3571_v54 = vadd.f32 %v7086_v49, %v3474_v26 }
 0x638   :  { %v4157_v51 = vld [vmem:[#allocation5 + $0x40] sm:$0xff]  ;;  %3963 = vrot.lane.b32.xlu0 %v3944_v58, %s5618_s22  ;;  %v4160_v32 = vld [vmem:[#allocation5 + $0x58] sm:$0xff]  ;;  %3622 = vst.msk [vmem:[#allocation3 + $0xb1] sm:$0xff] %vm69_vm6, %v3606_v10  ;;  %v3607_v48 = vmax.f32 %v3571_v54, 0.0 }
 0x639   :  { %5471 = vmatprep.mubr.msk.bf16.mxu1 %vm69_vm6, %v4157_v51  ;;  %3867 = vrot.lane.b32.xlu1 %v3848_v44, %s5620_s9 }
 0x63a   :  { %5472 = vmatmul.mubr.msk.bf16.gmra.mrb[80].mxu1 %vm69_vm6, %v4160_v32  ;;  %3623 = vst.msk [vmem:[#allocation3 + $0xc1] sm:$0xff] %vm69_vm6, %v3607_v48 }
 0x63b   :  { %v5269_v62 = vpop.f32.mrb[64].mxu1 }
 0x63c   :  { %4027 = vrot.lane.b32.xlu0 %v4008_v47, %s5619_s29  ;;  %v5270_v49 = vpop.f32.mrb[65].mxu1 }
 0x63d   :  { %v5271_v45 = vadd.f32 %v5270_v49, %v5269_v62  ;;  %v5272_v61 = vpop.f32.mrb[66].mxu1 }
 0x63e   :  { %v5273_v63 = vpop.f32.mrb[67].mxu1 }
 0x63f   :  { %v3479_v11 = vadd.f32 %v5271_v45, %v7108_v6  ;;  %v5274_v13 = vadd.f32 %v5273_v63, %v5272_v61  ;;  %v3710_v21 = vld [vmem:[#allocation3 + $0xb1] sm:$0xff] }
 0x640   :  { %4091 = vrot.lane.b32.xlu0 %v4072_v20, %s5620_s9  ;;  %v3837_v35 = vld [vmem:[#allocation3 + $0xb0] sm:$0xff]  ;;  %v3721_v50 = vpack.c.bf16 %v3710_v21, %v3709_v38 }
 0x641   :  { %v3576_v0 = vadd.f32 %v7080_v56, %v3479_v11  ;;  %v3482_v9 = vadd.f32 %v5274_v13, %v7108_v6  ;;  %v3933_v5 = vld [vmem:[#allocation3 + $0xb2] sm:$0xff]  ;;  %v3934_v26 = vld [vmem:[#allocation3 + $0xc2] sm:$0xff]  ;;  %v3689_v55 = vpack.c.bf16 %v3837_v35, %v3677_v52 }
 0x642   :  { %v3711_v58 = vld [vmem:[#allocation3 + $0xc1] sm:$0xff]  ;;  %3741 = vrot.lane.b32.xlu1 %v3721_v50, %s5618_s22  ;;  %v3945_v59 = vpack.c.bf16 %v3934_v26, %v3933_v5  ;;  %v3785_v54 = vpack.c.bf16 %v3933_v5, %v3773_v37 }
 0x643   :  { %v3608_v51 = vmax.f32 %v3576_v0, 0.0  ;;  %v3579_v44 = vadd.f32 %v7084_v1, %v3482_v9  ;;  %3697 = vst.msk [vmem:[#allocation5 + $0x60] sm:$0xff] %vm69_vm6, %v3689_v55  ;;  %v3913_v10 = vpack.c.bf16 %v3711_v58, %v3710_v21  ;;  %v3838_v32 = vld [vmem:[#allocation3 + $0xc0] sm:$0xff] }
 0x644   :  { %3965 = vrot.lane.b32.xlu0 %v3945_v59, %s5618_s22  ;;  %v3849_v62 = vpack.c.bf16 %v3838_v32, %v3837_v35 }
 0x645   :  { %3624 = vst.msk [vmem:[#allocation3 + $0xd1] sm:$0xff] %vm69_vm6, %v3608_v51  ;;  %v3609_v56 = vmax.f32 %v3579_v44, 0.0  ;;  %3921 = vst.msk [vmem:[#allocation5 + $0x68] sm:$0xff] %vm69_vm6, %v3913_v10 }
 0x646   :  { %3805 = vrot.lane.b32.xlu1 %v3785_v54, %s5619_s29 }
 0x647   :  { %3625 = vst.msk [vmem:[#allocation3 + $0xe1] sm:$0xff] %vm69_vm6, %v3609_v56  ;;  %v5275_v48 = vpop.f32.mrb[68].mxu1 }
 0x648   :  { %v5276_v1 = vpop.f32.mrb[69].mxu1 }
 0x649   :  { %v5277_v47 = vadd.f32 %v5276_v1, %v5275_v48  ;;  %v5278_v7 = vpop.f32.mrb[70].mxu1 }
 0x64a   :  { %v5279_v49 = vpop.f32.mrb[71].mxu1  ;;  %3869 = vrot.lane.b32.xlu1 %v3849_v62, %s5620_s9 }
 0x64b   :  { %v3487_v45 = vadd.f32 %v5277_v47, %v7108_v6  ;;  %v5280_v61 = vadd.f32 %v5279_v49, %v5278_v7 }
 0x64c   :  { %v3998_v20 = vld [vmem:[#allocation3 + $0xd0] sm:$0xff] }
 0x64d   :  { %v3712_v63 = vld [vmem:[#allocation3 + $0xd1] sm:$0xff]  ;;  %v3584_v11 = vadd.f32 %v7090_v57, %v3487_v45  ;;  %v3490_v13 = vadd.f32 %v5280_v61, %v7108_v6  ;;  %v4009_v52 = vpack.c.bf16 %v3998_v20, %v3838_v32 }
 0x64e   :  { %v3776_v38 = vld [vmem:[#allocation3 + $0xd2] sm:$0xff]  ;;  %v3722_v21 = vpack.c.bf16 %v3712_v63, %v3711_v58  ;;  %v3713_v9 = vld [vmem:[#allocation3 + $0xe1] sm:$0xff] }
 0x64f   :  { %v3786_v0 = vpack.c.bf16 %v3776_v38, %v3934_v26  ;;  %v3610_v50 = vmax.f32 %v3584_v11, 0.0  ;;  %v3587_v35 = vadd.f32 %v7094_v16, %v3490_v13  ;;  %4029 = vrot.lane.b32.xlu0 %v4009_v52, %s5619_s29  ;;  %3698 = vst.msk [vmem:[#allocation5 + $0x78] sm:$0xff] %vm69_vm6, %v4009_v52  ;;  %v3914_v37 = vpack.c.bf16 %v3713_v9, %v3712_v63  ;;  %v3936_v5 = vld [vmem:[#allocation3 + $0xe2] sm:$0xff] }
 0x650   :  { %3743 = vrot.lane.b32.xlu1 %v3722_v21, %s5618_s22  ;;  %v3840_v55 = vld [vmem:[#allocation3 + $0xe0] sm:$0xff]  ;;  %v3946_v44 = vpack.c.bf16 %v3936_v5, %v3776_v38 }
 0x651   :  { %4145 = vst.msk [vmem:[#allocation5 + $0x70] sm:$0xff] %vm69_vm6, %v3786_v0  ;;  %3626 = vst.msk [vmem:[#allocation3 + $0xf1] sm:$0xff] %vm69_vm6, %v3610_v50  ;;  %v3611_v57 = vmax.f32 %v3587_v35, 0.0  ;;  %v3850_v59 = vpack.c.bf16 %v3840_v55, %v3998_v20 }
 0x652   :  { %3922 = vst.msk [vmem:[#allocation5 + $0x80] sm:$0xff] %vm69_vm6, %v3914_v37 }
 0x653   :  { %3627 = vst.msk [vmem:[#allocation3 + $0x101] sm:$0xff] %vm69_vm6, %v3611_v57  ;;  %v5281_v26 = vpop.f32.mrb[72].mxu1  ;;  %4093 = vrot.lane.b32.xlu0 %v3722_v21, %s5620_s9 }
 0x654   :  { %3807 = vrot.lane.b32.xlu1 %v3786_v0, %s5619_s29  ;;  %v5282_v16 = vpop.f32.mrb[73].mxu1  ;;  %v4132_v0 = vld [vmem:[#allocation3 + $0x132] sm:$0xff] }
 0x655   :  { %v5283_v58 = vadd.f32 %v5282_v16, %v5281_v26  ;;  %v5284_v51 = vpop.f32.mrb[74].mxu1 }
 0x656   :  { %v5285_v10 = vpop.f32.mrb[75].mxu1 }
 0x657   :  { %v3495_v56 = vadd.f32 %v5283_v58, %v7108_v6  ;;  %v5286_v54 = vadd.f32 %v5285_v10, %v5284_v51  ;;  %3967 = vrot.lane.b32.xlu0 %v3946_v44, %s5618_s22 }
 0x658   :  { %v4163_v32 = vld [vmem:[#allocation5 + $0x70] sm:$0xff]  ;;  %3871 = vrot.lane.b32.xlu1 %v3850_v59, %s5620_s9 }
 0x659   :  { %5475 = vmatprep.mubr.msk.bf16.mxu1 %vm69_vm6, %v4163_v32  ;;  %v4000_v48 = vld [vmem:[#allocation3 + $0xf0] sm:$0xff]  ;;  %v3592_v7 = vadd.f32 %v7088_v23, %v3495_v56  ;;  %v3498_v62 = vadd.f32 %v5286_v54, %v7108_v6 }
 0x65a   :  { %v3714_v1 = vld [vmem:[#allocation3 + $0xf1] sm:$0xff]  ;;  %v4010_v49 = vpack.c.bf16 %v4000_v48, %v3840_v55  ;;  %v3715_v20 = vld [vmem:[#allocation3 + $0x101] sm:$0xff] }
 0x65b   :  { %v3778_v47 = vld [vmem:[#allocation3 + $0xf2] sm:$0xff]  ;;  %v3723_v45 = vpack.c.bf16 %v3714_v1, %v3713_v9  ;;  %v3612_v63 = vmax.f32 %v3592_v7, 0.0  ;;  %v3595_v38 = vadd.f32 %v7092_v12, %v3498_v62  ;;  %v3915_v11 = vpack.c.bf16 %v3715_v20, %v3714_v1  ;;  %v3938_v6 = vld [vmem:[#allocation3 + $0x102] sm:$0xff] }
 0x65c   :  { %v3787_v61 = vpack.c.bf16 %v3778_v47, %v3936_v5  ;;  %4031 = vrot.lane.b32.xlu0 %v4010_v49, %s5619_s29  ;;  %3699 = vst.msk [vmem:[#allocation5 + $0x90] sm:$0xff] %vm69_vm6, %v4010_v49  ;;  %v3842_v13 = vld [vmem:[#allocation3 + $0x100] sm:$0xff]  ;;  %v3947_v12 = vpack.c.bf16 %v3938_v6, %v3778_v47  ;;  %v4004_v56 = vld [vmem:[#allocation3 + $0x130] sm:$0xff] }
 0x65d   :  { %3745 = vrot.lane.b32.xlu1 %v3723_v45, %s5618_s22  ;;  %3628 = vst.msk [vmem:[#allocation3 + $0x111] sm:$0xff] %vm69_vm6, %v3612_v63  ;;  %v3613_v23 = vmax.f32 %v3595_v38, 0.0  ;;  %3923 = vst.msk [vmem:[#allocation5 + $0x98] sm:$0xff] %vm69_vm6, %v3915_v11  ;;  %v3851_v52 = vpack.c.bf16 %v3842_v13, %v4000_v48  ;;  %v4068_v48 = vld [vmem:[#allocation3 + $0x131] sm:$0xff] }
 0x65e   :  { %4146 = vst.msk [vmem:[#allocation5 + $0x88] sm:$0xff] %vm69_vm6, %v3787_v61 }
 0x65f   :  { %3629 = vst.msk [vmem:[#allocation3 + $0x121] sm:$0xff] %vm69_vm6, %v3613_v23 }
 0x660   :  { %4095 = vrot.lane.b32.xlu0 %v3723_v45, %s5620_s9 }
 0x661   :  { %3809 = vrot.lane.b32.xlu1 %v3787_v61, %s5619_s29 }
 0x664   :  { %3969 = vrot.lane.b32.xlu0 %v3947_v12, %s5618_s22  ;;  %v4002_v9 = vld [vmem:[#allocation3 + $0x110] sm:$0xff] }
 0x665   :  { %v4166_v21 = vld [vmem:[#allocation5 + $0x88] sm:$0xff]  ;;  %3873 = vrot.lane.b32.xlu1 %v3851_v52, %s5620_s9  ;;  %v3716_v50 = vld [vmem:[#allocation3 + $0x111] sm:$0xff]  ;;  %v4011_v37 = vpack.c.bf16 %v4002_v9, %v3842_v13 }
 0x666   :  { %5476 = vmatmul.mubr.msk.bf16.gmra.mrb[84].mxu1 %vm69_vm6, %v4166_v21  ;;  %v3780_v35 = vld [vmem:[#allocation3 + $0x112] sm:$0xff]  ;;  %v3724_v57 = vpack.c.bf16 %v3716_v50, %v3715_v20  ;;  %v3940_v55 = vld [vmem:[#allocation3 + $0x122] sm:$0xff] }
 0x667   :  { %v3788_v5 = vpack.c.bf16 %v3780_v35, %v3938_v6  ;;  %v4067_v26 = vld [vmem:[#allocation3 + $0x121] sm:$0xff]  ;;  %v4140_v16 = vpack.c.bf16 %v4132_v0, %v3940_v55  ;;  %3700 = vst.msk [vmem:[#allocation5 + $0xa8] sm:$0xff] %vm69_vm6, %v4011_v37  ;;  %v3948_v44 = vpack.c.bf16 %v3940_v55, %v3780_v35 }
 0x668   :  { %4033 = vrot.lane.b32.xlu0 %v4011_v37, %s5619_s29  ;;  %v3916_v58 = vpack.c.bf16 %v4067_v26, %v3716_v50  ;;  %v3844_v51 = vld [vmem:[#allocation3 + $0x120] sm:$0xff]  ;;  %v4076_v1 = vpack.c.bf16 %v4068_v48, %v4067_v26 }
 0x669   :  { %3747 = vrot.lane.b32.xlu1 %v3724_v57, %s5618_s22  ;;  %4147 = vst.msk [vmem:[#allocation5 + $0xa0] sm:$0xff] %vm69_vm6, %v3788_v5  ;;  %4148 = vst.msk [vmem:[#allocation5 + $0xb8] sm:$0xff] %vm69_vm6, %v4140_v16  ;;  %v3852_v10 = vpack.c.bf16 %v3844_v51, %v4002_v9  ;;  %v4012_v32 = vpack.c.bf16 %v4004_v56, %v3844_v51 }
 0x66a   :  { %3924 = vst.msk [vmem:[#allocation5 + $0xb0] sm:$0xff] %vm69_vm6, %v3916_v58 }
 0x66c   :  { %4097 = vrot.lane.b32.xlu0 %v3724_v57, %s5620_s9 }
 0x66d   :  { %3811 = vrot.lane.b32.xlu1 %v3788_v5, %s5619_s29 }
 0x670   :  { %v4169_v59 = vld [vmem:[#allocation5 + $0xa0] sm:$0xff]  ;;  %3971 = vrot.lane.b32.xlu0 %v3948_v44, %s5618_s22  ;;  %v4172_v54 = vld [vmem:[#allocation5 + $0xb8] sm:$0xff] }
 0x671   :  { %5479 = vmatprep.mubr.msk.bf16.mxu1 %vm69_vm6, %v4169_v59  ;;  %3875 = vrot.lane.b32.xlu1 %v3852_v10, %s5620_s9 }
 0x672   :  { %5480 = vmatmul.mubr.msk.bf16.gmra.mrb[88].mxu1 %vm69_vm6, %v4172_v54 }
 0x674   :  { %4035 = vrot.lane.b32.xlu0 %v4012_v32, %s5619_s29 }
 0x678   :  { %4099 = vrot.lane.b32.xlu0 %v4076_v1, %s5620_s9 }
 0x67c   :  { %v3734_v47 = vpop.permute.xlu1 %3733 }
 0x67d   :  { %3757 = vst.msk [vmem:[#allocation5] sm:$0xff] %vm1016_vm14, %v3734_v47 }
 0x67e   :  { %v3958_v7 = vpop.permute.xlu0 %3957 }
 0x67f   :  { %3981 = vst.msk [vmem:[#allocation5 + $0x8] sm:$0xff] %vm1016_vm14, %v3958_v7 }
 0x680   :  { %v3798_v62 = vpop.permute.xlu1 %3797 }
 0x681   :  { %3821 = vst.msk [vmem:[#allocation5] sm:$0xff] %vm1081_vm15, %v3798_v62 }
 0x684   :  { %v3862_v49 = vpop.permute.xlu1 %3861 }
 0x685   :  { %3885 = vst.msk [vmem:[#allocation5] sm:$0xff] %vm1146_vm0, %v3862_v49 }
 0x689   :  { %v4022_v45 = vpop.permute.xlu0 %4021 }
 0x68a   :  { %v3736_v61 = vpop.permute.xlu1 %3735  ;;  %4045 = vst.msk [vmem:[#allocation5 + $0x8] sm:$0xff] %vm1081_vm15, %v4022_v45 }
 0x68b   :  { %3758 = vst.msk [vmem:[#allocation5 + $0x18] sm:$0xff] %vm1016_vm14, %v3736_v61 }
 0x68c   :  { %v4149_v12 = vld [vmem:[#allocation5] sm:$0xff] }
 0x68d   :  { %v4086_v20 = vpop.permute.xlu0 %4085 }
 0x68e   :  { %v3800_v63 = vpop.permute.xlu1 %3799  ;;  %4109 = vst.msk [vmem:[#allocation5 + $0x8] sm:$0xff] %vm1146_vm0, %v4086_v20 }
 0x68f   :  { %3822 = vst.msk [vmem:[#allocation5 + $0x18] sm:$0xff] %vm1081_vm15, %v3800_v63 }
 0x691   :  { %v3960_v38 = vpop.permute.xlu0 %3959 }
 0x692   :  { %v3864_v11 = vpop.permute.xlu1 %3863  ;;  %3982 = vst.msk [vmem:[#allocation5 + $0x20] sm:$0xff] %vm1016_vm14, %v3960_v38 }
 0x693   :  { %3886 = vst.msk [vmem:[#allocation5 + $0x18] sm:$0xff] %vm1146_vm0, %v3864_v11 }
 0x695   :  { %v4150_v13 = vld [vmem:[#allocation5 + $0x8] sm:$0xff] }
 0x696   :  { %v4024_v23 = vpop.permute.xlu0 %4023  ;;  %4343 = vmatprep.mubr.bf16.mxu0 %v4150_v13 }
 0x697   :  { %v3738_v6 = vpop.permute.xlu1 %3737  ;;  %4046 = vst.msk [vmem:[#allocation5 + $0x20] sm:$0xff] %vm1081_vm15, %v4024_v23  ;;  %4344 = vmatmul.mubr.bf16.vlgmr.msra.gmra.mrb[84].mxu0 %v4149_v12 }
 0x698   :  { %3759 = vst.msk [vmem:[#allocation5 + $0x30] sm:$0xff] %vm1016_vm14, %v3738_v6 }
 0x69a   :  { %v4088_v52 = vpop.permute.xlu0 %4087  ;;  %v4152_v57 = vld [vmem:[#allocation5 + $0x18] sm:$0xff] }
 0x69b   :  { %v3802_v21 = vpop.permute.xlu1 %3801  ;;  %4110 = vst.msk [vmem:[#allocation5 + $0x20] sm:$0xff] %vm1146_vm0, %v4088_v52 }
 0x69c   :  { %3823 = vst.msk [vmem:[#allocation5 + $0x30] sm:$0xff] %vm1081_vm15, %v3802_v21 }
 0x69e   :  { %v3962_v0 = vpop.permute.xlu0 %3961 }
 0x69f   :  { %v3866_v9 = vpop.permute.xlu1 %3865  ;;  %3983 = vst.msk [vmem:[#allocation5 + $0x38] sm:$0xff] %vm1016_vm14, %v3962_v0 }
 0x6a0   :  { %3887 = vst.msk [vmem:[#allocation5 + $0x30] sm:$0xff] %vm1146_vm0, %v3866_v9 }
 0x6a2   :  { %v4026_v50 = vpop.permute.xlu0 %4025  ;;  %v4153_v37 = vld [vmem:[#allocation5 + $0x20] sm:$0xff] }
 0x6a3   :  { %v3740_v35 = vpop.permute.xlu1 %3739  ;;  %4047 = vst.msk [vmem:[#allocation5 + $0x38] sm:$0xff] %vm1081_vm15, %v4026_v50  ;;  %4351 = vmatprep.mubr.bf16.mxu0 %v4153_v37 }
 0x6a4   :  { %3760 = vst.msk [vmem:[#allocation5 + $0x48] sm:$0xff] %vm1016_vm14, %v3740_v35  ;;  %4352 = vmatmul.mubr.bf16.gmra.mrb[88].mxu0 %v4152_v57 }
 0x6a6   :  { %v4090_v5 = vpop.permute.xlu0 %4089 }
 0x6a7   :  { %v3804_v55 = vpop.permute.xlu1 %3803  ;;  %4111 = vst.msk [vmem:[#allocation5 + $0x38] sm:$0xff] %vm1146_vm0, %v4090_v5  ;;  %v4155_v44 = vld [vmem:[#allocation5 + $0x30] sm:$0xff] }
 0x6a8   :  { %3824 = vst.msk [vmem:[#allocation5 + $0x48] sm:$0xff] %vm1081_vm15, %v3804_v55 }
 0x6aa   :  { %v3964_v26 = vpop.permute.xlu0 %3963 }
 0x6ab   :  { %3984 = vst.msk [vmem:[#allocation5 + $0x50] sm:$0xff] %vm1016_vm14, %v3964_v26  ;;  %v3868_v16 = vpop.permute.xlu1 %3867 }
 0x6ac   :  { %3888 = vst.msk [vmem:[#allocation5 + $0x48] sm:$0xff] %vm1146_vm0, %v3868_v16 }
 0x6ae   :  { %v4028_v58 = vpop.permute.xlu0 %4027  ;;  %v4156_v51 = vld [vmem:[#allocation5 + $0x38] sm:$0xff] }
 0x6af   :  { %4048 = vst.msk [vmem:[#allocation5 + $0x50] sm:$0xff] %vm1081_vm15, %v4028_v58  ;;  %4359 = vmatprep.mubr.bf16.mxu0 %v4156_v51 }
 0x6b0   :  { %4360 = vmatmul.mubr.bf16.gmra.mrb[92].mxu0 %v4155_v44  ;;  %v5606_v44 = vld [vmem:[%s7510_s5] sm:$0xff]  }
 0x6b1   :  { %5483 = vmatprep.subr.bf16.mxu1 %v5606_v44 }
 0x6b2   :  { %v4092_v59 = vpop.permute.xlu0 %4091  ;;  %5484 = vmatpush3.bf16.msra.mxu1 %v5606_v44 }
 0x6b3   :  { %4112 = vst.msk [vmem:[#allocation5 + $0x50] sm:$0xff] %vm1146_vm0, %v4092_v59  ;;  %v4158_v48 = vld [vmem:[#allocation5 + $0x48] sm:$0xff] }
 0x6b4   :  { %v3742_v10 = vpop.permute.xlu1 %3741 }
 0x6b5   :  { %3761 = vst.msk [vmem:[#allocation5 + $0x60] sm:$0xff] %vm1016_vm14, %v3742_v10 }
 0x6b6   :  { %v3966_v56 = vpop.permute.xlu0 %3965 }
 0x6b7   :  { %3985 = vst.msk [vmem:[#allocation5 + $0x68] sm:$0xff] %vm1016_vm14, %v3966_v56 }
 0x6b8   :  { %v3806_v54 = vpop.permute.xlu1 %3805 }
 0x6b9   :  { %3825 = vst.msk [vmem:[#allocation5 + $0x60] sm:$0xff] %vm1081_vm15, %v3806_v54 }
 0x6ba   :  { %v4159_v32 = vld [vmem:[#allocation5 + $0x50] sm:$0xff] }
 0x6bb   :  { %4367 = vmatprep.mubr.bf16.mxu0 %v4159_v32  ;;  %v5607_v32 = vld [vmem:[%s7510_s5 + $0x8] sm:$0xff]  }
 0x6bc   :  { %4368 = vmatmul.mubr.bf16.gmra.mrb[96].mxu0 %v4158_v48  ;;  %v3870_v1 = vpop.permute.xlu1 %3869  ;;  %5485 = vmatprep.subr.bf16.mxu1 %v5607_v32 }
 0x6bd   :  { %3889 = vst.msk [vmem:[#allocation5 + $0x60] sm:$0xff] %vm1146_vm0, %v3870_v1  ;;  %5486 = vmatpush3.bf16.msra.mxu1 %v5607_v32 }
 0x6c1   :  { %v4030_v47 = vpop.permute.xlu0 %4029 }
 0x6c2   :  { %v3744_v7 = vpop.permute.xlu1 %3743  ;;  %4049 = vst.msk [vmem:[#allocation5 + $0x68] sm:$0xff] %vm1081_vm15, %v4030_v47 }
 0x6c3   :  { %3762 = vst.msk [vmem:[#allocation5 + $0x78] sm:$0xff] %vm1016_vm14, %v3744_v7 }
 0x6c4   :  { %v4161_v11 = vld [vmem:[#allocation5 + $0x60] sm:$0xff] }
 0x6c5   :  { %v4094_v62 = vpop.permute.xlu0 %4093 }
 0x6c6   :  { %v3808_v49 = vpop.permute.xlu1 %3807  ;;  %4113 = vst.msk [vmem:[#allocation5 + $0x68] sm:$0xff] %vm1146_vm0, %v4094_v62 }
 0x6c7   :  { %3826 = vst.msk [vmem:[#allocation5 + $0x78] sm:$0xff] %vm1081_vm15, %v3808_v49 }
 0x6c9   :  { %v3968_v45 = vpop.permute.xlu0 %3967 }
 0x6ca   :  { %v3872_v61 = vpop.permute.xlu1 %3871  ;;  %3986 = vst.msk [vmem:[#allocation5 + $0x80] sm:$0xff] %vm1016_vm14, %v3968_v45 }
 0x6cb   :  { %3890 = vst.msk [vmem:[#allocation5 + $0x78] sm:$0xff] %vm1146_vm0, %v3872_v61 }
 0x6cd   :  { %v4162_v38 = vld [vmem:[#allocation5 + $0x68] sm:$0xff] }
 0x6ce   :  { %v4032_v20 = vpop.permute.xlu0 %4031  ;;  %4375 = vmatprep.mubr.bf16.mxu0 %v4162_v38 }
 0x6cf   :  { %v3746_v63 = vpop.permute.xlu1 %3745  ;;  %4050 = vst.msk [vmem:[#allocation5 + $0x80] sm:$0xff] %vm1081_vm15, %v4032_v20  ;;  %4376 = vmatmul.mubr.bf16.gmra.mrb[100].mxu0 %v4161_v11 }
 0x6d0   :  { %3763 = vst.msk [vmem:[#allocation5 + $0x90] sm:$0xff] %vm1016_vm14, %v3746_v63 }
 0x6d2   :  { %v4096_v23 = vpop.permute.xlu0 %4095  ;;  %v4164_v9 = vld [vmem:[#allocation5 + $0x78] sm:$0xff] }
 0x6d3   :  { %v3810_v6 = vpop.permute.xlu1 %3809  ;;  %4114 = vst.msk [vmem:[#allocation5 + $0x80] sm:$0xff] %vm1146_vm0, %v4096_v23 }
 0x6d4   :  { %3827 = vst.msk [vmem:[#allocation5 + $0x90] sm:$0xff] %vm1081_vm15, %v3810_v6  ;;  %v7352_v6 = vld [vmem:[%s7509_s4 + $0x3] ss:$0 sm:$0xff] }
 0x6d6   :  { %v3970_v13 = vpop.permute.xlu0 %3969 }
 0x6d7   :  { %v3874_v12 = vpop.permute.xlu1 %3873  ;;  %3987 = vst.msk [vmem:[#allocation5 + $0x98] sm:$0xff] %vm1016_vm14, %v3970_v13 }
 0x6d8   :  { %3891 = vst.msk [vmem:[#allocation5 + $0x90] sm:$0xff] %vm1146_vm0, %v3874_v12 }
 0x6da   :  { %v4034_v52 = vpop.permute.xlu0 %4033  ;;  %v4165_v0 = vld [vmem:[#allocation5 + $0x80] sm:$0xff] }
 0x6db   :  { %v3748_v21 = vpop.permute.xlu1 %3747  ;;  %4051 = vst.msk [vmem:[#allocation5 + $0x98] sm:$0xff] %vm1081_vm15, %v4034_v52  ;;  %4383 = vmatprep.mubr.bf16.mxu0 %v4165_v0 }
 0x6dc   :  { %3764 = vst.msk [vmem:[#allocation5 + $0xa8] sm:$0xff] %vm1016_vm14, %v3748_v21  ;;  %4384 = vmatmul.mubr.bf16.gmra.mrb[104].mxu0 %v4164_v9 }
 0x6de   :  { %v4098_v50 = vpop.permute.xlu0 %4097 }
 0x6df   :  { %v3812_v35 = vpop.permute.xlu1 %3811  ;;  %4115 = vst.msk [vmem:[#allocation5 + $0x98] sm:$0xff] %vm1146_vm0, %v4098_v50  ;;  %v4167_v26 = vld [vmem:[#allocation5 + $0x90] sm:$0xff] }
 0x6e0   :  { %3828 = vst.msk [vmem:[#allocation5 + $0xa8] sm:$0xff] %vm1081_vm15, %v3812_v35 }
 0x6e2   :  { %v3972_v37 = vpop.permute.xlu0 %3971 }
 0x6e3   :  { %3988 = vst.msk [vmem:[#allocation5 + $0xb0] sm:$0xff] %vm1016_vm14, %v3972_v37  ;;  %v3876_v57 = vpop.permute.xlu1 %3875 }
 0x6e4   :  { %3892 = vst.msk [vmem:[#allocation5 + $0xa8] sm:$0xff] %vm1146_vm0, %v3876_v57 }
 0x6e6   :  { %v4036_v5 = vpop.permute.xlu0 %4035  ;;  %v4168_v55 = vld [vmem:[#allocation5 + $0x98] sm:$0xff] }
 0x6e7   :  { %4052 = vst.msk [vmem:[#allocation5 + $0xb0] sm:$0xff] %vm1081_vm15, %v4036_v5  ;;  %4391 = vmatprep.mubr.bf16.mxu0 %v4168_v55  ;;  %v7517_v5 = vmax.f32 %v6729_v30, 0.0 }
 0x6e8   :  { %4392 = vmatmul.mubr.bf16.gmra.mrb[108].mxu0 %v4167_v26 }
 0x6ea   :  { %v4100_v16 = vpop.permute.xlu0 %4099 }
 0x6eb   :  { %4116 = vst.msk [vmem:[#allocation5 + $0xb0] sm:$0xff] %vm1146_vm0, %v4100_v16  ;;  %v4170_v51 = vld [vmem:[#allocation5 + $0xa8] sm:$0xff] }
 0x6f2   :  { %v4171_v58 = vld [vmem:[#allocation5 + $0xb0] sm:$0xff] }
 0x6f3   :  { %4399 = vmatprep.mubr.bf16.mxu0 %v4171_v58 }
 0x6f4   :  { %4400 = vmatmul.mubr.bf16.gmra.mrb[112].mxu0 %v4170_v51 }
 0x701   :  { %v5469_v59 = vpop.f32.mrb[76].mxu1 }
 0x702   :  { %v4442_v10 = vpop.f32.mrb[77].mxu1 }
 0x703   :  { %v5470_v56 = vpop.f32.mrb[78].mxu1 }
 0x704   :  { %v4445_v54 = vpop.f32.mrb[79].mxu1 }
 0x70d   :  { %v7329_v48 = vpop.f32.mrb[80].mxu1 }
 0x70e   :  { %v4458_v1 = vpop.f32.mrb[81].mxu1 }
 0x70f   :  { %v7331_v47 = vpop.f32.mrb[82].mxu1 }
 0x710   :  { %v4461_v7 = vpop.f32.mrb[83].mxu1 }
 0x739   :  { %v7333_v62 = vpop.f32.mrb[84].mxu1 }
 0x73a   :  { %v7335_v49 = vpop.f32.mrb[85].mxu1 }
 0x73b   :  { %v7337_v45 = vpop.f32.mrb[86].mxu1 }
 0x73c   :  { %v7339_v61 = vpop.f32.mrb[87].mxu1 }
 0x745   :  { %v7341_v20 = vpop.f32.mrb[88].mxu1 }
 0x746   :  { %v7343_v63 = vpop.f32.mrb[89].mxu1 }
 0x747   :  { %v7345_v38 = vpop.f32.mrb[90].mxu1 }
 0x748   :  { %v7347_v11 = vpop.f32.mrb[91].mxu1 }
 0x76a   :  { %v5313_v23 = vpop.f32.mrb[84].mxu0 }
 0x76b   :  { %v5314_v13 = vpop.f32.mrb[85].mxu0 }
 0x76c   :  { %v5315_v12 = vadd.f32 %v5314_v13, %v5313_v23  ;;  %v5316_v52 = vpop.f32.mrb[86].mxu0 }
 0x76d   :  { %v5317_v21 = vpop.f32.mrb[87].mxu0 }
 0x76e   :  { %v4346_v0 = vadd.f32 %v5315_v12, %v7352_v6  ;;  %v5318_v9 = vadd.f32 %v5317_v21, %v5316_v52 }
 0x770   :  { %v4443_v50 = vadd.f32 %v4442_v10, %v4346_v0  ;;  %v4349_v35 = vadd.f32 %v5318_v9, %v7352_v6 }
 0x772   :  { %v4505_v37 = vadd.f32 %v4443_v50, %v2691_v27  ;;  %v4446_v57 = vadd.f32 %v4445_v54, %v4349_v35 }
 0x774   :  { %v4506_v55 = vadd.f32 %v4446_v57, %v7517_v5  ;;  %v4521_v26 = vmax.f32 %v4505_v37, 0.0 }
 0x776   :  { %v4522_v16 = vmax.f32 %v4506_v55, 0.0 }
 0x777   :  { %v5319_v58 = vpop.f32.mrb[88].mxu0 }
 0x778   :  { %v5320_v51 = vpop.f32.mrb[89].mxu0  ;;  %v4537_v23 = vpack.c.bf16 %v4522_v16, %v4521_v26 }
 0x779   :  { %v5321_v44 = vadd.f32 %v5320_v51, %v5319_v58  ;;  %v5322_v32 = vpop.f32.mrb[90].mxu0 }
 0x77a   :  { %v5323_v13 = vpop.f32.mrb[91].mxu0  ;;  %5487 = vmatprep.mubr.msk.bf16.mxu1 %vm69_vm6, %v4537_v23 }
 0x77b   :  { %v4354_v12 = vadd.f32 %v5321_v44, %v7352_v6  ;;  %v5324_v10 = vadd.f32 %v5323_v13, %v5322_v32 }
 0x77d   :  { %v4451_v52 = vadd.f32 %v5469_v59, %v4354_v12  ;;  %v4357_v33 = vadd.f32 %v5324_v10, %v7352_v6 }
 0x77f   :  { %v4507_v27 = vadd.f32 %v4451_v52, %v2693_v25  ;;  %v4454_v30 = vadd.f32 %v5470_v56, %v4357_v33 }
 0x781   :  { %v4508_v54 = vadd.f32 %v4454_v30, %v2694_v24  ;;  %v4523_v21 = vmax.f32 %v4507_v27, 0.0 }
 0x783   :  { %v4524_v0 = vmax.f32 %v4508_v54, 0.0  ;;  %v5325_v9 = vpop.f32.mrb[92].mxu0 }
 0x784   :  { %v5326_v50 = vpop.f32.mrb[93].mxu0 }
 0x785   :  { %v4538_v35 = vpack.c.bf16 %v4524_v0, %v4523_v21  ;;  %v5327_v37 = vadd.f32 %v5326_v50, %v5325_v9  ;;  %v5328_v57 = vpop.f32.mrb[94].mxu0 }
 0x786   :  { %v5329_v5 = vpop.f32.mrb[95].mxu0 }
 0x787   :  { %v4362_v55 = vadd.f32 %v5327_v37, %v7352_v6  ;;  %v5330_v59 = vadd.f32 %v5329_v5, %v5328_v57  ;;  %5488 = vmatmul.mubr.msk.bf16.vlgmr.msra.gmra.mrb[92].mxu1 %vm69_vm6, %v4538_v35 }
 0x789   :  { %v4459_v26 = vadd.f32 %v4458_v1, %v4362_v55  ;;  %v4365_v31 = vadd.f32 %v5330_v59, %v7352_v6 }
 0x78b   :  { %v4509_v25 = vadd.f32 %v4459_v26, %v2695_v43  ;;  %v4462_v22 = vadd.f32 %v4461_v7, %v4365_v31 }
 0x78d   :  { %v4510_v24 = vadd.f32 %v4462_v22, %v2696_v17  ;;  %v4525_v56 = vmax.f32 %v4509_v25, 0.0 }
 0x78f   :  { %v4526_v16 = vmax.f32 %v4510_v24, 0.0  ;;  %v5331_v58 = vpop.f32.mrb[96].mxu0 }
 0x790   :  { %v5332_v51 = vpop.f32.mrb[97].mxu0 }
 0x791   :  { %v5333_v44 = vadd.f32 %v5332_v51, %v5331_v58  ;;  %v5334_v32 = vpop.f32.mrb[98].mxu0  ;;  %v4539_v23 = vpack.c.bf16 %v4526_v16, %v4525_v56 }
 0x792   :  { %v5335_v13 = vpop.f32.mrb[99].mxu0 }
 0x793   :  { %v4370_v12 = vadd.f32 %v5333_v44, %v7352_v6  ;;  %v5336_v1 = vadd.f32 %v5335_v13, %v5334_v32  ;;  %5491 = vmatprep.mubr.msk.bf16.mxu1 %vm69_vm6, %v4539_v23 }
 0x795   :  { %v4467_v36 = vadd.f32 %v7329_v48, %v4370_v12  ;;  %v4373_v43 = vadd.f32 %v5336_v1, %v7352_v6 }
 0x797   :  { %v4511_v60 = vadd.f32 %v4467_v36, %v2697_v14  ;;  %v4470_v17 = vadd.f32 %v7331_v47, %v4373_v43 }
 0x799   :  { %v4512_v7 = vadd.f32 %v4470_v17, %v2698_v15  ;;  %v4527_v10 = vmax.f32 %v4511_v60, 0.0 }
 0x79b   :  { %v4528_v52 = vmax.f32 %v4512_v7, 0.0 }
 0x79d   :  { %v4540_v33 = vpack.c.bf16 %v4528_v52, %v4527_v10 }
 0x79f   :  { %5492 = vmatmul.mubr.msk.bf16.gmra.mrb[96].mxu1 %vm69_vm6, %v4540_v33  ;;  %v7520_v33 = vmax.f32 %v6981_v28, 0.0 }
 0x7a2   :  { %v5337_v27 = vpop.f32.mrb[100].mxu0 }
 0x7a3   :  { %v5338_v30 = vpop.f32.mrb[101].mxu0 }
 0x7a4   :  { %v5339_v54 = vadd.f32 %v5338_v30, %v5337_v27  ;;  %v5340_v21 = vpop.f32.mrb[102].mxu0 }
 0x7a5   :  { %v5341_v48 = vpop.f32.mrb[103].mxu0 }
 0x7a6   :  { %v4378_v0 = vadd.f32 %v5339_v54, %v7352_v6  ;;  %v5342_v9 = vadd.f32 %v5341_v48, %v5340_v21  ;;  %v7423_v48 = vld [vmem:[%s7511_s6] ss:$0 sm:$0xff] }
 0x7a8   :  { %v4475_v29 = vadd.f32 %v7335_v49, %v4378_v0  ;;  %v4381_v14 = vadd.f32 %v5342_v9, %v7352_v6 }
 0x7aa   :  { %v4513_v8 = vadd.f32 %v4475_v29, %v2699_v18  ;;  %v4478_v15 = vadd.f32 %v7339_v61, %v4381_v14 }
 0x7ac   :  { %v4514_v47 = vadd.f32 %v4478_v15, %v2700_v4  ;;  %v4529_v50 = vmax.f32 %v4513_v8, 0.0 }
 0x7ae   :  { %v4530_v35 = vmax.f32 %v4514_v47, 0.0 }
 0x7af   :  { %v5343_v37 = vpop.f32.mrb[104].mxu0 }
 0x7b0   :  { %v5344_v57 = vpop.f32.mrb[105].mxu0  ;;  %v4541_v59 = vpack.c.bf16 %v4530_v35, %v4529_v50 }
 0x7b1   :  { %v5345_v5 = vadd.f32 %v5344_v57, %v5343_v37  ;;  %v5346_v55 = vpop.f32.mrb[106].mxu0 }
 0x7b2   :  { %v5347_v26 = vpop.f32.mrb[107].mxu0  ;;  %5495 = vmatprep.mubr.msk.bf16.mxu1 %vm69_vm6, %v4541_v59 }
 0x7b3   :  { %v4386_v49 = vadd.f32 %v5345_v5, %v7352_v6  ;;  %v5348_v31 = vadd.f32 %v5347_v26, %v5346_v55 }
 0x7b5   :  { %v4483_v46 = vadd.f32 %v7333_v62, %v4386_v49  ;;  %v4389_v18 = vadd.f32 %v5348_v31, %v7352_v6 }
 0x7b7   :  { %v4515_v19 = vadd.f32 %v4483_v46, %v2701_v40  ;;  %v4486_v4 = vadd.f32 %v7337_v45, %v4389_v18  ;;  %v7518_v45 = vmax.f32 %v6951_v42, 0.0  ;;  %v7519_v42 = vmax.f32 %v6975_v41, 0.0 }
 0x7b9   :  { %v4516_v61 = vadd.f32 %v4486_v4, %v2702_v2  ;;  %v4531_v25 = vmax.f32 %v4515_v19, 0.0 }
 0x7bb   :  { %v4532_v22 = vmax.f32 %v4516_v61, 0.0  ;;  %v5349_v24 = vpop.f32.mrb[108].mxu0 }
 0x7bc   :  { %v5350_v56 = vpop.f32.mrb[109].mxu0 }
 0x7bd   :  { %v5351_v16 = vadd.f32 %v5350_v56, %v5349_v24  ;;  %v5352_v58 = vpop.f32.mrb[110].mxu0  ;;  %v4542_v51 = vpack.c.bf16 %v4532_v22, %v4531_v25 }
 0x7be   :  { %v5353_v44 = vpop.f32.mrb[111].mxu0 }
 0x7bf   :  { %v4394_v62 = vadd.f32 %v5351_v16, %v7352_v6  ;;  %v5354_v32 = vadd.f32 %v5353_v44, %v5352_v58  ;;  %5496 = vmatmul.mubr.msk.bf16.gmra.mrb[100].mxu1 %vm69_vm6, %v4542_v51 }
 0x7c1   :  { %v4491_v34 = vadd.f32 %v7343_v63, %v4394_v62  ;;  %v4397_v40 = vadd.f32 %v5354_v32, %v7352_v6 }
 0x7c3   :  { %v4517_v39 = vadd.f32 %v4491_v34, %v2703_v53  ;;  %v4494_v2 = vadd.f32 %v7347_v11, %v4397_v40 }
 0x7c5   :  { %v4518_v23 = vadd.f32 %v4494_v2, %v7518_v45  ;;  %v4533_v13 = vmax.f32 %v4517_v39, 0.0 }
 0x7c7   :  { %v4534_v12 = vmax.f32 %v4518_v23, 0.0  ;;  %v5355_v1 = vpop.f32.mrb[112].mxu0 }
 0x7c8   :  { %v5356_v36 = vpop.f32.mrb[113].mxu0 }
 0x7c9   :  { %v5357_v43 = vadd.f32 %v5356_v36, %v5355_v1  ;;  %v5358_v60 = vpop.f32.mrb[114].mxu0  ;;  %v4543_v17 = vpack.c.bf16 %v4534_v12, %v4533_v13 }
 0x7ca   :  { %v5359_v7 = vpop.f32.mrb[115].mxu0 }
 0x7cb   :  { %v4402_v63 = vadd.f32 %v5357_v43, %v7352_v6  ;;  %v5360_v10 = vadd.f32 %v5359_v7, %v5358_v60  ;;  %5499 = vmatprep.mubr.msk.bf16.mxu1 %vm69_vm6, %v4543_v17 }
 0x7cd   :  { %v4499_v3 = vadd.f32 %v7341_v20, %v4402_v63  ;;  %v4405_v53 = vadd.f32 %v5360_v10, %v7352_v6 }
 0x7cf   :  { %v4519_v11 = vadd.f32 %v4499_v3, %v7519_v42  ;;  %v4502_v52 = vadd.f32 %v7345_v38, %v4405_v53 }
 0x7d1   :  { %v4520_v27 = vadd.f32 %v4502_v52, %v7520_v33  ;;  %v4535_v30 = vmax.f32 %v4519_v11, 0.0 }
 0x7d3   :  { %v4536_v54 = vmax.f32 %v4520_v27, 0.0 }
 0x7d5   :  { %v4544_v21 = vpack.c.bf16 %v4536_v54, %v4535_v30 }
 0x7d7   :  { %5500 = vmatmul.mubr.msk.bf16.gmra.mrb[104].mxu1 %vm69_vm6, %v4544_v21 }
 0x85a   :  { %v5489_v20 = vpop.f32.mrb[92].mxu1 }
 0x85b   :  { %v4635_v6 = vadd.f32 %v5489_v20, %v7423_v48  ;;  %v4626_v41 = vpop.f32.mrb[93].mxu1 }
 0x85c   :  { %v4627_v0 = vadd.f32 %v7423_v48, %v4626_v41  ;;  %v5490_v38 = vpop.f32.mrb[94].mxu1 }
 0x85d   :  { %v4691_v9 = vmax.f32 %v4635_v6, 0.0  ;;  %v4638_v28 = vadd.f32 %v5490_v38, %v7423_v48  ;;  %v4629_v29 = vpop.f32.mrb[95].mxu1 }
 0x85e   :  { %v4689_v14 = vmax.f32 %v4627_v0, 0.0  ;;  %v4630_v8 = vadd.f32 %v7423_v48, %v4629_v29 }
 0x85f   :  { %v5050_v15 = vpack.c.bf16 %v4691_v9, %v4691_v9  ;;  %v4692_v47 = vmax.f32 %v4638_v28, 0.0 }
 0x860   :  { %v5048_v50 = vpack.c.bf16 %v4689_v14, %v4689_v14  ;;  %v4690_v35 = vmax.f32 %v4630_v8, 0.0 }
 0x861   :  { %4772 = vst.msk [vmem:[%s7512_s7 + $0x8] sm:$0xf] %vm4769_vm1, %v5050_v15  ;;  %v5051_v37 = vpack.c.bf16 %v4692_v47, %v4692_v47 }
 0x862   :  { %4770 = vst.msk [vmem:[%s7512_s7] sm:$0xf] %vm4769_vm1, %v5048_v50  ;;  %v5049_v57 = vpack.c.bf16 %v4690_v35, %v4690_v35 }
 0x863   :  { %4773 = vst.msk [vmem:[%s7512_s7 + $0xc] sm:$0xf] %vm4769_vm1, %v5051_v37 }
 0x864   :  { %4771 = vst.msk [vmem:[%s7512_s7 + $0x4] sm:$0xf] %vm4769_vm1, %v5049_v57 }
 0x872   :  { %v5493_v5 = vpop.f32.mrb[96].mxu1 }
 0x873   :  { %v4651_v55 = vadd.f32 %v5493_v5, %v7423_v48  ;;  %v4642_v59 = vpop.f32.mrb[97].mxu1 }
 0x874   :  { %v4643_v26 = vadd.f32 %v7423_v48, %v4642_v59  ;;  %v5494_v49 = vpop.f32.mrb[98].mxu1 }
 0x875   :  { %v4695_v31 = vmax.f32 %v4651_v55, 0.0  ;;  %v4654_v46 = vadd.f32 %v5494_v49, %v7423_v48  ;;  %v4645_v18 = vpop.f32.mrb[99].mxu1 }
 0x876   :  { %v4693_v19 = vmax.f32 %v4643_v26, 0.0  ;;  %v4646_v4 = vadd.f32 %v7423_v48, %v4645_v18 }
 0x877   :  { %v5054_v61 = vpack.c.bf16 %v4695_v31, %v4695_v31  ;;  %v4696_v25 = vmax.f32 %v4654_v46, 0.0 }
 0x878   :  { %v5052_v22 = vpack.c.bf16 %v4693_v19, %v4693_v19  ;;  %v4694_v24 = vmax.f32 %v4646_v4, 0.0 }
 0x879   :  { %4776 = vst.msk [vmem:[%s7512_s7 + $0x18] sm:$0xf] %vm4769_vm1, %v5054_v61  ;;  %v5055_v56 = vpack.c.bf16 %v4696_v25, %v4696_v25 }
 0x87a   :  { %4774 = vst.msk [vmem:[%s7512_s7 + $0x10] sm:$0xf] %vm4769_vm1, %v5052_v22  ;;  %v5053_v16 = vpack.c.bf16 %v4694_v24, %v4694_v24 }
 0x87b   :  { %4777 = vst.msk [vmem:[%s7512_s7 + $0x1c] sm:$0xf] %vm4769_vm1, %v5055_v56 }
 0x87c   :  { %4775 = vst.msk [vmem:[%s7512_s7 + $0x14] sm:$0xf] %vm4769_vm1, %v5053_v16 }
 0x892   :  { %v5497_v58 = vpop.f32.mrb[100].mxu1 }
 0x893   :  { %v4667_v51 = vadd.f32 %v5497_v58, %v7423_v48  ;;  %v4658_v44 = vpop.f32.mrb[101].mxu1 }
 0x894   :  { %v4659_v62 = vadd.f32 %v7423_v48, %v4658_v44  ;;  %v5498_v32 = vpop.f32.mrb[102].mxu1 }
 0x895   :  { %v4699_v34 = vmax.f32 %v4667_v51, 0.0  ;;  %v4670_v40 = vadd.f32 %v5498_v32, %v7423_v48  ;;  %v4661_v39 = vpop.f32.mrb[103].mxu1 }
 0x896   :  { %v4697_v2 = vmax.f32 %v4659_v62, 0.0  ;;  %v4662_v45 = vadd.f32 %v7423_v48, %v4661_v39 }
 0x897   :  { %v5058_v23 = vpack.c.bf16 %v4699_v34, %v4699_v34  ;;  %v4700_v13 = vmax.f32 %v4670_v40, 0.0 }
 0x898   :  { %v5056_v12 = vpack.c.bf16 %v4697_v2, %v4697_v2  ;;  %v4698_v1 = vmax.f32 %v4662_v45, 0.0 }
 0x899   :  { %4780 = vst.msk [vmem:[%s7512_s7 + $0x28] sm:$0xf] %vm4769_vm1, %v5058_v23  ;;  %v5059_v36 = vpack.c.bf16 %v4700_v13, %v4700_v13 }
 0x89a   :  { %4778 = vst.msk [vmem:[%s7512_s7 + $0x20] sm:$0xf] %vm4769_vm1, %v5056_v12  ;;  %v5057_v43 = vpack.c.bf16 %v4698_v1, %v4698_v1 }
 0x89b   :  { %4781 = vst.msk [vmem:[%s7512_s7 + $0x2c] sm:$0xf] %vm4769_vm1, %v5059_v36 }
 0x89c   :  { %4779 = vst.msk [vmem:[%s7512_s7 + $0x24] sm:$0xf] %vm4769_vm1, %v5057_v43 }
 0x8aa   :  { %v5501_v60 = vpop.f32.mrb[104].mxu1 }
 0x8ab   :  { %v4683_v17 = vadd.f32 %v5501_v60, %v7423_v48  ;;  %v4674_v7 = vpop.f32.mrb[105].mxu1 }
 0x8ac   :  { %v4675_v63 = vadd.f32 %v7423_v48, %v4674_v7  ;;  %v5502_v10 = vpop.f32.mrb[106].mxu1 }
 0x8ad   :  { %v4703_v3 = vmax.f32 %v4683_v17, 0.0  ;;  %v4686_v53 = vadd.f32 %v5502_v10, %v7423_v48  ;;  %v4677_v42 = vpop.f32.mrb[107].mxu1 }
 0x8ae   :  { %v4701_v11 = vmax.f32 %v4675_v63, 0.0  ;;  %v4678_v52 = vadd.f32 %v7423_v48, %v4677_v42 }
 0x8af   :  { %v5062_v33 = vpack.c.bf16 %v4703_v3, %v4703_v3  ;;  %v4704_v27 = vmax.f32 %v4686_v53, 0.0 }
 0x8b0   :  { %v5060_v30 = vpack.c.bf16 %v4701_v11, %v4701_v11  ;;  %v4702_v54 = vmax.f32 %v4678_v52, 0.0 }
 0x8b1   :  { %4784 = vst.msk [vmem:[%s7512_s7 + $0x38] sm:$0xf] %vm4769_vm1, %v5062_v33  ;;  %v5063_v21 = vpack.c.bf16 %v4704_v27, %v4704_v27 }
 0x8b2   :  { %4782 = vst.msk [vmem:[%s7512_s7 + $0x30] sm:$0xf] %vm4769_vm1, %v5060_v30  ;;  %v5061_v20 = vpack.c.bf16 %v4702_v54, %v4702_v54 }
 0x8b3   :  { %4785 = vst.msk [vmem:[%s7512_s7 + $0x3c] sm:$0xf] %vm4769_vm1, %v5063_v21 }
 0x8b4   :  { %4783 = vst.msk [vmem:[%s7512_s7 + $0x34] sm:$0xf] %vm4769_vm1, %v5061_v20 }

</bundles_post_ra>
